<compile_context>
chip_gen: v6e
topology: v6e:2x2x1
jax: 0.10.0
libtpu: 0.0.40
codegen_flags: <defaults>
</compile_context>

<pallas_src>
import numpy as np
import jax
import jax.numpy as jnp
from jax.experimental import pallas as pl
from jax.experimental.pallas import tpu as pltpu

INPUT_SIZE = 10
HIDDEN = 15
NUM_LAYERS = 3
NUM_CLASSES = 3


def lstm_fc_kernel(x_ref,                       # (T, B, D_in)  time-major input
                   h0_ref, c0_ref,              # (L, B, H)
                   wih0_ref, whh0_ref,          # (D_in, 4H), (H, 4H)   layer 0
                   wih1_ref, whh1_ref,          # (H, 4H),    (H, 4H)   layer 1
                   wih2_ref, whh2_ref,          # (H, 4H),    (H, 4H)   layer 2
                   b0_ref, b1_ref, b2_ref,      # (1, 4H)  b_ih + b_hh per layer
                   fcw_ref, fcb_ref,            # (H, C), (1, C)
                   out_ref):                    # (B, C)
    H = HIDDEN
    T, B, _ = x_ref.shape

    # --- Hoisted, loop-invariant values -----------------------------------------------
    wih0 = wih0_ref[...]
    wih = [None, wih1_ref[...], wih2_ref[...]]
    whh = [whh0_ref[...], whh1_ref[...], whh2_ref[...]]

    # Bias broadcasts hoisted (JAX does not CSE broadcast_in_dim inside loops).
    b0 = jnp.broadcast_to(b0_ref[...], (B, 4 * H))
    b = [None,
         jnp.broadcast_to(b1_ref[...], (B, 4 * H)),
         jnp.broadcast_to(b2_ref[...], (B, 4 * H))]

    # Lane mask selecting the g-gate columns (PyTorch gate order [i, f, g, o]).
    lane = jax.lax.broadcasted_iota(jnp.int32, (B, 4 * H), 1)
    g_mask = jnp.logical_and(lane >= 2 * H, lane < 3 * H)

    def activate_and_update(gates, c_prev):
        # One EUP tanh push over the full (B, 4H) vreg; sigmoid via the exact identity
        # sigmoid(x) = 0.5 * (1 + tanh(x/2)).
        pre = jnp.where(g_mask, gates, 0.5 * gates)
        th = jnp.tanh(pre)
        act = jnp.where(g_mask, th, 0.5 * th + 0.5)          # (B, 4H)
        i = act[:, 0:H]
        f = act[:, H:2 * H]
        g = act[:, 2 * H:3 * H]
        o = act[:, 3 * H:4 * H]
        c_new = f * c_prev + i * g
        h_new = o * jnp.tanh(c_new)
        return h_new, c_new

    # Layer-0 input projections for all timesteps, hoisted off the recurrent chain.
    # Each x_ref[t] is a whole (B, D) tile load; bias b0 folded in here.
    x_proj = [jnp.dot(x_ref[t], wih0, preferred_element_type=jnp.float32) + b0
              for t in range(T)]

    h = [h0_ref[l] for l in range(NUM_LAYERS)]
    c = [c0_ref[l] for l in range(NUM_LAYERS)]

    # Software-pipelined recurrent projections: hh[l] = h[l] @ W_hh[l] is always computed
    # right after h[l] changes, so it is ready when layer l's gates are formed next step.
    hh = [jnp.dot(h[l], whh[l], preferred_element_type=jnp.float32)
          for l in range(NUM_LAYERS)]

    # --- Recurrence: fully unrolled (T, L small and static) ----------------------------
    for t in range(T):
        last_t = (t == T - 1)

        # Layer 0: input projection hoisted; recurrent projection pipelined from t-1.
        gates = x_proj[t] + hh[0]
        h[0], c[0] = activate_and_update(gates, c[0])
        if not last_t:
            hh[0] = jnp.dot(h[0], whh[0], preferred_element_type=jnp.float32)

        # Layers 1 / 2: de-fused dots (no lane concat). The hh[l] term is an independent
        # dot issued last step; on v7x Mosaic may accumulate the pair in the MRB.
        for l in (1, 2):
            gates = (jnp.dot(h[l - 1], wih[l], preferred_element_type=jnp.float32)
                     + hh[l] + b[l])
            h[l], c[l] = activate_and_update(gates, c[l])
            if not last_t:
                hh[l] = jnp.dot(h[l], whh[l], preferred_element_type=jnp.float32)

    # fc1(hn[-1]) -> ReLU
    logits = (jnp.dot(h[NUM_LAYERS - 1], fcw_ref[...],
                      preferred_element_type=jnp.float32) + fcb_ref[...])
    out_ref[...] = jnp.maximum(logits, 0.0)


def init_params(key):
    """Deterministic parameter init mirroring PyTorch module shapes."""
    k = 1.0 / np.sqrt(HIDDEN)
    keys = jax.random.split(key, 4 * NUM_LAYERS + 2)
    params = {}
    ki = 0
    for l in range(NUM_LAYERS):
        d_in = INPUT_SIZE if l == 0 else HIDDEN
        params[f"w_ih_{l}"] = jax.random.uniform(keys[ki], (4 * HIDDEN, d_in),
                                                 jnp.float32, -k, k); ki += 1
        params[f"w_hh_{l}"] = jax.random.uniform(keys[ki], (4 * HIDDEN, HIDDEN),
                                                 jnp.float32, -k, k); ki += 1
        params[f"b_ih_{l}"] = jax.random.uniform(keys[ki], (4 * HIDDEN,),
                                                 jnp.float32, -k, k); ki += 1
        params[f"b_hh_{l}"] = jax.random.uniform(keys[ki], (4 * HIDDEN,),
                                                 jnp.float32, -k, k); ki += 1
    # fc1: normal(0, 0.01) weight, zero bias (matches initialize_weights()).
    params["fc_w"] = 0.01 * jax.random.normal(keys[ki], (NUM_CLASSES, HIDDEN),
                                              jnp.float32); ki += 1
    params["fc_b"] = jnp.zeros((NUM_CLASSES,), jnp.float32)
    return params


def prepare_params(params):
    """One-time weight preprocessing (transposes / bias sums), hoisted off the per-call path."""
    prep = {
        "wih0": jnp.transpose(params["w_ih_0"]),                           # (D, 4H)
        "whh0": jnp.transpose(params["w_hh_0"]),                           # (H, 4H)
        "wih1": jnp.transpose(params["w_ih_1"]),                           # (H, 4H)
        "whh1": jnp.transpose(params["w_hh_1"]),                           # (H, 4H)
        "wih2": jnp.transpose(params["w_ih_2"]),                           # (H, 4H)
        "whh2": jnp.transpose(params["w_hh_2"]),                           # (H, 4H)
        "b0": (params["b_ih_0"] + params["b_hh_0"]).reshape(1, 4 * HIDDEN),
        "b1": (params["b_ih_1"] + params["b_hh_1"]).reshape(1, 4 * HIDDEN),
        "b2": (params["b_ih_2"] + params["b_hh_2"]).reshape(1, 4 * HIDDEN),
        "fcw": jnp.transpose(params["fc_w"]),                              # (H, C)
        "fcb": params["fc_b"].reshape(1, NUM_CLASSES),                     # (1, C)
    }
    return jax.tree_util.tree_map(lambda a: a.astype(jnp.float32), prep)


def lstm_single_direction_forward(input_data, h0, c0, prep):
    """input_data: (B, T, INPUT_SIZE), h0/c0: (L, B, H), prep from prepare_params()
    -> (B, NUM_CLASSES). Per-call path: one transpose + one pallas_call."""
    B, T, D = input_data.shape
    x_tm = jnp.transpose(input_data.astype(jnp.float32), (1, 0, 2))        # (T, B, D)

    args = [x_tm, h0.astype(jnp.float32), c0.astype(jnp.float32),
            prep["wih0"], prep["whh0"],
            prep["wih1"], prep["whh1"],
            prep["wih2"], prep["whh2"],
            prep["b0"], prep["b1"], prep["b2"],
            prep["fcw"], prep["fcb"]]

    vmem_spec = pl.BlockSpec(memory_space=pltpu.MemorySpace.VMEM)
    out = pl.pallas_call(
        lstm_fc_kernel,
        out_shape=jax.ShapeDtypeStruct((B, NUM_CLASSES), jnp.float32),
        in_specs=[vmem_spec] * len(args),
        out_specs=vmem_spec,
    )(*args)
    # TODO(synk): if B grows large, add a batch grid axis with
    # dimension_semantics=("parallel",) and a lane-dense padded output slab;
    # unnecessary (and counterproductive, ~0.35us/step) at B=2.
    return out


def reference_forward(input_data, h0, c0, params):
    """Pure-JAX reference with PyTorch LSTM semantics, for correctness check."""
    B, T, _ = input_data.shape
    hs = [h0[l] for l in range(NUM_LAYERS)]
    cs = [c0[l] for l in range(NUM_LAYERS)]
    for t in range(T):
        inp = input_data[:, t, :]
        for l in range(NUM_LAYERS):
            gates = (inp @ params[f"w_ih_{l}"].T + params[f"b_ih_{l}"]
                     + hs[l] @ params[f"w_hh_{l}"].T + params[f"b_hh_{l}"])
            i = jax.nn.sigmoid(gates[:, 0:HIDDEN])
            f = jax.nn.sigmoid(gates[:, HIDDEN:2 * HIDDEN])
            g = jnp.tanh(gates[:, 2 * HIDDEN:3 * HIDDEN])
            o = jax.nn.sigmoid(gates[:, 3 * HIDDEN:4 * HIDDEN])
            cs[l] = f * cs[l] + i * g
            hs[l] = o * jnp.tanh(cs[l])
            inp = hs[l]
    logits = hs[-1] @ params["fc_w"].T + params["fc_b"]
    return jnp.maximum(logits, 0.0)


if __name__ == "__main__":
    key = jax.random.PRNGKey(0)
    kp, kx, kh, kc = jax.random.split(key, 4)

    B, T = 2, 8
    params = init_params(kp)
    prep = prepare_params(params)                      # one-time weight prep (hoisted)
    forward = jax.jit(lstm_single_direction_forward)

    input_data = jax.random.normal(kx, (B, T, INPUT_SIZE), jnp.float32)
    h0 = jax.random.normal(kh, (NUM_LAYERS, B, HIDDEN), jnp.float32)
    c0 = jax.random.normal(kc, (NUM_LAYERS, B, HIDDEN), jnp.float32)

    out = forward(input_data, h0, c0, prep)
    out = jax.block_until_ready(out)

    ref = reference_forward(input_data, h0, c0, params)
    np.testing.assert_allclose(np.asarray(out), np.asarray(ref), rtol=1e-4, atol=1e-4)

    print("KERNEL_OK")
</pallas_src>

<mosaic_0001>
module attributes {stable_mosaic.version = 11 : i64} {
  func.func @lstm_fc_kernel(%arg0: memref<8x2x10xf32, #tpu.memory_space<vmem>>, %arg1: memref<3x2x15xf32, #tpu.memory_space<vmem>>, %arg2: memref<3x2x15xf32, #tpu.memory_space<vmem>>, %arg3: memref<10x60xf32, #tpu.memory_space<vmem>>, %arg4: memref<15x60xf32, #tpu.memory_space<vmem>>, %arg5: memref<15x60xf32, #tpu.memory_space<vmem>>, %arg6: memref<15x60xf32, #tpu.memory_space<vmem>>, %arg7: memref<15x60xf32, #tpu.memory_space<vmem>>, %arg8: memref<15x60xf32, #tpu.memory_space<vmem>>, %arg9: memref<1x60xf32, #tpu.memory_space<vmem>>, %arg10: memref<1x60xf32, #tpu.memory_space<vmem>>, %arg11: memref<1x60xf32, #tpu.memory_space<vmem>>, %arg12: memref<15x3xf32, #tpu.memory_space<vmem>>, %arg13: memref<1x3xf32, #tpu.memory_space<vmem>>, %arg14: memref<2x3xf32, #tpu.memory_space<vmem>>) attributes {dimension_semantics = [], scalar_prefetch = 0 : i64, scratch_operands = 0 : i64, tpu.core_type = #tpu.core_type<tc>} {
    %c0 = arith.constant 0 : index
    %c0_0 = arith.constant 0 : index
    %0 = vector.load %arg3[%c0, %c0_0] : memref<10x60xf32, #tpu.memory_space<vmem>>, vector<10x60xf32>
    %c0_1 = arith.constant 0 : index
    %c0_2 = arith.constant 0 : index
    %1 = vector.load %arg5[%c0_1, %c0_2] : memref<15x60xf32, #tpu.memory_space<vmem>>, vector<15x60xf32>
    %c0_3 = arith.constant 0 : index
    %c0_4 = arith.constant 0 : index
    %2 = vector.load %arg7[%c0_3, %c0_4] : memref<15x60xf32, #tpu.memory_space<vmem>>, vector<15x60xf32>
    %c0_5 = arith.constant 0 : index
    %c0_6 = arith.constant 0 : index
    %3 = vector.load %arg4[%c0_5, %c0_6] : memref<15x60xf32, #tpu.memory_space<vmem>>, vector<15x60xf32>
    %c0_7 = arith.constant 0 : index
    %c0_8 = arith.constant 0 : index
    %4 = vector.load %arg6[%c0_7, %c0_8] : memref<15x60xf32, #tpu.memory_space<vmem>>, vector<15x60xf32>
    %c0_9 = arith.constant 0 : index
    %c0_10 = arith.constant 0 : index
    %5 = vector.load %arg8[%c0_9, %c0_10] : memref<15x60xf32, #tpu.memory_space<vmem>>, vector<15x60xf32>
    %c0_11 = arith.constant 0 : index
    %c0_12 = arith.constant 0 : index
    %6 = vector.load %arg9[%c0_11, %c0_12] : memref<1x60xf32, #tpu.memory_space<vmem>>, vector<1x60xf32>
    %7 = vector.shape_cast %6 : vector<1x60xf32> to vector<1x60xf32>
    %8 = vector.broadcast %7 : vector<1x60xf32> to vector<2x60xf32>
    %c0_13 = arith.constant 0 : index
    %c0_14 = arith.constant 0 : index
    %9 = vector.load %arg10[%c0_13, %c0_14] : memref<1x60xf32, #tpu.memory_space<vmem>>, vector<1x60xf32>
    %10 = vector.shape_cast %9 : vector<1x60xf32> to vector<1x60xf32>
    %11 = vector.broadcast %10 : vector<1x60xf32> to vector<2x60xf32>
    %c0_15 = arith.constant 0 : index
    %c0_16 = arith.constant 0 : index
    %12 = vector.load %arg11[%c0_15, %c0_16] : memref<1x60xf32, #tpu.memory_space<vmem>>, vector<1x60xf32>
    %13 = vector.shape_cast %12 : vector<1x60xf32> to vector<1x60xf32>
    %14 = vector.broadcast %13 : vector<1x60xf32> to vector<2x60xf32>
    %15 = tpu.iota {dimensions = array<i32: 1>} : vector<2x60xi32>
    %c30_i32 = arith.constant 30 : i32
    %16 = vector.broadcast %c30_i32 : i32 to vector<2x60xi32>
    %17 = arith.cmpi sge, %15, %16 : vector<2x60xi32>
    %c45_i32 = arith.constant 45 : i32
    %18 = vector.broadcast %c45_i32 : i32 to vector<2x60xi32>
    %19 = arith.cmpi slt, %15, %18 : vector<2x60xi32>
    %20 = arith.andi %17, %19 : vector<2x60xi1>
    %c0_17 = arith.constant 0 : index
    %c0_18 = arith.constant 0 : index
    %c0_19 = arith.constant 0 : index
    %21 = vector.load %arg0[%c0_17, %c0_18, %c0_19] : memref<8x2x10xf32, #tpu.memory_space<vmem>>, vector<1x2x10xf32>
    %22 = vector.shape_cast %21 : vector<1x2x10xf32> to vector<2x10xf32>
    %cst = arith.constant dense<0.000000e+00> : vector<2x60xf32>
    %23 = tpu.matmul %22, %0, %cst {dimension_numbers = #tpu.dot_dimension_numbers<[1], [0], [0], [1], [0, 0, 1, 1], [], []>} : vector<2x10xf32>, vector<10x60xf32>, vector<2x60xf32> -> vector<2x60xf32>
    %24 = arith.addf %23, %8 : vector<2x60xf32>
    %c1 = arith.constant 1 : index
    %c0_20 = arith.constant 0 : index
    %c0_21 = arith.constant 0 : index
    %25 = vector.load %arg0[%c1, %c0_20, %c0_21] : memref<8x2x10xf32, #tpu.memory_space<vmem>>, vector<1x2x10xf32>
    %26 = vector.shape_cast %25 : vector<1x2x10xf32> to vector<2x10xf32>
    %cst_22 = arith.constant dense<0.000000e+00> : vector<2x60xf32>
    %27 = tpu.matmul %26, %0, %cst_22 {dimension_numbers = #tpu.dot_dimension_numbers<[1], [0], [0], [1], [0, 0, 1, 1], [], []>} : vector<2x10xf32>, vector<10x60xf32>, vector<2x60xf32> -> vector<2x60xf32>
    %28 = arith.addf %27, %8 : vector<2x60xf32>
    %c2 = arith.constant 2 : index
    %c0_23 = arith.constant 0 : index
    %c0_24 = arith.constant 0 : index
    %29 = vector.load %arg0[%c2, %c0_23, %c0_24] : memref<8x2x10xf32, #tpu.memory_space<vmem>>, vector<1x2x10xf32>
    %30 = vector.shape_cast %29 : vector<1x2x10xf32> to vector<2x10xf32>
    %cst_25 = arith.constant dense<0.000000e+00> : vector<2x60xf32>
    %31 = tpu.matmul %30, %0, %cst_25 {dimension_numbers = #tpu.dot_dimension_numbers<[1], [0], [0], [1], [0, 0, 1, 1], [], []>} : vector<2x10xf32>, vector<10x60xf32>, vector<2x60xf32> -> vector<2x60xf32>
    %32 = arith.addf %31, %8 : vector<2x60xf32>
    %c3 = arith.constant 3 : index
    %c0_26 = arith.constant 0 : index
    %c0_27 = arith.constant 0 : index
    %33 = vector.load %arg0[%c3, %c0_26, %c0_27] : memref<8x2x10xf32, #tpu.memory_space<vmem>>, vector<1x2x10xf32>
    %34 = vector.shape_cast %33 : vector<1x2x10xf32> to vector<2x10xf32>
    %cst_28 = arith.constant dense<0.000000e+00> : vector<2x60xf32>
    %35 = tpu.matmul %34, %0, %cst_28 {dimension_numbers = #tpu.dot_dimension_numbers<[1], [0], [0], [1], [0, 0, 1, 1], [], []>} : vector<2x10xf32>, vector<10x60xf32>, vector<2x60xf32> -> vector<2x60xf32>
    %36 = arith.addf %35, %8 : vector<2x60xf32>
    %c4 = arith.constant 4 : index
    %c0_29 = arith.constant 0 : index
    %c0_30 = arith.constant 0 : index
    %37 = vector.load %arg0[%c4, %c0_29, %c0_30] : memref<8x2x10xf32, #tpu.memory_space<vmem>>, vector<1x2x10xf32>
    %38 = vector.shape_cast %37 : vector<1x2x10xf32> to vector<2x10xf32>
    %cst_31 = arith.constant dense<0.000000e+00> : vector<2x60xf32>
    %39 = tpu.matmul %38, %0, %cst_31 {dimension_numbers = #tpu.dot_dimension_numbers<[1], [0], [0], [1], [0, 0, 1, 1], [], []>} : vector<2x10xf32>, vector<10x60xf32>, vector<2x60xf32> -> vector<2x60xf32>
    %40 = arith.addf %39, %8 : vector<2x60xf32>
    %c5 = arith.constant 5 : index
    %c0_32 = arith.constant 0 : index
    %c0_33 = arith.constant 0 : index
    %41 = vector.load %arg0[%c5, %c0_32, %c0_33] : memref<8x2x10xf32, #tpu.memory_space<vmem>>, vector<1x2x10xf32>
    %42 = vector.shape_cast %41 : vector<1x2x10xf32> to vector<2x10xf32>
    %cst_34 = arith.constant dense<0.000000e+00> : vector<2x60xf32>
    %43 = tpu.matmul %42, %0, %cst_34 {dimension_numbers = #tpu.dot_dimension_numbers<[1], [0], [0], [1], [0, 0, 1, 1], [], []>} : vector<2x10xf32>, vector<10x60xf32>, vector<2x60xf32> -> vector<2x60xf32>
    %44 = arith.addf %43, %8 : vector<2x60xf32>
    %c6 = arith.constant 6 : index
    %c0_35 = arith.constant 0 : index
    %c0_36 = arith.constant 0 : index
    %45 = vector.load %arg0[%c6, %c0_35, %c0_36] : memref<8x2x10xf32, #tpu.memory_space<vmem>>, vector<1x2x10xf32>
    %46 = vector.shape_cast %45 : vector<1x2x10xf32> to vector<2x10xf32>
    %cst_37 = arith.constant dense<0.000000e+00> : vector<2x60xf32>
    %47 = tpu.matmul %46, %0, %cst_37 {dimension_numbers = #tpu.dot_dimension_numbers<[1], [0], [0], [1], [0, 0, 1, 1], [], []>} : vector<2x10xf32>, vector<10x60xf32>, vector<2x60xf32> -> vector<2x60xf32>
    %48 = arith.addf %47, %8 : vector<2x60xf32>
    %c7 = arith.constant 7 : index
    %c0_38 = arith.constant 0 : index
    %c0_39 = arith.constant 0 : index
    %49 = vector.load %arg0[%c7, %c0_38, %c0_39] : memref<8x2x10xf32, #tpu.memory_space<vmem>>, vector<1x2x10xf32>
    %50 = vector.shape_cast %49 : vector<1x2x10xf32> to vector<2x10xf32>
    %cst_40 = arith.constant dense<0.000000e+00> : vector<2x60xf32>
    %51 = tpu.matmul %50, %0, %cst_40 {dimension_numbers = #tpu.dot_dimension_numbers<[1], [0], [0], [1], [0, 0, 1, 1], [], []>} : vector<2x10xf32>, vector<10x60xf32>, vector<2x60xf32> -> vector<2x60xf32>
    %52 = arith.addf %51, %8 : vector<2x60xf32>
    %c0_41 = arith.constant 0 : index
    %c0_42 = arith.constant 0 : index
    %c0_43 = arith.constant 0 : index
    %53 = vector.load %arg1[%c0_41, %c0_42, %c0_43] : memref<3x2x15xf32, #tpu.memory_space<vmem>>, vector<1x2x15xf32>
    %54 = vector.shape_cast %53 : vector<1x2x15xf32> to vector<2x15xf32>
    %c1_44 = arith.constant 1 : index
    %c0_45 = arith.constant 0 : index
    %c0_46 = arith.constant 0 : index
    %55 = vector.load %arg1[%c1_44, %c0_45, %c0_46] : memref<3x2x15xf32, #tpu.memory_space<vmem>>, vector<1x2x15xf32>
    %56 = vector.shape_cast %55 : vector<1x2x15xf32> to vector<2x15xf32>
    %c2_47 = arith.constant 2 : index
    %c0_48 = arith.constant 0 : index
    %c0_49 = arith.constant 0 : index
    %57 = vector.load %arg1[%c2_47, %c0_48, %c0_49] : memref<3x2x15xf32, #tpu.memory_space<vmem>>, vector<1x2x15xf32>
    %58 = vector.shape_cast %57 : vector<1x2x15xf32> to vector<2x15xf32>
    %c0_50 = arith.constant 0 : index
    %c0_51 = arith.constant 0 : index
    %c0_52 = arith.constant 0 : index
    %59 = vector.load %arg2[%c0_50, %c0_51, %c0_52] : memref<3x2x15xf32, #tpu.memory_space<vmem>>, vector<1x2x15xf32>
    %60 = vector.shape_cast %59 : vector<1x2x15xf32> to vector<2x15xf32>
    %c1_53 = arith.constant 1 : index
    %c0_54 = arith.constant 0 : index
    %c0_55 = arith.constant 0 : index
    %61 = vector.load %arg2[%c1_53, %c0_54, %c0_55] : memref<3x2x15xf32, #tpu.memory_space<vmem>>, vector<1x2x15xf32>
    %62 = vector.shape_cast %61 : vector<1x2x15xf32> to vector<2x15xf32>
    %c2_56 = arith.constant 2 : index
    %c0_57 = arith.constant 0 : index
    %c0_58 = arith.constant 0 : index
    %63 = vector.load %arg2[%c2_56, %c0_57, %c0_58] : memref<3x2x15xf32, #tpu.memory_space<vmem>>, vector<1x2x15xf32>
    %64 = vector.shape_cast %63 : vector<1x2x15xf32> to vector<2x15xf32>
    %cst_59 = arith.constant dense<0.000000e+00> : vector<2x60xf32>
    %65 = tpu.matmul %54, %3, %cst_59 {dimension_numbers = #tpu.dot_dimension_numbers<[1], [0], [0], [1], [0, 0, 1, 1], [], []>} : vector<2x15xf32>, vector<15x60xf32>, vector<2x60xf32> -> vector<2x60xf32>
    %cst_60 = arith.constant dense<0.000000e+00> : vector<2x60xf32>
    %66 = tpu.matmul %56, %4, %cst_60 {dimension_numbers = #tpu.dot_dimension_numbers<[1], [0], [0], [1], [0, 0, 1, 1], [], []>} : vector<2x15xf32>, vector<15x60xf32>, vector<2x60xf32> -> vector<2x60xf32>
    %cst_61 = arith.constant dense<0.000000e+00> : vector<2x60xf32>
    %67 = tpu.matmul %58, %5, %cst_61 {dimension_numbers = #tpu.dot_dimension_numbers<[1], [0], [0], [1], [0, 0, 1, 1], [], []>} : vector<2x15xf32>, vector<15x60xf32>, vector<2x60xf32> -> vector<2x60xf32>
    %68 = arith.addf %24, %65 : vector<2x60xf32>
    %cst_62 = arith.constant 5.000000e-01 : f32
    %69 = vector.broadcast %cst_62 : f32 to vector<2x60xf32>
    %70 = arith.mulf %69, %68 : vector<2x60xf32>
    %71 = arith.select %20, %68, %70 : vector<2x60xi1>, vector<2x60xf32>
    %72 = math.tanh %71 : vector<2x60xf32>
    %cst_63 = arith.constant 5.000000e-01 : f32
    %73 = vector.broadcast %cst_63 : f32 to vector<2x60xf32>
    %74 = arith.mulf %73, %72 : vector<2x60xf32>
    %cst_64 = arith.constant 5.000000e-01 : f32
    %75 = vector.broadcast %cst_64 : f32 to vector<2x60xf32>
    %76 = arith.addf %74, %75 : vector<2x60xf32>
    %77 = arith.select %20, %72, %76 : vector<2x60xi1>, vector<2x60xf32>
    %78 = vector.extract_strided_slice %77 {offsets = [0, 0], sizes = [2, 15], strides = [1, 1]} : vector<2x60xf32> to vector<2x15xf32>
    %79 = vector.extract_strided_slice %77 {offsets = [0, 15], sizes = [2, 15], strides = [1, 1]} : vector<2x60xf32> to vector<2x15xf32>
    %80 = vector.extract_strided_slice %77 {offsets = [0, 30], sizes = [2, 15], strides = [1, 1]} : vector<2x60xf32> to vector<2x15xf32>
    %81 = vector.extract_strided_slice %77 {offsets = [0, 45], sizes = [2, 15], strides = [1, 1]} : vector<2x60xf32> to vector<2x15xf32>
    %82 = arith.mulf %79, %60 : vector<2x15xf32>
    %83 = arith.mulf %78, %80 : vector<2x15xf32>
    %84 = arith.addf %82, %83 : vector<2x15xf32>
    %85 = math.tanh %84 : vector<2x15xf32>
    %86 = arith.mulf %81, %85 : vector<2x15xf32>
    %cst_65 = arith.constant dense<0.000000e+00> : vector<2x60xf32>
    %87 = tpu.matmul %86, %3, %cst_65 {dimension_numbers = #tpu.dot_dimension_numbers<[1], [0], [0], [1], [0, 0, 1, 1], [], []>} : vector<2x15xf32>, vector<15x60xf32>, vector<2x60xf32> -> vector<2x60xf32>
    %cst_66 = arith.constant dense<0.000000e+00> : vector<2x60xf32>
    %88 = tpu.matmul %86, %1, %cst_66 {dimension_numbers = #tpu.dot_dimension_numbers<[1], [0], [0], [1], [0, 0, 1, 1], [], []>} : vector<2x15xf32>, vector<15x60xf32>, vector<2x60xf32> -> vector<2x60xf32>
    %89 = arith.addf %88, %66 : vector<2x60xf32>
    %90 = arith.addf %89, %11 : vector<2x60xf32>
    %cst_67 = arith.constant 5.000000e-01 : f32
    %91 = vector.broadcast %cst_67 : f32 to vector<2x60xf32>
    %92 = arith.mulf %91, %90 : vector<2x60xf32>
    %93 = arith.select %20, %90, %92 : vector<2x60xi1>, vector<2x60xf32>
    %94 = math.tanh %93 : vector<2x60xf32>
    %cst_68 = arith.constant 5.000000e-01 : f32
    %95 = vector.broadcast %cst_68 : f32 to vector<2x60xf32>
    %96 = arith.mulf %95, %94 : vector<2x60xf32>
    %cst_69 = arith.constant 5.000000e-01 : f32
    %97 = vector.broadcast %cst_69 : f32 to vector<2x60xf32>
    %98 = arith.addf %96, %97 : vector<2x60xf32>
    %99 = arith.select %20, %94, %98 : vector<2x60xi1>, vector<2x60xf32>
    %100 = vector.extract_strided_slice %99 {offsets = [0, 0], sizes = [2, 15], strides = [1, 1]} : vector<2x60xf32> to vector<2x15xf32>
    %101 = vector.extract_strided_slice %99 {offsets = [0, 15], sizes = [2, 15], strides = [1, 1]} : vector<2x60xf32> to vector<2x15xf32>
    %102 = vector.extract_strided_slice %99 {offsets = [0, 30], sizes = [2, 15], strides = [1, 1]} : vector<2x60xf32> to vector<2x15xf32>
    %103 = vector.extract_strided_slice %99 {offsets = [0, 45], sizes = [2, 15], strides = [1, 1]} : vector<2x60xf32> to vector<2x15xf32>
    %104 = arith.mulf %101, %62 : vector<2x15xf32>
    %105 = arith.mulf %100, %102 : vector<2x15xf32>
    %106 = arith.addf %104, %105 : vector<2x15xf32>
    %107 = math.tanh %106 : vector<2x15xf32>
    %108 = arith.mulf %103, %107 : vector<2x15xf32>
    %cst_70 = arith.constant dense<0.000000e+00> : vector<2x60xf32>
    %109 = tpu.matmul %108, %4, %cst_70 {dimension_numbers = #tpu.dot_dimension_numbers<[1], [0], [0], [1], [0, 0, 1, 1], [], []>} : vector<2x15xf32>, vector<15x60xf32>, vector<2x60xf32> -> vector<2x60xf32>
    %cst_71 = arith.constant dense<0.000000e+00> : vector<2x60xf32>
    %110 = tpu.matmul %108, %2, %cst_71 {dimension_numbers = #tpu.dot_dimension_numbers<[1], [0], [0], [1], [0, 0, 1, 1], [], []>} : vector<2x15xf32>, vector<15x60xf32>, vector<2x60xf32> -> vector<2x60xf32>
    %111 = arith.addf %110, %67 : vector<2x60xf32>
    %112 = arith.addf %111, %14 : vector<2x60xf32>
    %cst_72 = arith.constant 5.000000e-01 : f32
    %113 = vector.broadcast %cst_72 : f32 to vector<2x60xf32>
    %114 = arith.mulf %113, %112 : vector<2x60xf32>
    %115 = arith.select %20, %112, %114 : vector<2x60xi1>, vector<2x60xf32>
    %116 = math.tanh %115 : vector<2x60xf32>
    %cst_73 = arith.constant 5.000000e-01 : f32
    %117 = vector.broadcast %cst_73 : f32 to vector<2x60xf32>
    %118 = arith.mulf %117, %116 : vector<2x60xf32>
    %cst_74 = arith.constant 5.000000e-01 : f32
    %119 = vector.broadcast %cst_74 : f32 to vector<2x60xf32>
    %120 = arith.addf %118, %119 : vector<2x60xf32>
    %121 = arith.select %20, %116, %120 : vector<2x60xi1>, vector<2x60xf32>
    %122 = vector.extract_strided_slice %121 {offsets = [0, 0], sizes = [2, 15], strides = [1, 1]} : vector<2x60xf32> to vector<2x15xf32>
    %123 = vector.extract_strided_slice %121 {offsets = [0, 15], sizes = [2, 15], strides = [1, 1]} : vector<2x60xf32> to vector<2x15xf32>
    %124 = vector.extract_strided_slice %121 {offsets = [0, 30], sizes = [2, 15], strides = [1, 1]} : vector<2x60xf32> to vector<2x15xf32>
    %125 = vector.extract_strided_slice %121 {offsets = [0, 45], sizes = [2, 15], strides = [1, 1]} : vector<2x60xf32> to vector<2x15xf32>
    %126 = arith.mulf %123, %64 : vector<2x15xf32>
    %127 = arith.mulf %122, %124 : vector<2x15xf32>
    %128 = arith.addf %126, %127 : vector<2x15xf32>
    %129 = math.tanh %128 : vector<2x15xf32>
    %130 = arith.mulf %125, %129 : vector<2x15xf32>
    %cst_75 = arith.constant dense<0.000000e+00> : vector<2x60xf32>
    %131 = tpu.matmul %130, %5, %cst_75 {dimension_numbers = #tpu.dot_dimension_numbers<[1], [0], [0], [1], [0, 0, 1, 1], [], []>} : vector<2x15xf32>, vector<15x60xf32>, vector<2x60xf32> -> vector<2x60xf32>
    %132 = arith.addf %28, %87 : vector<2x60xf32>
    %cst_76 = arith.constant 5.000000e-01 : f32
    %133 = vector.broadcast %cst_76 : f32 to vector<2x60xf32>
    %134 = arith.mulf %133, %132 : vector<2x60xf32>
    %135 = arith.select %20, %132, %134 : vector<2x60xi1>, vector<2x60xf32>
    %136 = math.tanh %135 : vector<2x60xf32>
    %cst_77 = arith.constant 5.000000e-01 : f32
    %137 = vector.broadcast %cst_77 : f32 to vector<2x60xf32>
    %138 = arith.mulf %137, %136 : vector<2x60xf32>
    %cst_78 = arith.constant 5.000000e-01 : f32
    %139 = vector.broadcast %cst_78 : f32 to vector<2x60xf32>
    %140 = arith.addf %138, %139 : vector<2x60xf32>
    %141 = arith.select %20, %136, %140 : vector<2x60xi1>, vector<2x60xf32>
    %142 = vector.extract_strided_slice %141 {offsets = [0, 0], sizes = [2, 15], strides = [1, 1]} : vector<2x60xf32> to vector<2x15xf32>
    %143 = vector.extract_strided_slice %141 {offsets = [0, 15], sizes = [2, 15], strides = [1, 1]} : vector<2x60xf32> to vector<2x15xf32>
    %144 = vector.extract_strided_slice %141 {offsets = [0, 30], sizes = [2, 15], strides = [1, 1]} : vector<2x60xf32> to vector<2x15xf32>
    %145 = vector.extract_strided_slice %141 {offsets = [0, 45], sizes = [2, 15], strides = [1, 1]} : vector<2x60xf32> to vector<2x15xf32>
    %146 = arith.mulf %143, %84 : vector<2x15xf32>
    %147 = arith.mulf %142, %144 : vector<2x15xf32>
    %148 = arith.addf %146, %147 : vector<2x15xf32>
    %149 = math.tanh %148 : vector<2x15xf32>
    %150 = arith.mulf %145, %149 : vector<2x15xf32>
    %cst_79 = arith.constant dense<0.000000e+00> : vector<2x60xf32>
    %151 = tpu.matmul %150, %3, %cst_79 {dimension_numbers = #tpu.dot_dimension_numbers<[1], [0], [0], [1], [0, 0, 1, 1], [], []>} : vector<2x15xf32>, vector<15x60xf32>, vector<2x60xf32> -> vector<2x60xf32>
    %cst_80 = arith.constant dense<0.000000e+00> : vector<2x60xf32>
    %152 = tpu.matmul %150, %1, %cst_80 {dimension_numbers = #tpu.dot_dimension_numbers<[1], [0], [0], [1], [0, 0, 1, 1], [], []>} : vector<2x15xf32>, vector<15x60xf32>, vector<2x60xf32> -> vector<2x60xf32>
    %153 = arith.addf %152, %109 : vector<2x60xf32>
    %154 = arith.addf %153, %11 : vector<2x60xf32>
    %cst_81 = arith.constant 5.000000e-01 : f32
    %155 = vector.broadcast %cst_81 : f32 to vector<2x60xf32>
    %156 = arith.mulf %155, %154 : vector<2x60xf32>
    %157 = arith.select %20, %154, %156 : vector<2x60xi1>, vector<2x60xf32>
    %158 = math.tanh %157 : vector<2x60xf32>
    %cst_82 = arith.constant 5.000000e-01 : f32
    %159 = vector.broadcast %cst_82 : f32 to vector<2x60xf32>
    %160 = arith.mulf %159, %158 : vector<2x60xf32>
    %cst_83 = arith.constant 5.000000e-01 : f32
    %161 = vector.broadcast %cst_83 : f32 to vector<2x60xf32>
    %162 = arith.addf %160, %161 : vector<2x60xf32>
    %163 = arith.select %20, %158, %162 : vector<2x60xi1>, vector<2x60xf32>
    %164 = vector.extract_strided_slice %163 {offsets = [0, 0], sizes = [2, 15], strides = [1, 1]} : vector<2x60xf32> to vector<2x15xf32>
    %165 = vector.extract_strided_slice %163 {offsets = [0, 15], sizes = [2, 15], strides = [1, 1]} : vector<2x60xf32> to vector<2x15xf32>
    %166 = vector.extract_strided_slice %163 {offsets = [0, 30], sizes = [2, 15], strides = [1, 1]} : vector<2x60xf32> to vector<2x15xf32>
    %167 = vector.extract_strided_slice %163 {offsets = [0, 45], sizes = [2, 15], strides = [1, 1]} : vector<2x60xf32> to vector<2x15xf32>
    %168 = arith.mulf %165, %106 : vector<2x15xf32>
    %169 = arith.mulf %164, %166 : vector<2x15xf32>
    %170 = arith.addf %168, %169 : vector<2x15xf32>
    %171 = math.tanh %170 : vector<2x15xf32>
    %172 = arith.mulf %167, %171 : vector<2x15xf32>
    %cst_84 = arith.constant dense<0.000000e+00> : vector<2x60xf32>
    %173 = tpu.matmul %172, %4, %cst_84 {dimension_numbers = #tpu.dot_dimension_numbers<[1], [0], [0], [1], [0, 0, 1, 1], [], []>} : vector<2x15xf32>, vector<15x60xf32>, vector<2x60xf32> -> vector<2x60xf32>
    %cst_85 = arith.constant dense<0.000000e+00> : vector<2x60xf32>
    %174 = tpu.matmul %172, %2, %cst_85 {dimension_numbers = #tpu.dot_dimension_numbers<[1], [0], [0], [1], [0, 0, 1, 1], [], []>} : vector<2x15xf32>, vector<15x60xf32>, vector<2x60xf32> -> vector<2x60xf32>
    %175 = arith.addf %174, %131 : vector<2x60xf32>
    %176 = arith.addf %175, %14 : vector<2x60xf32>
    %cst_86 = arith.constant 5.000000e-01 : f32
    %177 = vector.broadcast %cst_86 : f32 to vector<2x60xf32>
    %178 = arith.mulf %177, %176 : vector<2x60xf32>
    %179 = arith.select %20, %176, %178 : vector<2x60xi1>, vector<2x60xf32>
    %180 = math.tanh %179 : vector<2x60xf32>
    %cst_87 = arith.constant 5.000000e-01 : f32
    %181 = vector.broadcast %cst_87 : f32 to vector<2x60xf32>
    %182 = arith.mulf %181, %180 : vector<2x60xf32>
    %cst_88 = arith.constant 5.000000e-01 : f32
    %183 = vector.broadcast %cst_88 : f32 to vector<2x60xf32>
    %184 = arith.addf %182, %183 : vector<2x60xf32>
    %185 = arith.select %20, %180, %184 : vector<2x60xi1>, vector<2x60xf32>
    %186 = vector.extract_strided_slice %185 {offsets = [0, 0], sizes = [2, 15], strides = [1, 1]} : vector<2x60xf32> to vector<2x15xf32>
    %187 = vector.extract_strided_slice %185 {offsets = [0, 15], sizes = [2, 15], strides = [1, 1]} : vector<2x60xf32> to vector<2x15xf32>
    %188 = vector.extract_strided_slice %185 {offsets = [0, 30], sizes = [2, 15], strides = [1, 1]} : vector<2x60xf32> to vector<2x15xf32>
    %189 = vector.extract_strided_slice %185 {offsets = [0, 45], sizes = [2, 15], strides = [1, 1]} : vector<2x60xf32> to vector<2x15xf32>
    %190 = arith.mulf %187, %128 : vector<2x15xf32>
    %191 = arith.mulf %186, %188 : vector<2x15xf32>
    %192 = arith.addf %190, %191 : vector<2x15xf32>
    %193 = math.tanh %192 : vector<2x15xf32>
    %194 = arith.mulf %189, %193 : vector<2x15xf32>
    %cst_89 = arith.constant dense<0.000000e+00> : vector<2x60xf32>
    %195 = tpu.matmul %194, %5, %cst_89 {dimension_numbers = #tpu.dot_dimension_numbers<[1], [0], [0], [1], [0, 0, 1, 1], [], []>} : vector<2x15xf32>, vector<15x60xf32>, vector<2x60xf32> -> vector<2x60xf32>
    %196 = arith.addf %32, %151 : vector<2x60xf32>
    %cst_90 = arith.constant 5.000000e-01 : f32
    %197 = vector.broadcast %cst_90 : f32 to vector<2x60xf32>
    %198 = arith.mulf %197, %196 : vector<2x60xf32>
    %199 = arith.select %20, %196, %198 : vector<2x60xi1>, vector<2x60xf32>
    %200 = math.tanh %199 : vector<2x60xf32>
    %cst_91 = arith.constant 5.000000e-01 : f32
    %201 = vector.broadcast %cst_91 : f32 to vector<2x60xf32>
    %202 = arith.mulf %201, %200 : vector<2x60xf32>
    %cst_92 = arith.constant 5.000000e-01 : f32
    %203 = vector.broadcast %cst_92 : f32 to vector<2x60xf32>
    %204 = arith.addf %202, %203 : vector<2x60xf32>
    %205 = arith.select %20, %200, %204 : vector<2x60xi1>, vector<2x60xf32>
    %206 = vector.extract_strided_slice %205 {offsets = [0, 0], sizes = [2, 15], strides = [1, 1]} : vector<2x60xf32> to vector<2x15xf32>
    %207 = vector.extract_strided_slice %205 {offsets = [0, 15], sizes = [2, 15], strides = [1, 1]} : vector<2x60xf32> to vector<2x15xf32>
    %208 = vector.extract_strided_slice %205 {offsets = [0, 30], sizes = [2, 15], strides = [1, 1]} : vector<2x60xf32> to vector<2x15xf32>
    %209 = vector.extract_strided_slice %205 {offsets = [0, 45], sizes = [2, 15], strides = [1, 1]} : vector<2x60xf32> to vector<2x15xf32>
    %210 = arith.mulf %207, %148 : vector<2x15xf32>
    %211 = arith.mulf %206, %208 : vector<2x15xf32>
    %212 = arith.addf %210, %211 : vector<2x15xf32>
    %213 = math.tanh %212 : vector<2x15xf32>
    %214 = arith.mulf %209, %213 : vector<2x15xf32>
    %cst_93 = arith.constant dense<0.000000e+00> : vector<2x60xf32>
    %215 = tpu.matmul %214, %3, %cst_93 {dimension_numbers = #tpu.dot_dimension_numbers<[1], [0], [0], [1], [0, 0, 1, 1], [], []>} : vector<2x15xf32>, vector<15x60xf32>, vector<2x60xf32> -> vector<2x60xf32>
    %cst_94 = arith.constant dense<0.000000e+00> : vector<2x60xf32>
    %216 = tpu.matmul %214, %1, %cst_94 {dimension_numbers = #tpu.dot_dimension_numbers<[1], [0], [0], [1], [0, 0, 1, 1], [], []>} : vector<2x15xf32>, vector<15x60xf32>, vector<2x60xf32> -> vector<2x60xf32>
    %217 = arith.addf %216, %173 : vector<2x60xf32>
    %218 = arith.addf %217, %11 : vector<2x60xf32>
    %cst_95 = arith.constant 5.000000e-01 : f32
    %219 = vector.broadcast %cst_95 : f32 to vector<2x60xf32>
    %220 = arith.mulf %219, %218 : vector<2x60xf32>
    %221 = arith.select %20, %218, %220 : vector<2x60xi1>, vector<2x60xf32>
    %222 = math.tanh %221 : vector<2x60xf32>
    %cst_96 = arith.constant 5.000000e-01 : f32
    %223 = vector.broadcast %cst_96 : f32 to vector<2x60xf32>
    %224 = arith.mulf %223, %222 : vector<2x60xf32>
    %cst_97 = arith.constant 5.000000e-01 : f32
    %225 = vector.broadcast %cst_97 : f32 to vector<2x60xf32>
    %226 = arith.addf %224, %225 : vector<2x60xf32>
    %227 = arith.select %20, %222, %226 : vector<2x60xi1>, vector<2x60xf32>
    %228 = vector.extract_strided_slice %227 {offsets = [0, 0], sizes = [2, 15], strides = [1, 1]} : vector<2x60xf32> to vector<2x15xf32>
    %229 = vector.extract_strided_slice %227 {offsets = [0, 15], sizes = [2, 15], strides = [1, 1]} : vector<2x60xf32> to vector<2x15xf32>
    %230 = vector.extract_strided_slice %227 {offsets = [0, 30], sizes = [2, 15], strides = [1, 1]} : vector<2x60xf32> to vector<2x15xf32>
    %231 = vector.extract_strided_slice %227 {offsets = [0, 45], sizes = [2, 15], strides = [1, 1]} : vector<2x60xf32> to vector<2x15xf32>
    %232 = arith.mulf %229, %170 : vector<2x15xf32>
    %233 = arith.mulf %228, %230 : vector<2x15xf32>
    %234 = arith.addf %232, %233 : vector<2x15xf32>
    %235 = math.tanh %234 : vector<2x15xf32>
    %236 = arith.mulf %231, %235 : vector<2x15xf32>
    %cst_98 = arith.constant dense<0.000000e+00> : vector<2x60xf32>
    %237 = tpu.matmul %236, %4, %cst_98 {dimension_numbers = #tpu.dot_dimension_numbers<[1], [0], [0], [1], [0, 0, 1, 1], [], []>} : vector<2x15xf32>, vector<15x60xf32>, vector<2x60xf32> -> vector<2x60xf32>
    %cst_99 = arith.constant dense<0.000000e+00> : vector<2x60xf32>
    %238 = tpu.matmul %236, %2, %cst_99 {dimension_numbers = #tpu.dot_dimension_numbers<[1], [0], [0], [1], [0, 0, 1, 1], [], []>} : vector<2x15xf32>, vector<15x60xf32>, vector<2x60xf32> -> vector<2x60xf32>
    %239 = arith.addf %238, %195 : vector<2x60xf32>
    %240 = arith.addf %239, %14 : vector<2x60xf32>
    %cst_100 = arith.constant 5.000000e-01 : f32
    %241 = vector.broadcast %cst_100 : f32 to vector<2x60xf32>
    %242 = arith.mulf %241, %240 : vector<2x60xf32>
    %243 = arith.select %20, %240, %242 : vector<2x60xi1>, vector<2x60xf32>
    %244 = math.tanh %243 : vector<2x60xf32>
    %cst_101 = arith.constant 5.000000e-01 : f32
    %245 = vector.broadcast %cst_101 : f32 to vector<2x60xf32>
    %246 = arith.mulf %245, %244 : vector<2x60xf32>
    %cst_102 = arith.constant 5.000000e-01 : f32
    %247 = vector.broadcast %cst_102 : f32 to vector<2x60xf32>
    %248 = arith.addf %246, %247 : vector<2x60xf32>
    %249 = arith.select %20, %244, %248 : vector<2x60xi1>, vector<2x60xf32>
    %250 = vector.extract_strided_slice %249 {offsets = [0, 0], sizes = [2, 15], strides = [1, 1]} : vector<2x60xf32> to vector<2x15xf32>
    %251 = vector.extract_strided_slice %249 {offsets = [0, 15], sizes = [2, 15], strides = [1, 1]} : vector<2x60xf32> to vector<2x15xf32>
    %252 = vector.extract_strided_slice %249 {offsets = [0, 30], sizes = [2, 15], strides = [1, 1]} : vector<2x60xf32> to vector<2x15xf32>
    %253 = vector.extract_strided_slice %249 {offsets = [0, 45], sizes = [2, 15], strides = [1, 1]} : vector<2x60xf32> to vector<2x15xf32>
    %254 = arith.mulf %251, %192 : vector<2x15xf32>
    %255 = arith.mulf %250, %252 : vector<2x15xf32>
    %256 = arith.addf %254, %255 : vector<2x15xf32>
    %257 = math.tanh %256 : vector<2x15xf32>
    %258 = arith.mulf %253, %257 : vector<2x15xf32>
    %cst_103 = arith.constant dense<0.000000e+00> : vector<2x60xf32>
    %259 = tpu.matmul %258, %5, %cst_103 {dimension_numbers = #tpu.dot_dimension_numbers<[1], [0], [0], [1], [0, 0, 1, 1], [], []>} : vector<2x15xf32>, vector<15x60xf32>, vector<2x60xf32> -> vector<2x60xf32>
    %260 = arith.addf %36, %215 : vector<2x60xf32>
    %cst_104 = arith.constant 5.000000e-01 : f32
    %261 = vector.broadcast %cst_104 : f32 to vector<2x60xf32>
    %262 = arith.mulf %261, %260 : vector<2x60xf32>
    %263 = arith.select %20, %260, %262 : vector<2x60xi1>, vector<2x60xf32>
    %264 = math.tanh %263 : vector<2x60xf32>
    %cst_105 = arith.constant 5.000000e-01 : f32
    %265 = vector.broadcast %cst_105 : f32 to vector<2x60xf32>
    %266 = arith.mulf %265, %264 : vector<2x60xf32>
    %cst_106 = arith.constant 5.000000e-01 : f32
    %267 = vector.broadcast %cst_106 : f32 to vector<2x60xf32>
    %268 = arith.addf %266, %267 : vector<2x60xf32>
    %269 = arith.select %20, %264, %268 : vector<2x60xi1>, vector<2x60xf32>
    %270 = vector.extract_strided_slice %269 {offsets = [0, 0], sizes = [2, 15], strides = [1, 1]} : vector<2x60xf32> to vector<2x15xf32>
    %271 = vector.extract_strided_slice %269 {offsets = [0, 15], sizes = [2, 15], strides = [1, 1]} : vector<2x60xf32> to vector<2x15xf32>
    %272 = vector.extract_strided_slice %269 {offsets = [0, 30], sizes = [2, 15], strides = [1, 1]} : vector<2x60xf32> to vector<2x15xf32>
    %273 = vector.extract_strided_slice %269 {offsets = [0, 45], sizes = [2, 15], strides = [1, 1]} : vector<2x60xf32> to vector<2x15xf32>
    %274 = arith.mulf %271, %212 : vector<2x15xf32>
    %275 = arith.mulf %270, %272 : vector<2x15xf32>
    %276 = arith.addf %274, %275 : vector<2x15xf32>
    %277 = math.tanh %276 : vector<2x15xf32>
    %278 = arith.mulf %273, %277 : vector<2x15xf32>
    %cst_107 = arith.constant dense<0.000000e+00> : vector<2x60xf32>
    %279 = tpu.matmul %278, %3, %cst_107 {dimension_numbers = #tpu.dot_dimension_numbers<[1], [0], [0], [1], [0, 0, 1, 1], [], []>} : vector<2x15xf32>, vector<15x60xf32>, vector<2x60xf32> -> vector<2x60xf32>
    %cst_108 = arith.constant dense<0.000000e+00> : vector<2x60xf32>
    %280 = tpu.matmul %278, %1, %cst_108 {dimension_numbers = #tpu.dot_dimension_numbers<[1], [0], [0], [1], [0, 0, 1, 1], [], []>} : vector<2x15xf32>, vector<15x60xf32>, vector<2x60xf32> -> vector<2x60xf32>
    %281 = arith.addf %280, %237 : vector<2x60xf32>
    %282 = arith.addf %281, %11 : vector<2x60xf32>
    %cst_109 = arith.constant 5.000000e-01 : f32
    %283 = vector.broadcast %cst_109 : f32 to vector<2x60xf32>
    %284 = arith.mulf %283, %282 : vector<2x60xf32>
    %285 = arith.select %20, %282, %284 : vector<2x60xi1>, vector<2x60xf32>
    %286 = math.tanh %285 : vector<2x60xf32>
    %cst_110 = arith.constant 5.000000e-01 : f32
    %287 = vector.broadcast %cst_110 : f32 to vector<2x60xf32>
    %288 = arith.mulf %287, %286 : vector<2x60xf32>
    %cst_111 = arith.constant 5.000000e-01 : f32
    %289 = vector.broadcast %cst_111 : f32 to vector<2x60xf32>
    %290 = arith.addf %288, %289 : vector<2x60xf32>
    %291 = arith.select %20, %286, %290 : vector<2x60xi1>, vector<2x60xf32>
    %292 = vector.extract_strided_slice %291 {offsets = [0, 0], sizes = [2, 15], strides = [1, 1]} : vector<2x60xf32> to vector<2x15xf32>
    %293 = vector.extract_strided_slice %291 {offsets = [0, 15], sizes = [2, 15], strides = [1, 1]} : vector<2x60xf32> to vector<2x15xf32>
    %294 = vector.extract_strided_slice %291 {offsets = [0, 30], sizes = [2, 15], strides = [1, 1]} : vector<2x60xf32> to vector<2x15xf32>
    %295 = vector.extract_strided_slice %291 {offsets = [0, 45], sizes = [2, 15], strides = [1, 1]} : vector<2x60xf32> to vector<2x15xf32>
    %296 = arith.mulf %293, %234 : vector<2x15xf32>
    %297 = arith.mulf %292, %294 : vector<2x15xf32>
    %298 = arith.addf %296, %297 : vector<2x15xf32>
    %299 = math.tanh %298 : vector<2x15xf32>
    %300 = arith.mulf %295, %299 : vector<2x15xf32>
    %cst_112 = arith.constant dense<0.000000e+00> : vector<2x60xf32>
    %301 = tpu.matmul %300, %4, %cst_112 {dimension_numbers = #tpu.dot_dimension_numbers<[1], [0], [0], [1], [0, 0, 1, 1], [], []>} : vector<2x15xf32>, vector<15x60xf32>, vector<2x60xf32> -> vector<2x60xf32>
    %cst_113 = arith.constant dense<0.000000e+00> : vector<2x60xf32>
    %302 = tpu.matmul %300, %2, %cst_113 {dimension_numbers = #tpu.dot_dimension_numbers<[1], [0], [0], [1], [0, 0, 1, 1], [], []>} : vector<2x15xf32>, vector<15x60xf32>, vector<2x60xf32> -> vector<2x60xf32>
    %303 = arith.addf %302, %259 : vector<2x60xf32>
    %304 = arith.addf %303, %14 : vector<2x60xf32>
    %cst_114 = arith.constant 5.000000e-01 : f32
    %305 = vector.broadcast %cst_114 : f32 to vector<2x60xf32>
    %306 = arith.mulf %305, %304 : vector<2x60xf32>
    %307 = arith.select %20, %304, %306 : vector<2x60xi1>, vector<2x60xf32>
    %308 = math.tanh %307 : vector<2x60xf32>
    %cst_115 = arith.constant 5.000000e-01 : f32
    %309 = vector.broadcast %cst_115 : f32 to vector<2x60xf32>
    %310 = arith.mulf %309, %308 : vector<2x60xf32>
    %cst_116 = arith.constant 5.000000e-01 : f32
    %311 = vector.broadcast %cst_116 : f32 to vector<2x60xf32>
    %312 = arith.addf %310, %311 : vector<2x60xf32>
    %313 = arith.select %20, %308, %312 : vector<2x60xi1>, vector<2x60xf32>
    %314 = vector.extract_strided_slice %313 {offsets = [0, 0], sizes = [2, 15], strides = [1, 1]} : vector<2x60xf32> to vector<2x15xf32>
    %315 = vector.extract_strided_slice %313 {offsets = [0, 15], sizes = [2, 15], strides = [1, 1]} : vector<2x60xf32> to vector<2x15xf32>
    %316 = vector.extract_strided_slice %313 {offsets = [0, 30], sizes = [2, 15], strides = [1, 1]} : vector<2x60xf32> to vector<2x15xf32>
    %317 = vector.extract_strided_slice %313 {offsets = [0, 45], sizes = [2, 15], strides = [1, 1]} : vector<2x60xf32> to vector<2x15xf32>
    %318 = arith.mulf %315, %256 : vector<2x15xf32>
    %319 = arith.mulf %314, %316 : vector<2x15xf32>
    %320 = arith.addf %318, %319 : vector<2x15xf32>
    %321 = math.tanh %320 : vector<2x15xf32>
    %322 = arith.mulf %317, %321 : vector<2x15xf32>
    %cst_117 = arith.constant dense<0.000000e+00> : vector<2x60xf32>
    %323 = tpu.matmul %322, %5, %cst_117 {dimension_numbers = #tpu.dot_dimension_numbers<[1], [0], [0], [1], [0, 0, 1, 1], [], []>} : vector<2x15xf32>, vector<15x60xf32>, vector<2x60xf32> -> vector<2x60xf32>
    %324 = arith.addf %40, %279 : vector<2x60xf32>
    %cst_118 = arith.constant 5.000000e-01 : f32
    %325 = vector.broadcast %cst_118 : f32 to vector<2x60xf32>
    %326 = arith.mulf %325, %324 : vector<2x60xf32>
    %327 = arith.select %20, %324, %326 : vector<2x60xi1>, vector<2x60xf32>
    %328 = math.tanh %327 : vector<2x60xf32>
    %cst_119 = arith.constant 5.000000e-01 : f32
    %329 = vector.broadcast %cst_119 : f32 to vector<2x60xf32>
    %330 = arith.mulf %329, %328 : vector<2x60xf32>
    %cst_120 = arith.constant 5.000000e-01 : f32
    %331 = vector.broadcast %cst_120 : f32 to vector<2x60xf32>
    %332 = arith.addf %330, %331 : vector<2x60xf32>
    %333 = arith.select %20, %328, %332 : vector<2x60xi1>, vector<2x60xf32>
    %334 = vector.extract_strided_slice %333 {offsets = [0, 0], sizes = [2, 15], strides = [1, 1]} : vector<2x60xf32> to vector<2x15xf32>
    %335 = vector.extract_strided_slice %333 {offsets = [0, 15], sizes = [2, 15], strides = [1, 1]} : vector<2x60xf32> to vector<2x15xf32>
    %336 = vector.extract_strided_slice %333 {offsets = [0, 30], sizes = [2, 15], strides = [1, 1]} : vector<2x60xf32> to vector<2x15xf32>
    %337 = vector.extract_strided_slice %333 {offsets = [0, 45], sizes = [2, 15], strides = [1, 1]} : vector<2x60xf32> to vector<2x15xf32>
    %338 = arith.mulf %335, %276 : vector<2x15xf32>
    %339 = arith.mulf %334, %336 : vector<2x15xf32>
    %340 = arith.addf %338, %339 : vector<2x15xf32>
    %341 = math.tanh %340 : vector<2x15xf32>
    %342 = arith.mulf %337, %341 : vector<2x15xf32>
    %cst_121 = arith.constant dense<0.000000e+00> : vector<2x60xf32>
    %343 = tpu.matmul %342, %3, %cst_121 {dimension_numbers = #tpu.dot_dimension_numbers<[1], [0], [0], [1], [0, 0, 1, 1], [], []>} : vector<2x15xf32>, vector<15x60xf32>, vector<2x60xf32> -> vector<2x60xf32>
    %cst_122 = arith.constant dense<0.000000e+00> : vector<2x60xf32>
    %344 = tpu.matmul %342, %1, %cst_122 {dimension_numbers = #tpu.dot_dimension_numbers<[1], [0], [0], [1], [0, 0, 1, 1], [], []>} : vector<2x15xf32>, vector<15x60xf32>, vector<2x60xf32> -> vector<2x60xf32>
    %345 = arith.addf %344, %301 : vector<2x60xf32>
    %346 = arith.addf %345, %11 : vector<2x60xf32>
    %cst_123 = arith.constant 5.000000e-01 : f32
    %347 = vector.broadcast %cst_123 : f32 to vector<2x60xf32>
    %348 = arith.mulf %347, %346 : vector<2x60xf32>
    %349 = arith.select %20, %346, %348 : vector<2x60xi1>, vector<2x60xf32>
    %350 = math.tanh %349 : vector<2x60xf32>
    %cst_124 = arith.constant 5.000000e-01 : f32
    %351 = vector.broadcast %cst_124 : f32 to vector<2x60xf32>
    %352 = arith.mulf %351, %350 : vector<2x60xf32>
    %cst_125 = arith.constant 5.000000e-01 : f32
    %353 = vector.broadcast %cst_125 : f32 to vector<2x60xf32>
    %354 = arith.addf %352, %353 : vector<2x60xf32>
    %355 = arith.select %20, %350, %354 : vector<2x60xi1>, vector<2x60xf32>
    %356 = vector.extract_strided_slice %355 {offsets = [0, 0], sizes = [2, 15], strides = [1, 1]} : vector<2x60xf32> to vector<2x15xf32>
    %357 = vector.extract_strided_slice %355 {offsets = [0, 15], sizes = [2, 15], strides = [1, 1]} : vector<2x60xf32> to vector<2x15xf32>
    %358 = vector.extract_strided_slice %355 {offsets = [0, 30], sizes = [2, 15], strides = [1, 1]} : vector<2x60xf32> to vector<2x15xf32>
    %359 = vector.extract_strided_slice %355 {offsets = [0, 45], sizes = [2, 15], strides = [1, 1]} : vector<2x60xf32> to vector<2x15xf32>
    %360 = arith.mulf %357, %298 : vector<2x15xf32>
    %361 = arith.mulf %356, %358 : vector<2x15xf32>
    %362 = arith.addf %360, %361 : vector<2x15xf32>
    %363 = math.tanh %362 : vector<2x15xf32>
    %364 = arith.mulf %359, %363 : vector<2x15xf32>
    %cst_126 = arith.constant dense<0.000000e+00> : vector<2x60xf32>
    %365 = tpu.matmul %364, %4, %cst_126 {dimension_numbers = #tpu.dot_dimension_numbers<[1], [0], [0], [1], [0, 0, 1, 1], [], []>} : vector<2x15xf32>, vector<15x60xf32>, vector<2x60xf32> -> vector<2x60xf32>
    %cst_127 = arith.constant dense<0.000000e+00> : vector<2x60xf32>
    %366 = tpu.matmul %364, %2, %cst_127 {dimension_numbers = #tpu.dot_dimension_numbers<[1], [0], [0], [1], [0, 0, 1, 1], [], []>} : vector<2x15xf32>, vector<15x60xf32>, vector<2x60xf32> -> vector<2x60xf32>
    %367 = arith.addf %366, %323 : vector<2x60xf32>
    %368 = arith.addf %367, %14 : vector<2x60xf32>
    %cst_128 = arith.constant 5.000000e-01 : f32
    %369 = vector.broadcast %cst_128 : f32 to vector<2x60xf32>
    %370 = arith.mulf %369, %368 : vector<2x60xf32>
    %371 = arith.select %20, %368, %370 : vector<2x60xi1>, vector<2x60xf32>
    %372 = math.tanh %371 : vector<2x60xf32>
    %cst_129 = arith.constant 5.000000e-01 : f32
    %373 = vector.broadcast %cst_129 : f32 to vector<2x60xf32>
    %374 = arith.mulf %373, %372 : vector<2x60xf32>
    %cst_130 = arith.constant 5.000000e-01 : f32
    %375 = vector.broadcast %cst_130 : f32 to vector<2x60xf32>
    %376 = arith.addf %374, %375 : vector<2x60xf32>
    %377 = arith.select %20, %372, %376 : vector<2x60xi1>, vector<2x60xf32>
    %378 = vector.extract_strided_slice %377 {offsets = [0, 0], sizes = [2, 15], strides = [1, 1]} : vector<2x60xf32> to vector<2x15xf32>
    %379 = vector.extract_strided_slice %377 {offsets = [0, 15], sizes = [2, 15], strides = [1, 1]} : vector<2x60xf32> to vector<2x15xf32>
    %380 = vector.extract_strided_slice %377 {offsets = [0, 30], sizes = [2, 15], strides = [1, 1]} : vector<2x60xf32> to vector<2x15xf32>
    %381 = vector.extract_strided_slice %377 {offsets = [0, 45], sizes = [2, 15], strides = [1, 1]} : vector<2x60xf32> to vector<2x15xf32>
    %382 = arith.mulf %379, %320 : vector<2x15xf32>
    %383 = arith.mulf %378, %380 : vector<2x15xf32>
    %384 = arith.addf %382, %383 : vector<2x15xf32>
    %385 = math.tanh %384 : vector<2x15xf32>
    %386 = arith.mulf %381, %385 : vector<2x15xf32>
    %cst_131 = arith.constant dense<0.000000e+00> : vector<2x60xf32>
    %387 = tpu.matmul %386, %5, %cst_131 {dimension_numbers = #tpu.dot_dimension_numbers<[1], [0], [0], [1], [0, 0, 1, 1], [], []>} : vector<2x15xf32>, vector<15x60xf32>, vector<2x60xf32> -> vector<2x60xf32>
    %388 = arith.addf %44, %343 : vector<2x60xf32>
    %cst_132 = arith.constant 5.000000e-01 : f32
    %389 = vector.broadcast %cst_132 : f32 to vector<2x60xf32>
    %390 = arith.mulf %389, %388 : vector<2x60xf32>
    %391 = arith.select %20, %388, %390 : vector<2x60xi1>, vector<2x60xf32>
    %392 = math.tanh %391 : vector<2x60xf32>
    %cst_133 = arith.constant 5.000000e-01 : f32
    %393 = vector.broadcast %cst_133 : f32 to vector<2x60xf32>
    %394 = arith.mulf %393, %392 : vector<2x60xf32>
    %cst_134 = arith.constant 5.000000e-01 : f32
    %395 = vector.broadcast %cst_134 : f32 to vector<2x60xf32>
    %396 = arith.addf %394, %395 : vector<2x60xf32>
    %397 = arith.select %20, %392, %396 : vector<2x60xi1>, vector<2x60xf32>
    %398 = vector.extract_strided_slice %397 {offsets = [0, 0], sizes = [2, 15], strides = [1, 1]} : vector<2x60xf32> to vector<2x15xf32>
    %399 = vector.extract_strided_slice %397 {offsets = [0, 15], sizes = [2, 15], strides = [1, 1]} : vector<2x60xf32> to vector<2x15xf32>
    %400 = vector.extract_strided_slice %397 {offsets = [0, 30], sizes = [2, 15], strides = [1, 1]} : vector<2x60xf32> to vector<2x15xf32>
    %401 = vector.extract_strided_slice %397 {offsets = [0, 45], sizes = [2, 15], strides = [1, 1]} : vector<2x60xf32> to vector<2x15xf32>
    %402 = arith.mulf %399, %340 : vector<2x15xf32>
    %403 = arith.mulf %398, %400 : vector<2x15xf32>
    %404 = arith.addf %402, %403 : vector<2x15xf32>
    %405 = math.tanh %404 : vector<2x15xf32>
    %406 = arith.mulf %401, %405 : vector<2x15xf32>
    %cst_135 = arith.constant dense<0.000000e+00> : vector<2x60xf32>
    %407 = tpu.matmul %406, %3, %cst_135 {dimension_numbers = #tpu.dot_dimension_numbers<[1], [0], [0], [1], [0, 0, 1, 1], [], []>} : vector<2x15xf32>, vector<15x60xf32>, vector<2x60xf32> -> vector<2x60xf32>
    %cst_136 = arith.constant dense<0.000000e+00> : vector<2x60xf32>
    %408 = tpu.matmul %406, %1, %cst_136 {dimension_numbers = #tpu.dot_dimension_numbers<[1], [0], [0], [1], [0, 0, 1, 1], [], []>} : vector<2x15xf32>, vector<15x60xf32>, vector<2x60xf32> -> vector<2x60xf32>
    %409 = arith.addf %408, %365 : vector<2x60xf32>
    %410 = arith.addf %409, %11 : vector<2x60xf32>
    %cst_137 = arith.constant 5.000000e-01 : f32
    %411 = vector.broadcast %cst_137 : f32 to vector<2x60xf32>
    %412 = arith.mulf %411, %410 : vector<2x60xf32>
    %413 = arith.select %20, %410, %412 : vector<2x60xi1>, vector<2x60xf32>
    %414 = math.tanh %413 : vector<2x60xf32>
    %cst_138 = arith.constant 5.000000e-01 : f32
    %415 = vector.broadcast %cst_138 : f32 to vector<2x60xf32>
    %416 = arith.mulf %415, %414 : vector<2x60xf32>
    %cst_139 = arith.constant 5.000000e-01 : f32
    %417 = vector.broadcast %cst_139 : f32 to vector<2x60xf32>
    %418 = arith.addf %416, %417 : vector<2x60xf32>
    %419 = arith.select %20, %414, %418 : vector<2x60xi1>, vector<2x60xf32>
    %420 = vector.extract_strided_slice %419 {offsets = [0, 0], sizes = [2, 15], strides = [1, 1]} : vector<2x60xf32> to vector<2x15xf32>
    %421 = vector.extract_strided_slice %419 {offsets = [0, 15], sizes = [2, 15], strides = [1, 1]} : vector<2x60xf32> to vector<2x15xf32>
    %422 = vector.extract_strided_slice %419 {offsets = [0, 30], sizes = [2, 15], strides = [1, 1]} : vector<2x60xf32> to vector<2x15xf32>
    %423 = vector.extract_strided_slice %419 {offsets = [0, 45], sizes = [2, 15], strides = [1, 1]} : vector<2x60xf32> to vector<2x15xf32>
    %424 = arith.mulf %421, %362 : vector<2x15xf32>
    %425 = arith.mulf %420, %422 : vector<2x15xf32>
    %426 = arith.addf %424, %425 : vector<2x15xf32>
    %427 = math.tanh %426 : vector<2x15xf32>
    %428 = arith.mulf %423, %427 : vector<2x15xf32>
    %cst_140 = arith.constant dense<0.000000e+00> : vector<2x60xf32>
    %429 = tpu.matmul %428, %4, %cst_140 {dimension_numbers = #tpu.dot_dimension_numbers<[1], [0], [0], [1], [0, 0, 1, 1], [], []>} : vector<2x15xf32>, vector<15x60xf32>, vector<2x60xf32> -> vector<2x60xf32>
    %cst_141 = arith.constant dense<0.000000e+00> : vector<2x60xf32>
    %430 = tpu.matmul %428, %2, %cst_141 {dimension_numbers = #tpu.dot_dimension_numbers<[1], [0], [0], [1], [0, 0, 1, 1], [], []>} : vector<2x15xf32>, vector<15x60xf32>, vector<2x60xf32> -> vector<2x60xf32>
    %431 = arith.addf %430, %387 : vector<2x60xf32>
    %432 = arith.addf %431, %14 : vector<2x60xf32>
    %cst_142 = arith.constant 5.000000e-01 : f32
    %433 = vector.broadcast %cst_142 : f32 to vector<2x60xf32>
    %434 = arith.mulf %433, %432 : vector<2x60xf32>
    %435 = arith.select %20, %432, %434 : vector<2x60xi1>, vector<2x60xf32>
    %436 = math.tanh %435 : vector<2x60xf32>
    %cst_143 = arith.constant 5.000000e-01 : f32
    %437 = vector.broadcast %cst_143 : f32 to vector<2x60xf32>
    %438 = arith.mulf %437, %436 : vector<2x60xf32>
    %cst_144 = arith.constant 5.000000e-01 : f32
    %439 = vector.broadcast %cst_144 : f32 to vector<2x60xf32>
    %440 = arith.addf %438, %439 : vector<2x60xf32>
    %441 = arith.select %20, %436, %440 : vector<2x60xi1>, vector<2x60xf32>
    %442 = vector.extract_strided_slice %441 {offsets = [0, 0], sizes = [2, 15], strides = [1, 1]} : vector<2x60xf32> to vector<2x15xf32>
    %443 = vector.extract_strided_slice %441 {offsets = [0, 15], sizes = [2, 15], strides = [1, 1]} : vector<2x60xf32> to vector<2x15xf32>
    %444 = vector.extract_strided_slice %441 {offsets = [0, 30], sizes = [2, 15], strides = [1, 1]} : vector<2x60xf32> to vector<2x15xf32>
    %445 = vector.extract_strided_slice %441 {offsets = [0, 45], sizes = [2, 15], strides = [1, 1]} : vector<2x60xf32> to vector<2x15xf32>
    %446 = arith.mulf %443, %384 : vector<2x15xf32>
    %447 = arith.mulf %442, %444 : vector<2x15xf32>
    %448 = arith.addf %446, %447 : vector<2x15xf32>
    %449 = math.tanh %448 : vector<2x15xf32>
    %450 = arith.mulf %445, %449 : vector<2x15xf32>
    %cst_145 = arith.constant dense<0.000000e+00> : vector<2x60xf32>
    %451 = tpu.matmul %450, %5, %cst_145 {dimension_numbers = #tpu.dot_dimension_numbers<[1], [0], [0], [1], [0, 0, 1, 1], [], []>} : vector<2x15xf32>, vector<15x60xf32>, vector<2x60xf32> -> vector<2x60xf32>
    %452 = arith.addf %48, %407 : vector<2x60xf32>
    %cst_146 = arith.constant 5.000000e-01 : f32
    %453 = vector.broadcast %cst_146 : f32 to vector<2x60xf32>
    %454 = arith.mulf %453, %452 : vector<2x60xf32>
    %455 = arith.select %20, %452, %454 : vector<2x60xi1>, vector<2x60xf32>
    %456 = math.tanh %455 : vector<2x60xf32>
    %cst_147 = arith.constant 5.000000e-01 : f32
    %457 = vector.broadcast %cst_147 : f32 to vector<2x60xf32>
    %458 = arith.mulf %457, %456 : vector<2x60xf32>
    %cst_148 = arith.constant 5.000000e-01 : f32
    %459 = vector.broadcast %cst_148 : f32 to vector<2x60xf32>
    %460 = arith.addf %458, %459 : vector<2x60xf32>
    %461 = arith.select %20, %456, %460 : vector<2x60xi1>, vector<2x60xf32>
    %462 = vector.extract_strided_slice %461 {offsets = [0, 0], sizes = [2, 15], strides = [1, 1]} : vector<2x60xf32> to vector<2x15xf32>
    %463 = vector.extract_strided_slice %461 {offsets = [0, 15], sizes = [2, 15], strides = [1, 1]} : vector<2x60xf32> to vector<2x15xf32>
    %464 = vector.extract_strided_slice %461 {offsets = [0, 30], sizes = [2, 15], strides = [1, 1]} : vector<2x60xf32> to vector<2x15xf32>
    %465 = vector.extract_strided_slice %461 {offsets = [0, 45], sizes = [2, 15], strides = [1, 1]} : vector<2x60xf32> to vector<2x15xf32>
    %466 = arith.mulf %463, %404 : vector<2x15xf32>
    %467 = arith.mulf %462, %464 : vector<2x15xf32>
    %468 = arith.addf %466, %467 : vector<2x15xf32>
    %469 = math.tanh %468 : vector<2x15xf32>
    %470 = arith.mulf %465, %469 : vector<2x15xf32>
    %cst_149 = arith.constant dense<0.000000e+00> : vector<2x60xf32>
    %471 = tpu.matmul %470, %3, %cst_149 {dimension_numbers = #tpu.dot_dimension_numbers<[1], [0], [0], [1], [0, 0, 1, 1], [], []>} : vector<2x15xf32>, vector<15x60xf32>, vector<2x60xf32> -> vector<2x60xf32>
    %cst_150 = arith.constant dense<0.000000e+00> : vector<2x60xf32>
    %472 = tpu.matmul %470, %1, %cst_150 {dimension_numbers = #tpu.dot_dimension_numbers<[1], [0], [0], [1], [0, 0, 1, 1], [], []>} : vector<2x15xf32>, vector<15x60xf32>, vector<2x60xf32> -> vector<2x60xf32>
    %473 = arith.addf %472, %429 : vector<2x60xf32>
    %474 = arith.addf %473, %11 : vector<2x60xf32>
    %cst_151 = arith.constant 5.000000e-01 : f32
    %475 = vector.broadcast %cst_151 : f32 to vector<2x60xf32>
    %476 = arith.mulf %475, %474 : vector<2x60xf32>
    %477 = arith.select %20, %474, %476 : vector<2x60xi1>, vector<2x60xf32>
    %478 = math.tanh %477 : vector<2x60xf32>
    %cst_152 = arith.constant 5.000000e-01 : f32
    %479 = vector.broadcast %cst_152 : f32 to vector<2x60xf32>
    %480 = arith.mulf %479, %478 : vector<2x60xf32>
    %cst_153 = arith.constant 5.000000e-01 : f32
    %481 = vector.broadcast %cst_153 : f32 to vector<2x60xf32>
    %482 = arith.addf %480, %481 : vector<2x60xf32>
    %483 = arith.select %20, %478, %482 : vector<2x60xi1>, vector<2x60xf32>
    %484 = vector.extract_strided_slice %483 {offsets = [0, 0], sizes = [2, 15], strides = [1, 1]} : vector<2x60xf32> to vector<2x15xf32>
    %485 = vector.extract_strided_slice %483 {offsets = [0, 15], sizes = [2, 15], strides = [1, 1]} : vector<2x60xf32> to vector<2x15xf32>
    %486 = vector.extract_strided_slice %483 {offsets = [0, 30], sizes = [2, 15], strides = [1, 1]} : vector<2x60xf32> to vector<2x15xf32>
    %487 = vector.extract_strided_slice %483 {offsets = [0, 45], sizes = [2, 15], strides = [1, 1]} : vector<2x60xf32> to vector<2x15xf32>
    %488 = arith.mulf %485, %426 : vector<2x15xf32>
    %489 = arith.mulf %484, %486 : vector<2x15xf32>
    %490 = arith.addf %488, %489 : vector<2x15xf32>
    %491 = math.tanh %490 : vector<2x15xf32>
    %492 = arith.mulf %487, %491 : vector<2x15xf32>
    %cst_154 = arith.constant dense<0.000000e+00> : vector<2x60xf32>
    %493 = tpu.matmul %492, %4, %cst_154 {dimension_numbers = #tpu.dot_dimension_numbers<[1], [0], [0], [1], [0, 0, 1, 1], [], []>} : vector<2x15xf32>, vector<15x60xf32>, vector<2x60xf32> -> vector<2x60xf32>
    %cst_155 = arith.constant dense<0.000000e+00> : vector<2x60xf32>
    %494 = tpu.matmul %492, %2, %cst_155 {dimension_numbers = #tpu.dot_dimension_numbers<[1], [0], [0], [1], [0, 0, 1, 1], [], []>} : vector<2x15xf32>, vector<15x60xf32>, vector<2x60xf32> -> vector<2x60xf32>
    %495 = arith.addf %494, %451 : vector<2x60xf32>
    %496 = arith.addf %495, %14 : vector<2x60xf32>
    %cst_156 = arith.constant 5.000000e-01 : f32
    %497 = vector.broadcast %cst_156 : f32 to vector<2x60xf32>
    %498 = arith.mulf %497, %496 : vector<2x60xf32>
    %499 = arith.select %20, %496, %498 : vector<2x60xi1>, vector<2x60xf32>
    %500 = math.tanh %499 : vector<2x60xf32>
    %cst_157 = arith.constant 5.000000e-01 : f32
    %501 = vector.broadcast %cst_157 : f32 to vector<2x60xf32>
    %502 = arith.mulf %501, %500 : vector<2x60xf32>
    %cst_158 = arith.constant 5.000000e-01 : f32
    %503 = vector.broadcast %cst_158 : f32 to vector<2x60xf32>
    %504 = arith.addf %502, %503 : vector<2x60xf32>
    %505 = arith.select %20, %500, %504 : vector<2x60xi1>, vector<2x60xf32>
    %506 = vector.extract_strided_slice %505 {offsets = [0, 0], sizes = [2, 15], strides = [1, 1]} : vector<2x60xf32> to vector<2x15xf32>
    %507 = vector.extract_strided_slice %505 {offsets = [0, 15], sizes = [2, 15], strides = [1, 1]} : vector<2x60xf32> to vector<2x15xf32>
    %508 = vector.extract_strided_slice %505 {offsets = [0, 30], sizes = [2, 15], strides = [1, 1]} : vector<2x60xf32> to vector<2x15xf32>
    %509 = vector.extract_strided_slice %505 {offsets = [0, 45], sizes = [2, 15], strides = [1, 1]} : vector<2x60xf32> to vector<2x15xf32>
    %510 = arith.mulf %507, %448 : vector<2x15xf32>
    %511 = arith.mulf %506, %508 : vector<2x15xf32>
    %512 = arith.addf %510, %511 : vector<2x15xf32>
    %513 = math.tanh %512 : vector<2x15xf32>
    %514 = arith.mulf %509, %513 : vector<2x15xf32>
    %cst_159 = arith.constant dense<0.000000e+00> : vector<2x60xf32>
    %515 = tpu.matmul %514, %5, %cst_159 {dimension_numbers = #tpu.dot_dimension_numbers<[1], [0], [0], [1], [0, 0, 1, 1], [], []>} : vector<2x15xf32>, vector<15x60xf32>, vector<2x60xf32> -> vector<2x60xf32>
    %516 = arith.addf %52, %471 : vector<2x60xf32>
    %cst_160 = arith.constant 5.000000e-01 : f32
    %517 = vector.broadcast %cst_160 : f32 to vector<2x60xf32>
    %518 = arith.mulf %517, %516 : vector<2x60xf32>
    %519 = arith.select %20, %516, %518 : vector<2x60xi1>, vector<2x60xf32>
    %520 = math.tanh %519 : vector<2x60xf32>
    %cst_161 = arith.constant 5.000000e-01 : f32
    %521 = vector.broadcast %cst_161 : f32 to vector<2x60xf32>
    %522 = arith.mulf %521, %520 : vector<2x60xf32>
    %cst_162 = arith.constant 5.000000e-01 : f32
    %523 = vector.broadcast %cst_162 : f32 to vector<2x60xf32>
    %524 = arith.addf %522, %523 : vector<2x60xf32>
    %525 = arith.select %20, %520, %524 : vector<2x60xi1>, vector<2x60xf32>
    %526 = vector.extract_strided_slice %525 {offsets = [0, 0], sizes = [2, 15], strides = [1, 1]} : vector<2x60xf32> to vector<2x15xf32>
    %527 = vector.extract_strided_slice %525 {offsets = [0, 15], sizes = [2, 15], strides = [1, 1]} : vector<2x60xf32> to vector<2x15xf32>
    %528 = vector.extract_strided_slice %525 {offsets = [0, 30], sizes = [2, 15], strides = [1, 1]} : vector<2x60xf32> to vector<2x15xf32>
    %529 = vector.extract_strided_slice %525 {offsets = [0, 45], sizes = [2, 15], strides = [1, 1]} : vector<2x60xf32> to vector<2x15xf32>
    %530 = arith.mulf %527, %468 : vector<2x15xf32>
    %531 = arith.mulf %526, %528 : vector<2x15xf32>
    %532 = arith.addf %530, %531 : vector<2x15xf32>
    %533 = math.tanh %532 : vector<2x15xf32>
    %534 = arith.mulf %529, %533 : vector<2x15xf32>
    %cst_163 = arith.constant dense<0.000000e+00> : vector<2x60xf32>
    %535 = tpu.matmul %534, %1, %cst_163 {dimension_numbers = #tpu.dot_dimension_numbers<[1], [0], [0], [1], [0, 0, 1, 1], [], []>} : vector<2x15xf32>, vector<15x60xf32>, vector<2x60xf32> -> vector<2x60xf32>
    %536 = arith.addf %535, %493 : vector<2x60xf32>
    %537 = arith.addf %536, %11 : vector<2x60xf32>
    %cst_164 = arith.constant 5.000000e-01 : f32
    %538 = vector.broadcast %cst_164 : f32 to vector<2x60xf32>
    %539 = arith.mulf %538, %537 : vector<2x60xf32>
    %540 = arith.select %20, %537, %539 : vector<2x60xi1>, vector<2x60xf32>
    %541 = math.tanh %540 : vector<2x60xf32>
    %cst_165 = arith.constant 5.000000e-01 : f32
    %542 = vector.broadcast %cst_165 : f32 to vector<2x60xf32>
    %543 = arith.mulf %542, %541 : vector<2x60xf32>
    %cst_166 = arith.constant 5.000000e-01 : f32
    %544 = vector.broadcast %cst_166 : f32 to vector<2x60xf32>
    %545 = arith.addf %543, %544 : vector<2x60xf32>
    %546 = arith.select %20, %541, %545 : vector<2x60xi1>, vector<2x60xf32>
    %547 = vector.extract_strided_slice %546 {offsets = [0, 0], sizes = [2, 15], strides = [1, 1]} : vector<2x60xf32> to vector<2x15xf32>
    %548 = vector.extract_strided_slice %546 {offsets = [0, 15], sizes = [2, 15], strides = [1, 1]} : vector<2x60xf32> to vector<2x15xf32>
    %549 = vector.extract_strided_slice %546 {offsets = [0, 30], sizes = [2, 15], strides = [1, 1]} : vector<2x60xf32> to vector<2x15xf32>
    %550 = vector.extract_strided_slice %546 {offsets = [0, 45], sizes = [2, 15], strides = [1, 1]} : vector<2x60xf32> to vector<2x15xf32>
    %551 = arith.mulf %548, %490 : vector<2x15xf32>
    %552 = arith.mulf %547, %549 : vector<2x15xf32>
    %553 = arith.addf %551, %552 : vector<2x15xf32>
    %554 = math.tanh %553 : vector<2x15xf32>
    %555 = arith.mulf %550, %554 : vector<2x15xf32>
    %cst_167 = arith.constant dense<0.000000e+00> : vector<2x60xf32>
    %556 = tpu.matmul %555, %2, %cst_167 {dimension_numbers = #tpu.dot_dimension_numbers<[1], [0], [0], [1], [0, 0, 1, 1], [], []>} : vector<2x15xf32>, vector<15x60xf32>, vector<2x60xf32> -> vector<2x60xf32>
    %557 = arith.addf %556, %515 : vector<2x60xf32>
    %558 = arith.addf %557, %14 : vector<2x60xf32>
    %cst_168 = arith.constant 5.000000e-01 : f32
    %559 = vector.broadcast %cst_168 : f32 to vector<2x60xf32>
    %560 = arith.mulf %559, %558 : vector<2x60xf32>
    %561 = arith.select %20, %558, %560 : vector<2x60xi1>, vector<2x60xf32>
    %562 = math.tanh %561 : vector<2x60xf32>
    %cst_169 = arith.constant 5.000000e-01 : f32
    %563 = vector.broadcast %cst_169 : f32 to vector<2x60xf32>
    %564 = arith.mulf %563, %562 : vector<2x60xf32>
    %cst_170 = arith.constant 5.000000e-01 : f32
    %565 = vector.broadcast %cst_170 : f32 to vector<2x60xf32>
    %566 = arith.addf %564, %565 : vector<2x60xf32>
    %567 = arith.select %20, %562, %566 : vector<2x60xi1>, vector<2x60xf32>
    %568 = vector.extract_strided_slice %567 {offsets = [0, 0], sizes = [2, 15], strides = [1, 1]} : vector<2x60xf32> to vector<2x15xf32>
    %569 = vector.extract_strided_slice %567 {offsets = [0, 15], sizes = [2, 15], strides = [1, 1]} : vector<2x60xf32> to vector<2x15xf32>
    %570 = vector.extract_strided_slice %567 {offsets = [0, 30], sizes = [2, 15], strides = [1, 1]} : vector<2x60xf32> to vector<2x15xf32>
    %571 = vector.extract_strided_slice %567 {offsets = [0, 45], sizes = [2, 15], strides = [1, 1]} : vector<2x60xf32> to vector<2x15xf32>
    %572 = arith.mulf %569, %512 : vector<2x15xf32>
    %573 = arith.mulf %568, %570 : vector<2x15xf32>
    %574 = arith.addf %572, %573 : vector<2x15xf32>
    %575 = math.tanh %574 : vector<2x15xf32>
    %576 = arith.mulf %571, %575 : vector<2x15xf32>
    %c0_171 = arith.constant 0 : index
    %c0_172 = arith.constant 0 : index
    %577 = vector.load %arg12[%c0_171, %c0_172] : memref<15x3xf32, #tpu.memory_space<vmem>>, vector<15x3xf32>
    %cst_173 = arith.constant dense<0.000000e+00> : vector<2x3xf32>
    %578 = tpu.matmul %576, %577, %cst_173 {dimension_numbers = #tpu.dot_dimension_numbers<[1], [0], [0], [1], [0, 0, 1, 1], [], []>} : vector<2x15xf32>, vector<15x3xf32>, vector<2x3xf32> -> vector<2x3xf32>
    %c0_174 = arith.constant 0 : index
    %c0_175 = arith.constant 0 : index
    %579 = vector.load %arg13[%c0_174, %c0_175] : memref<1x3xf32, #tpu.memory_space<vmem>>, vector<1x3xf32>
    %580 = vector.broadcast %579 : vector<1x3xf32> to vector<2x3xf32>
    %581 = arith.addf %578, %580 : vector<2x3xf32>
    %cst_176 = arith.constant 0.000000e+00 : f32
    %582 = vector.broadcast %cst_176 : f32 to vector<2x3xf32>
    %583 = arith.maximumf %581, %582 : vector<2x3xf32>
    %c0_177 = arith.constant 0 : index
    %c0_178 = arith.constant 0 : index
    %584 = vector.load %arg14[%c0_177, %c0_178] : memref<2x3xf32, #tpu.memory_space<vmem>>, vector<2x3xf32>
    tpu.vector_store %arg14[%c0_177, %c0_178], %583 {strides = array<i32>} : memref<2x3xf32, #tpu.memory_space<vmem>>, vector<2x3xf32>,
    return
  }
}

</mosaic_0001>

<bundles_post_ra>
// kernel: lstm_single_direction_forward.1
= control target key start
LH: loop header
LB: loop body
LE: loop exit
PB: predicated region body
PF: predicated region fallthrough
CT: control target
= control target key end

     0   :  { %19 = vsyncpa [#allocation3], 0  ;;  %s6341_s0 = inlined_call_operand.vmem [shape: f32[8,2,10], index: 0, kind: input, shape index: {}]   ;;  %s6342_s1 = inlined_call_operand.hbm [shape: f32[3,2,15], index: 1, kind: input, shape index: {}]   ;;  %s6343_s2 = inlined_call_operand.hbm [shape: f32[3,2,15], index: 2, kind: input, shape index: {}]   ;;  %s6344_s3 = inlined_call_operand.vmem [shape: f32[10,60], index: 3, kind: input, shape index: {}]   ;;  %s6345_s4 = inlined_call_operand.vmem [shape: f32[15,60], index: 4, kind: input, shape index: {}]   ;;  %s6346_s5 = inlined_call_operand.vmem [shape: f32[15,60], index: 5, kind: input, shape index: {}]   ;;  %s6347_s6 = inlined_call_operand.vmem [shape: f32[15,60], index: 6, kind: input, shape index: {}]   ;;  %s6348_s7 = inlined_call_operand.hbm [shape: f32[15,60], index: 7, kind: input, shape index: {}]   ;;  %s6349_s8 = inlined_call_operand.hbm [shape: f32[15,60], index: 8, kind: input, shape index: {}]   ;;  %s6350_s9 = inlined_call_operand.hbm [shape: f32[1,60], index: 9, kind: input, shape index: {}]   ;;  %s6351_s10 = inlined_call_operand.hbm [shape: f32[1,60], index: 10, kind: input, shape index: {}]   ;;  %s6352_s11 = inlined_call_operand.hbm [shape: f32[1,60], index: 11, kind: input, shape index: {}]   ;;  %s6353_s12 = inlined_call_operand.vmem [shape: f32[15,3], index: 12, kind: input, shape index: {}]   ;;  %s6354_s13 = inlined_call_operand.hbm [shape: f32[1,3], index: 13, kind: input, shape index: {}]   ;;  %s6355_s14 = inlined_call_operand.hbm [shape: f32[2,3], index: 14, kind: output, shape index: {}]  }
   0x1   :  { %20 = vsyncpa [#allocation6], 0 }
   0x2   :  { %21 = vsyncpa [#allocation9], 0 }
   0x3   :  { %22 = vsyncpa [#allocation12], 0 }
   0x4   :  { %23 = vsyncpa [#allocation15], 0 }
   0x5   :  { %24 = vsyncpa [#allocation4], 0  ;;  %s5358_s29 = smov [#allocation5]  }
   0x6   :  { %s44_s30 = sshll.u32 %s5358_s29, 4  ;;  %s45_s30 = int_to_ptr.vmem [resolvable:$true] %s44_s30 }
   0x7   :  { %s5174_s15 = scalar_lea.vmem %s45_s30, 96  ;;  %p5179_p1 = scmp.lt.s32.totalorder %s45_s30, %s45_s30 }
   0x8   :  { %p5175_p0 = scmp.ne.s32.totalorder %s45_s30, %s5174_s15  ;;  %p5180_p2 = scmp.lt.s32.totalorder %s5174_s15, %s5174_s15 }
   0xa   :  { %p5181_p3 = por %p5180_p2, %p5179_p1 }
   0xc   :  { %p5182_p4 = pnand %p5181_p3, %p5175_p0 }
   0xe   :  { %5185 = shalt.err (!%p5182_p4)
}
   0xf   :  { %s5359_s16 = smov 32   ;;  %s5360_s17 = smov 2  }
  0x10   :  { %50 = dma.hbm_to_vmem [thread:$0]  %s6343_s2, 96, %s45_s30, [#allocation6], %s5359_s16, %s5359_s16, %s5360_s17  }
  0x11   :  { %s5361_s20 = smov [#allocation8]   ;;  %s5362_s22 = smov [#allocation11]  }
  0x12   :  { %s76_s21 = sshll.u32 %s5361_s20, 4  ;;  %s99_s23 = sshll.u32 %s5362_s22, 4  ;;  %s77_s21 = int_to_ptr.vmem [resolvable:$true] %s76_s21  ;;  %s100_s23 = int_to_ptr.vmem [resolvable:$true] %s99_s23 }
  0x13   :  { %s5194_s24 = scalar_lea.vmem %s77_s21, 256  ;;  %p5199_p6 = scmp.lt.s32.totalorder %s77_s21, %s77_s21 }
  0x14   :  { %p5195_p5 = scmp.ne.s32.totalorder %s77_s21, %s5194_s24  ;;  %p5200_p7 = scmp.lt.s32.totalorder %s5194_s24, %s5194_s24 }
  0x16   :  { %p5201_p8 = por %p5200_p7, %p5199_p6 }
  0x18   :  { %p5202_p9 = pnand %p5201_p8, %p5195_p5 }
  0x1a   :  { %5205 = shalt.err (!%p5202_p9)
}
  0x1b   :  { %s5363_s25 = smov 128   ;;  %s5364_s26 = smov 8  }
  0x1c   :  { %82 = dma.hbm_to_vmem [thread:$0]  %s6349_s8, 256, %s77_s21, [#allocation9], %s5363_s25, %s5363_s25, %s5364_s26  }
  0x1d   :  { %s5214_s2 = scalar_lea.vmem %s100_s23, 16  ;;  %s5218_s29 = scalar_lea.vmem %s100_s23, 32 }
  0x1e   :  { %p5215_p10 = scmp.ne.s32.totalorder %s100_s23, %s5214_s2  ;;  %p5219_p11 = scmp.lt.s32.totalorder %s100_s23, %s100_s23 }
  0x1f   :  { %p5220_p12 = scmp.lt.s32.totalorder %s5218_s29, %s5214_s2 }
  0x21   :  { %p5221_p13 = por %p5220_p12, %p5219_p11 }
  0x23   :  { %p5222_p0 = pnand %p5221_p13, %p5215_p10 }
  0x25   :  { %5225 = shalt.err (!%p5222_p0)
}
  0x26   :  { %102 = dma.hbm_to_vmem [thread:$0]  %s6351_s10, 16, %s100_s23, [#allocation12]  }
  0x27   :  { %s5365_s18 = smov [#allocation2]   ;;  %s5366_s20 = smov [#allocation7]  }
  0x28   :  { %s32_s19 = sshll.u32 %s5365_s18, 4  ;;  %s64_s22 = sshll.u32 %s5366_s20, 4  ;;  %s33_s19 = int_to_ptr.vmem [resolvable:$true] %s32_s19  ;;  %s65_s22 = int_to_ptr.vmem [resolvable:$true] %s64_s22 }
  0x29   :  { %s5234_s24 = scalar_lea.vmem %s33_s19, 96  ;;  %p5239_p2 = scmp.lt.s32.totalorder %s33_s19, %s33_s19 }
  0x2a   :  { %p5235_p1 = scmp.ne.s32.totalorder %s33_s19, %s5234_s24  ;;  %p5240_p3 = scmp.lt.s32.totalorder %s5234_s24, %s5234_s24 }
  0x2c   :  { %p5241_p4 = por %p5240_p3, %p5239_p2 }
  0x2e   :  { %p5242_p5 = pnand %p5241_p4, %p5235_p1 }
  0x30   :  { %5245 = shalt.err (!%p5242_p5)
}
  0x31   :  { %38 = dma.hbm_to_vmem [thread:$0]  %s6342_s1, 96, %s33_s19, [#allocation3], %s5359_s16, %s5359_s16, %s5360_s17  }
  0x32   :  { %s5254_s10 = scalar_lea.vmem %s65_s22, 256  ;;  %p5259_p7 = scmp.lt.s32.totalorder %s65_s22, %s65_s22 }
  0x33   :  { %p5255_p6 = scmp.ne.s32.totalorder %s65_s22, %s5254_s10  ;;  %p5260_p8 = scmp.lt.s32.totalorder %s5254_s10, %s5254_s10 }
  0x35   :  { %p5261_p9 = por %p5260_p8, %p5259_p7 }
  0x37   :  { %p5262_p10 = pnand %p5261_p9, %p5255_p6 }
  0x39   :  { %5265 = shalt.err (!%p5262_p10)
}
  0x3a   :  { %70 = dma.hbm_to_vmem [thread:$0]  %s6348_s7, 256, %s65_s22, [#allocation6], %s5363_s25, %s5363_s25, %s5364_s26  }
  0x3b   :  { %s5367_s28 = smov [#allocation10]   ;;  %s5368_s29 = smov [#allocation13]  }
  0x3c   :  { %s89_s2 = sshll.u32 %s5367_s28, 4  ;;  %s109_s1 = sshll.u32 %s5368_s29, 4  ;;  %s90_s2 = int_to_ptr.vmem [resolvable:$true] %s89_s2  ;;  %s110_s1 = int_to_ptr.vmem [resolvable:$true] %s109_s1 }
  0x3d   :  { %s5274_s16 = scalar_lea.vmem %s90_s2, 16  ;;  %s5278_s17 = scalar_lea.vmem %s90_s2, 32 }
  0x3e   :  { %p5275_p11 = scmp.ne.s32.totalorder %s90_s2, %s5274_s16  ;;  %p5279_p12 = scmp.lt.s32.totalorder %s90_s2, %s90_s2 }
  0x3f   :  { %p5280_p13 = scmp.lt.s32.totalorder %s5278_s17, %s5274_s16 }
  0x41   :  { %p5281_p0 = por %p5280_p13, %p5279_p12 }
  0x43   :  { %p5282_p1 = pnand %p5281_p0, %p5275_p11 }
  0x45   :  { %5285 = shalt.err (!%p5282_p1)
}
  0x46   :  { %92 = dma.hbm_to_vmem [thread:$0]  %s6350_s9, 16, %s90_s2, [#allocation9]  }
  0x47   :  { %s5294_s18 = scalar_lea.vmem %s110_s1, 16  ;;  %s5298_s7 = scalar_lea.vmem %s110_s1, 32 }
  0x48   :  { %p5295_p2 = scmp.ne.s32.totalorder %s110_s1, %s5294_s18  ;;  %p5299_p3 = scmp.lt.s32.totalorder %s110_s1, %s110_s1 }
  0x49   :  { %p5300_p4 = scmp.lt.s32.totalorder %s5298_s7, %s5294_s18 }
  0x4b   :  { %p5301_p5 = por %p5300_p4, %p5299_p3 }
  0x4d   :  { %p5302_p6 = pnand %p5301_p5, %p5295_p2 }
  0x4f   :  { %5305 = shalt.err (!%p5302_p6)
}
  0x50   :  { %112 = dma.hbm_to_vmem [thread:$0]  %s6352_s11, 16, %s110_s1, [#allocation12]  }
  0x51   :  { %s5369_s19 = smov [#allocation14]  }
  0x52   :  { %s121_s20 = sshll.u32 %s5369_s19, 4  ;;  %s122_s20 = int_to_ptr.vmem [resolvable:$true] %s121_s20 }
  0x53   :  { %s5314_s22 = scalar_lea.vmem %s122_s20, 16  ;;  %s5318_s24 = scalar_lea.vmem %s122_s20, 32 }
  0x54   :  { %p5315_p7 = scmp.ne.s32.totalorder %s122_s20, %s5314_s22  ;;  %p5319_p8 = scmp.lt.s32.totalorder %s122_s20, %s122_s20 }
  0x55   :  { %p5320_p9 = scmp.lt.s32.totalorder %s5318_s24, %s5314_s22 }
  0x57   :  { %p5321_p10 = por %p5320_p9, %p5319_p8 }
  0x59   :  { %p5322_p11 = pnand %p5321_p10, %p5315_p7 }
  0x5b   :  { %5325 = shalt.err (!%p5322_p11)
}
  0x5c   :  { %124 = dma.hbm_to_vmem [thread:$0]  %s6354_s13, 16, %s122_s20, [#allocation15]  }
  0x5d   :  { %5346 = dma.done.wait [#allocation3], 96  }
  0x5e   :  { %5347 = vsyncadd [#allocation3], 4294967200 }
  0x5f   :  { %5348 = dma.done.wait [#allocation6], 352  }
  0x60   :  { %5349 = vsyncadd [#allocation6], 4294966944 }
  0x61   :  { %5350 = dma.done.wait [#allocation9], 272  }
  0x62   :  { %5351 = vsyncadd [#allocation9], 4294967024 }
  0x63   :  { %5352 = dma.done.wait [#allocation12], 32  }
  0x64   :  { %5353 = vsyncadd [#allocation12], 4294967264 }
  0x65   :  { %5354 = dma.done.wait [#allocation15], 16  }
  0x66   :  { %5355 = vsyncadd [#allocation15], 4294967280  ;;  %v5370_v0 = vmov 0.0   ;;  %vm5371_vm0 = vmmov 0   ;;  %vm192_vm1 = vcmask 1041408   ;;  %v5502_v2 = vld [vmem:[%s6344_s3] sm:$0xff]  ;;  %v182_v14 = vlaneseq }
  0x67   :  { %4695 = vmatprep.subr.mxu0 %v5370_v0  ;;  %4699 = vmatprep.mubr.msk.f32.mxu0 %vm5371_vm0, %v5370_v0  ;;  %v5497_v1 = vld [vmem:[%s6344_s3 + $0x8] sm:$0x3]  ;;  %v187_v3 = vld [vmem:[%s6341_s0] sm:$0x3]  ;;  %vm188_vm2 = vcmask 80896   ;;  %vm805_vm3 = vcmask 1046528  }
  0x68   :  { %4702 = vmatprep.subr.mxu1 %v5370_v0  ;;  %4706 = vmatprep.mubr.msk.f32.mxu1 %vm5371_vm0, %v5370_v0  ;;  %v4447_v4 = vld [vmem:[%s6341_s0 + $0x4] sm:$0x3]  ;;  %v4453_v5 = vld [vmem:[%s6341_s0 + $0x8] sm:$0x3]  ;;  %v4459_v6 = vld [vmem:[%s6341_s0 + $0xc] sm:$0x3] }
  0x69   :  { %4696 = vmatpush3.msk.msra.mxu0 %vm192_vm1, %v5497_v1  ;;  %4703 = vmatpush3.msk.msra.mxu1 %vm192_vm1, %v5497_v1  ;;  %v5551_v7 = vld [vmem:[%s6345_s4 + $0x8] sm:$0x7f]  ;;  %v5559_v8 = vld [vmem:[%s6345_s4] sm:$0xff]  ;;  %vm801_vm4 = vcmask 121856   ;;  %v183_v17 = vand.u32 127, %v182_v14  ;;  %s5372_s7 = smov 98  }
  0x6a   :  { %4697 = vmatprep.subr.mxu0 %v5370_v0  ;;  %4704 = vmatprep.subr.mxu1 %v5370_v0  ;;  %v791_v9 = vld [vmem:[#allocation2] sm:$0x3]  ;;  %v5575_v18 = vld [vmem:[#allocation10] ss:$0 sm:$0xff]  ;;  %v796_v32 = vld [vmem:[#allocation5] sm:$0x3] }
  0x6b   :  { %4698 = vmatpush3.msra.mxu0 %v5502_v2  ;;  %4705 = vmatpush3.msra.mxu1 %v5502_v2  ;;  %vm184_vm5 = vcmp.ge.s32.totalorder %v183_v17, 30  ;;  %vm185_vm6 = vcmp.lt.s32.totalorder %v183_v17, 45  ;;  %s5373_s25 = smov 15   ;;  %v4444_v39 = vld [vmem:[%s6341_s0 + $0x2] sm:$0x3]  ;;  %s5374_s13 = smov 30  }
  0x6c   :  { %4700 = vmatmul.mubr.msk.f32.vlgmr.msra.gmra.mxu0 %vm188_vm2, %v187_v3  ;;  %4709 = vmatprep.subr.mxu0 %v5370_v0  ;;  %vm5580_vm7 = vmand %vm184_vm5, %vm185_vm6  ;;  %v5603_v40 = vld [vmem:[#allocation8 + $0x8] sm:$0x7f]  ;;  %v5617_v42 = vld [vmem:[#allocation8] sm:$0xff]  ;;  %s5375_s29 = smov 83   ;;  %vm4418_vm8 = vcmask 17408  }
  0x6d   :  { %4710 = vmatpush3.msk.msra.mxu0 %vm192_vm1, %v5497_v1  ;;  %4713 = vmatprep.mubr.msk.f32.mxu0 %vm5371_vm0, %v5370_v0  ;;  %v4450_v41 = vld [vmem:[%s6341_s0 + $0x6] sm:$0x3]  ;;  %v795_v43 = vld [vmem:[#allocation2 + $0x4] sm:$0x3]  ;;  %v4456_v44 = vld [vmem:[%s6341_s0 + $0xa] sm:$0x3] }
  0x6e   :  { %4711 = vmatprep.subr.mxu0 %v5370_v0  ;;  %4716 = vmatprep.subr.mxu1 %v5370_v0  ;;  %v4462_v46 = vld [vmem:[%s6341_s0 + $0xe] sm:$0x3]  ;;  %v5660_v49 = vld [vmem:[%s6347_s6] sm:$0xff]  ;;  %v798_v54 = vld [vmem:[#allocation5 + $0x2] sm:$0x3] }
  0x6f   :  { %4712 = vmatpush3.msra.mxu0 %v5502_v2  ;;  %4707 = vmatmul.mubr.msk.f32.vlgmr.msra.gmra.mxu1 %vm188_vm2, %v4444_v39  ;;  %v5646_v47 = vld [vmem:[%s6347_s6 + $0x8] sm:$0x7f]  ;;  %v793_v50 = vld [vmem:[#allocation2 + $0x2] sm:$0x3] }
  0x70   :  { %4714 = vmatmul.mubr.msk.f32.vlgmr.msra.gmra.mxu0 %vm188_vm2, %v4447_v4  ;;  %4723 = vmatprep.subr.mxu0 %v5370_v0  ;;  %v5653_v48 = vld [vmem:[%s6346_s5 + $0x8] sm:$0x7f]  ;;  %v5674_v51 = vld [vmem:[%s6346_s5] sm:$0xff] }
  0x71   :  { %4724 = vmatpush3.msk.msra.mxu0 %vm192_vm1, %v5497_v1  ;;  %4727 = vmatprep.mubr.msk.f32.mxu0 %vm5371_vm0, %v5370_v0 }
  0x72   :  { %4725 = vmatprep.subr.mxu0 %v5370_v0  ;;  %4717 = vmatpush3.msk.msra.mxu1 %vm192_vm1, %v5497_v1 }
  0x73   :  { %4726 = vmatpush3.msra.mxu0 %v5502_v2  ;;  %4720 = vmatprep.mubr.msk.f32.mxu1 %vm5371_vm0, %v5370_v0 }
  0x74   :  { %4728 = vmatmul.mubr.msk.f32.vlgmr.msra.gmra.mxu0 %vm188_vm2, %v4453_v5  ;;  %4737 = vmatprep.subr.mxu0 %v5370_v0 }
  0x75   :  { %4738 = vmatpush3.msk.msra.mxu0 %vm192_vm1, %v5497_v1  ;;  %4741 = vmatprep.mubr.msk.f32.mxu0 %vm5371_vm0, %v5370_v0 }
  0x76   :  { %4739 = vmatprep.subr.mxu0 %v5370_v0  ;;  %4718 = vmatprep.subr.mxu1 %v5370_v0 }
  0x77   :  { %4740 = vmatpush3.msra.mxu0 %v5502_v2  ;;  %4719 = vmatpush3.msra.mxu1 %v5502_v2 }
  0x78   :  { %4742 = vmatmul.mubr.msk.f32.vlgmr.msra.gmra.mxu0 %vm188_vm2, %v4459_v6  ;;  %4751 = vmatprep.subr.mxu0 %v5370_v0 }
  0x79   :  { %4752 = vmatpush3.msk.msra.mxu0 %vm805_vm3, %v5551_v7  ;;  %4755 = vmatprep.mubr.msk.f32.mxu0 %vm5371_vm0, %v5370_v0 }
  0x7a   :  { %4753 = vmatprep.subr.mxu0 %v5370_v0  ;;  %4721 = vmatmul.mubr.msk.f32.vlgmr.msra.gmra.mxu1 %vm188_vm2, %v4450_v41 }
  0x7b   :  { %4754 = vmatpush3.msra.mxu0 %v5559_v8  ;;  %4730 = vmatprep.subr.mxu1 %v5370_v0 }
  0x7c   :  { %4756 = vmatmul.mubr.msk.f32.vlgmr.msra.gmra.mxu0 %vm801_vm4, %v791_v9  ;;  %4765 = vmatprep.subr.mxu0 %v5370_v0  ;;  %v5712_v9 = vld [vmem:[#allocation11] ss:$0 sm:$0xff] }
  0x7d   :  { %4769 = vmatprep.mubr.msk.f32.mxu0 %vm5371_vm0, %v5370_v0  ;;  %4766 = vmatpush3.msk.msra.mxu0 %vm805_vm3, %v5603_v40 }
  0x7e   :  { %4767 = vmatprep.subr.mxu0 %v5370_v0  ;;  %4731 = vmatpush3.msk.msra.mxu1 %vm192_vm1, %v5497_v1 }
  0x7f   :  { %4734 = vmatprep.mubr.msk.f32.mxu1 %vm5371_vm0, %v5370_v0  ;;  %4732 = vmatprep.subr.mxu1 %v5370_v0 }
  0x80   :  { %4768 = vmatpush3.msra.mxu0 %v5617_v42  ;;  %4733 = vmatpush3.msra.mxu1 %v5502_v2 }
  0x81   :  { %4770 = vmatmul.mubr.msk.f32.vlgmr.msra.gmra.mxu0 %vm801_vm4, %v795_v43  ;;  %4735 = vmatmul.mubr.msk.f32.vlgmr.msra.gmra.mxu1 %vm188_vm2, %v4456_v44 }
  0x82   :  { %4744 = vmatprep.subr.mxu1 %v5370_v0  ;;  %4748 = vmatprep.mubr.msk.f32.mxu1 %vm5371_vm0, %v5370_v0 }
  0x83   :  { %4745 = vmatpush3.msk.msra.mxu1 %vm192_vm1, %v5497_v1  ;;  %4779 = vmatprep.subr.mxu0 %v5370_v0 }
  0x84   :  { %4746 = vmatprep.subr.mxu1 %v5370_v0  ;;  %4780 = vmatpush3.msk.msra.mxu0 %vm805_vm3, %v5653_v48 }
  0x85   :  { %4747 = vmatpush3.msra.mxu1 %v5502_v2  ;;  %4781 = vmatprep.subr.mxu0 %v5370_v0 }
  0x86   :  { %4749 = vmatmul.mubr.msk.f32.vlgmr.msra.gmra.mxu1 %vm188_vm2, %v4462_v46  ;;  %4758 = vmatprep.subr.mxu1 %v5370_v0 }
  0x87   :  { %4759 = vmatpush3.msk.msra.mxu1 %vm805_vm3, %v5646_v47  ;;  %4762 = vmatprep.mubr.msk.f32.mxu1 %vm5371_vm0, %v5370_v0 }
  0x88   :  { %4760 = vmatprep.subr.mxu1 %v5370_v0  ;;  %4782 = vmatpush3.msra.mxu0 %v5674_v51 }
  0x89   :  { %4761 = vmatpush3.msra.mxu1 %v5660_v49  ;;  %4783 = vmatprep.mubr.msk.f32.mxu0 %vm5371_vm0, %v5370_v0 }
  0x8a   :  { %4763 = vmatmul.mubr.msk.f32.vlgmr.msra.gmra.mxu1 %vm801_vm4, %v793_v50  ;;  %4772 = vmatprep.subr.mxu1 %v5370_v0 }
  0x8b   :  { %4773 = vmatpush3.msk.msra.mxu1 %vm805_vm3, %v5551_v7  ;;  %4776 = vmatprep.mubr.msk.f32.mxu1 %vm5371_vm0, %v5370_v0 }
  0x8c   :  { %4774 = vmatprep.subr.mxu1 %v5370_v0  ;;  %4793 = vmatprep.subr.mxu0 %v5370_v0 }
  0x8d   :  { %4775 = vmatpush3.msra.mxu1 %v5559_v8 }
  0x8e   :  { %4786 = vmatprep.subr.mxu1 %v5370_v0 }
 0x12c   :  { %v262_v10 = vpop.f32.mrf.mxu0 }
 0x12d   :  { %v263_v21 = vadd.f32 %v5575_v18, %v262_v10 }
 0x12e   :  { %v4701_v11 = vpop.f32.mrf.mxu0 }
 0x12f   :  { %v337_v55 = vpop.f32.mrf.mxu1 }
 0x130   :  { %v5571_v12 = vpop.f32.mrf.mxu0  ;;  %v338_v5 = vadd.f32 %v5575_v18, %v337_v55 }
 0x131   :  { %v4708_v56 = vpop.f32.mrf.mxu1 }
 0x132   :  { %v4715_v13 = vpop.f32.mrf.mxu0 }
 0x134   :  { %v5573_v15 = vpop.f32.mrf.mxu0 }
 0x136   :  { %v4729_v16 = vpop.f32.mrf.mxu0 }
 0x138   :  { %v5577_v19 = vpop.f32.mrf.mxu0 }
 0x13a   :  { %v4743_v20 = vpop.f32.mrf.mxu0  ;;  %v5692_v57 = vpop.f32.mrf.mxu1 }
 0x13c   :  { %v875_v22 = vpop.f32.mrf.mxu0  ;;  %v4722_v58 = vpop.f32.mrf.mxu1 }
 0x13d   :  { %v1031_v23 = vadd.f32 %v875_v22, %v263_v21 }
 0x13e   :  { %v4757_v25 = vpop.f32.mrf.mxu0 }
 0x13f   :  { %v1032_v26 = vmul.f32 0.5, %v1031_v23 }
 0x141   :  { %v1033_v27 = vsel %vm5580_vm7, %v1031_v23, %v1032_v26  ;;  %v5694_v59 = vpop.f32.mrf.mxu0  ;;  %v5696_v60 = vpop.f32.mrf.mxu1 }
 0x142   :  { %5057 = vtanh.f32 %v1033_v27 }
 0x143   :  { %v4771_v61 = vpop.f32.mrf.mxu0  ;;  %v4736_v62 = vpop.f32.mrf.mxu1 }
 0x146   :  { %v5698_v63 = vpop.f32.mrf.mxu1 }
 0x148   :  { %v4750_v1 = vpop.f32.mrf.mxu1 }
 0x14a   :  { %v951_v2 = vpop.f32.mrf.mxu1 }
 0x14c   :  { %v4764_v3 = vpop.f32.mrf.mxu1 }
 0x14f   :  { %v5058_v28 = vpop.eup %5057 }
 0x150   :  { %v1035_v29 = vmul.f32 0.5, %v5058_v28 }
 0x152   :  { %v1036_v30 = vadd.f32 0.5, %v1035_v29 }
 0x154   :  { %v5588_v31 = vsel %vm5580_vm7, %v5058_v28, %v1036_v30 }
 0x155   :  { %1044 = vrot.lane.b32.xlu0 %v5588_v31, %s5372_s7 }
 0x159   :  { %1039 = vrot.lane.b32.xlu0 %v796_v32, %s5373_s25 }
 0x1c7   :  { %v1045_v33 = vpop.permute.xlu0 %1044 }
 0x1c8   :  { %v1047_v34 = vmul.f32 %v1045_v33, %v5588_v31  ;;  %v5724_v33 = vld [vmem:[#allocation7 + $0x8] sm:$0x7f] }
 0x1ca   :  { %1049 = vrot.lane.b32.xlu1 %v1047_v34, %s5373_s25  ;;  %v5726_v34 = vld [vmem:[#allocation7] sm:$0xff] }
 0x1cb   :  { %v1040_v35 = vpop.permute.xlu0 %1039 }
 0x1cc   :  { %v1042_v36 = vmul.f32 %v1040_v35, %v5588_v31 }
 0x23c   :  { %v1050_v37 = vpop.permute.xlu1 %1049 }
 0x23d   :  { %v5596_v38 = vadd.f32 %v1050_v37, %v1042_v36 }
 0x23f   :  { %5059 = vtanh.f32 %v5596_v38 }
 0x24c   :  { %v5060_v45 = vpop.eup %5059 }
 0x24d   :  { %1055 = vrot.lane.b32.xlu1 %v5060_v45, %s5374_s13 }
 0x2bf   :  { %v1056_v52 = vpop.permute.xlu1 %1055 }
 0x2c0   :  { %v1058_v53 = vmul.f32 %v1056_v52, %v5588_v31 }
 0x2c2   :  { %1060 = vrot.lane.b32.xlu0 %v1058_v53, %s5375_s29  ;;  %v5758_v53 = vld [vmem:[#allocation13] ss:$0 sm:$0xff] }
 0x2c6   :  { %1215 = vrot.lane.b32.xlu0 %v798_v54, %s5373_s25 }
 0x334   :  { %v1061_v4 = vpop.permute.xlu0 %1060 }
 0x335   :  { %4777 = vmatmul.mubr.msk.f32.vlgmr.msra.gmra.mxu1 %vm801_vm4, %v1061_v4  ;;  %4784 = vmatmul.mubr.msk.f32.vlgmr.msra.gmra.mxu0 %vm801_vm4, %v1061_v4 }
 0x336   :  { %4787 = vmatpush3.msk.msra.mxu1 %vm805_vm3, %v5646_v47  ;;  %4790 = vmatprep.mubr.msk.f32.mxu1 %vm5371_vm0, %v5370_v0 }
 0x337   :  { %4788 = vmatprep.subr.mxu1 %v5370_v0  ;;  %4797 = vmatprep.mubr.msk.f32.mxu0 %vm5371_vm0, %v5370_v0 }
 0x338   :  { %4789 = vmatpush3.msra.mxu1 %v5660_v49  ;;  %v1216_v29 = vpop.permute.xlu0 %1215  ;;  %4794 = vmatpush3.msk.msra.mxu0 %vm805_vm3, %v5724_v33 }
 0x339   :  { %4800 = vmatprep.subr.mxu1 %v5370_v0  ;;  %4795 = vmatprep.subr.mxu0 %v5370_v0 }
 0x33a   :  { %4796 = vmatpush3.msra.mxu0 %v5726_v34 }
 0x33b   :  { %4807 = vmatprep.subr.mxu0 %v5370_v0 }
 0x3f5   :  { %v1130_v6 = vpop.f32.mrf.mxu1  ;;  %v1203_v10 = vpop.f32.mrf.mxu0 }
 0x3f6   :  { %v1486_v11 = vadd.f32 %v1130_v6, %v338_v5  ;;  %v1204_v13 = vadd.f32 %v1203_v10, %v951_v2  ;;  %v800_v6 = vld [vmem:[#allocation5 + $0x4] sm:$0x3] }
 0x3f7   :  { %v4778_v14 = vpop.f32.mrf.mxu1  ;;  %v4785_v16 = vpop.f32.mrf.mxu0 }
 0x3f8   :  { %v1207_v17 = vadd.f32 %v5712_v9, %v1204_v13  ;;  %v1487_v36 = vmul.f32 0.5, %v1486_v11 }
 0x3fa   :  { %v1208_v20 = vmul.f32 0.5, %v1207_v17  ;;  %v1488_v37 = vsel %vm5580_vm7, %v1486_v11, %v1487_v36 }
 0x3fc   :  { %v1209_v21 = vsel %vm5580_vm7, %v1207_v17, %v1208_v20 }
 0x3fd   :  { %5061 = vtanh.f32 %v1209_v21 }
 0x40a   :  { %v5062_v22 = vpop.eup %5061 }
 0x40b   :  { %v1211_v23 = vmul.f32 0.5, %v5062_v22 }
 0x40d   :  { %v1212_v25 = vadd.f32 0.5, %v1211_v23 }
 0x40f   :  { %v1213_v26 = vsel %vm5580_vm7, %v5062_v22, %v1212_v25 }
 0x410   :  { %1220 = vrot.lane.b32.xlu1 %v1213_v26, %s5372_s7  ;;  %v1218_v30 = vmul.f32 %v1216_v29, %v1213_v26 }
 0x482   :  { %v1221_v27 = vpop.permute.xlu1 %1220 }
 0x483   :  { %v1223_v28 = vmul.f32 %v1221_v27, %v1213_v26 }
 0x485   :  { %1225 = vrot.lane.b32.xlu1 %v1223_v28, %s5373_s25 }
 0x4f7   :  { %v1226_v31 = vpop.permute.xlu1 %1225 }
 0x4f8   :  { %v5721_v32 = vadd.f32 %v1226_v31, %v1218_v30 }
 0x4fa   :  { %5063 = vtanh.f32 %v5721_v32 }
 0x4fb   :  { %5065 = vtanh.f32 %v1488_v37 }
 0x507   :  { %v5064_v35 = vpop.eup %5063 }
 0x508   :  { %1231 = vrot.lane.b32.xlu0 %v5064_v35, %s5374_s13  ;;  %v5066_v39 = vpop.eup %5065  ;;  %v413_v35 = vadd.f32 %v5575_v18, %v5571_v12 }
 0x509   :  { %v1490_v41 = vmul.f32 0.5, %v5066_v39 }
 0x50b   :  { %v1491_v45 = vadd.f32 0.5, %v1490_v41 }
 0x50d   :  { %v1492_v46 = vsel %vm5580_vm7, %v5066_v39, %v1491_v45 }
 0x50e   :  { %v1493_v16 = vmul.f32 %v1492_v46, %v5596_v38 }
 0x57a   :  { %v1232_v43 = vpop.permute.xlu0 %1231 }
 0x57b   :  { %v1234_v44 = vmul.f32 %v1232_v43, %v1213_v26 }
 0x57d   :  { %1236 = vrot.lane.b32.xlu1 %v1234_v44, %s5375_s29 }
 0x581   :  { %1495 = vrot.lane.b32.xlu1 %v1492_v46, %s5372_s7 }
 0x5ef   :  { %v1237_v50 = vpop.permute.xlu1 %1236 }
 0x5f0   :  { %4791 = vmatmul.mubr.msk.f32.vlgmr.msra.gmra.mxu1 %vm801_vm4, %v1237_v50  ;;  %4798 = vmatmul.mubr.msk.f32.vlgmr.msra.gmra.mxu0 %vm801_vm4, %v1237_v50 }
 0x5f1   :  { %4808 = vmatpush3.msk.msra.mxu0 %vm805_vm3, %v5551_v7  ;;  %4811 = vmatprep.mubr.msk.f32.mxu0 %vm5371_vm0, %v5370_v0 }
 0x5f2   :  { %4809 = vmatprep.subr.mxu0 %v5370_v0  ;;  %4801 = vmatpush3.msk.msra.mxu1 %vm805_vm3, %v5603_v40 }
 0x5f3   :  { %4810 = vmatpush3.msra.mxu0 %v5559_v8  ;;  %4802 = vmatprep.subr.mxu1 %v5370_v0  ;;  %v1496_v10 = vpop.permute.xlu1 %1495 }
 0x5f4   :  { %4803 = vmatpush3.msra.mxu1 %v5617_v42  ;;  %4804 = vmatprep.mubr.msk.f32.mxu1 %vm5371_vm0, %v5370_v0 }
 0x5f5   :  { %4814 = vmatprep.subr.mxu1 %v5370_v0  ;;  %4821 = vmatprep.subr.mxu0 %v5370_v0 }
 0x6b0   :  { %v5756_v52 = vpop.f32.mrf.mxu1  ;;  %v1379_v54 = vpop.f32.mrf.mxu0 }
 0x6b1   :  { %v1380_v55 = vadd.f32 %v1379_v54, %v5694_v59  ;;  %v1498_v59 = vmul.f32 %v1496_v10, %v1492_v46 }
 0x6b2   :  { %v4792_v56 = vpop.f32.mrf.mxu1  ;;  %v4799_v58 = vpop.f32.mrf.mxu0 }
 0x6b3   :  { %v1383_v61 = vadd.f32 %v5758_v53, %v1380_v55 }
 0x6b5   :  { %v1384_v62 = vmul.f32 0.5, %v1383_v61 }
 0x6b7   :  { %v1385_v1 = vsel %vm5580_vm7, %v1383_v61, %v1384_v62 }
 0x6b8   :  { %5067 = vtanh.f32 %v1385_v1 }
 0x6c5   :  { %v5068_v2 = vpop.eup %5067 }
 0x6c6   :  { %v1387_v3 = vmul.f32 0.5, %v5068_v2 }
 0x6c8   :  { %v1388_v4 = vadd.f32 0.5, %v1387_v3 }
 0x6ca   :  { %v1389_v5 = vsel %vm5580_vm7, %v5068_v2, %v1388_v4 }
 0x6cb   :  { %1396 = vrot.lane.b32.xlu0 %v1389_v5, %s5372_s7 }
 0x6cf   :  { %1391 = vrot.lane.b32.xlu0 %v800_v6, %s5373_s25 }
 0x6d3   :  { %1500 = vrot.lane.b32.xlu0 %v1498_v59, %s5373_s25 }
 0x73d   :  { %v1397_v11 = vpop.permute.xlu0 %1396 }
 0x73e   :  { %v1399_v13 = vmul.f32 %v1397_v11, %v1389_v5 }
 0x740   :  { %1401 = vrot.lane.b32.xlu1 %v1399_v13, %s5373_s25 }
 0x741   :  { %v1392_v14 = vpop.permute.xlu0 %1391 }
 0x742   :  { %v1394_v22 = vmul.f32 %v1392_v14, %v1389_v5 }
 0x745   :  { %v1501_v17 = vpop.permute.xlu0 %1500 }
 0x746   :  { %v5771_v20 = vadd.f32 %v1501_v17, %v1493_v16 }
 0x748   :  { %5069 = vtanh.f32 %v5771_v20 }
 0x755   :  { %v5070_v21 = vpop.eup %5069 }
 0x756   :  { %1506 = vrot.lane.b32.xlu0 %v5070_v21, %s5374_s13 }
 0x7b2   :  { %v1402_v23 = vpop.permute.xlu1 %1401 }
 0x7b3   :  { %v5775_v25 = vadd.f32 %v1402_v23, %v1394_v22 }
 0x7b5   :  { %5071 = vtanh.f32 %v5775_v25 }
 0x7c2   :  { %v5072_v26 = vpop.eup %5071 }
 0x7c3   :  { %1407 = vrot.lane.b32.xlu1 %v5072_v26, %s5374_s13 }
 0x7c8   :  { %v1507_v27 = vpop.permute.xlu0 %1506 }
 0x7c9   :  { %v1509_v28 = vmul.f32 %v1507_v27, %v1492_v46 }
 0x7cb   :  { %1511 = vrot.lane.b32.xlu0 %v1509_v28, %s5375_s29 }
 0x835   :  { %v1408_v38 = vpop.permute.xlu1 %1407 }
 0x836   :  { %v1410_v29 = vmul.f32 %v1408_v38, %v1389_v5 }
 0x838   :  { %1412 = vrot.lane.b32.xlu1 %v1410_v29, %s5375_s29 }
 0x83d   :  { %v1512_v30 = vpop.permute.xlu0 %1511 }
 0x83e   :  { %4812 = vmatmul.mubr.msk.f32.vlgmr.msra.gmra.mxu0 %vm801_vm4, %v1512_v30 }
 0x83f   :  { %4822 = vmatpush3.msk.msra.mxu0 %vm805_vm3, %v5646_v47  ;;  %4825 = vmatprep.mubr.msk.f32.mxu0 %vm5371_vm0, %v5370_v0 }
 0x840   :  { %4823 = vmatprep.subr.mxu0 %v5370_v0 }
 0x841   :  { %4824 = vmatpush3.msra.mxu0 %v5660_v49 }
 0x842   :  { %4835 = vmatprep.subr.mxu0 %v5370_v0 }
 0x8aa   :  { %v1413_v31 = vpop.permute.xlu1 %1412 }
 0x8ab   :  { %4805 = vmatmul.mubr.msk.f32.vlgmr.msra.gmra.mxu1 %vm801_vm4, %v1413_v31 }
 0x8ac   :  { %4815 = vmatpush3.msk.msra.mxu1 %vm805_vm3, %v5653_v48  ;;  %4818 = vmatprep.mubr.msk.f32.mxu1 %vm5371_vm0, %v5370_v0 }
 0x8ad   :  { %4816 = vmatprep.subr.mxu1 %v5370_v0 }
 0x8ae   :  { %4817 = vmatpush3.msra.mxu1 %v5674_v51 }
 0x8af   :  { %4819 = vmatmul.mubr.msk.f32.vlgmr.msra.gmra.mxu1 %vm801_vm4, %v1512_v30  ;;  %4828 = vmatprep.subr.mxu1 %v5370_v0 }
 0x8b0   :  { %4829 = vmatpush3.msk.msra.mxu1 %vm805_vm3, %v5724_v33  ;;  %4832 = vmatprep.mubr.msk.f32.mxu1 %vm5371_vm0, %v5370_v0 }
 0x8b1   :  { %4830 = vmatprep.subr.mxu1 %v5370_v0 }
 0x8b2   :  { %4831 = vmatpush3.msra.mxu1 %v5726_v34 }
 0x8b3   :  { %4842 = vmatprep.subr.mxu1 %v5370_v0 }
 0x8fe   :  { %v1581_v36 = vpop.f32.mrf.mxu0 }
 0x8ff   :  { %v1923_v37 = vadd.f32 %v1581_v36, %v413_v35 }
 0x900   :  { %v4813_v39 = vpop.f32.mrf.mxu0 }
 0x901   :  { %v1924_v5 = vmul.f32 0.5, %v1923_v37 }
 0x903   :  { %v1925_v6 = vsel %vm5580_vm7, %v1923_v37, %v1924_v5 }
 0x96b   :  { %v1482_v41 = vpop.f32.mrf.mxu1 }
 0x96d   :  { %v4806_v43 = vpop.f32.mrf.mxu1 }
 0x96f   :  { %v1651_v44 = vpop.f32.mrf.mxu1 }
 0x970   :  { %v1652_v45 = vadd.f32 %v1651_v44, %v5756_v52 }
 0x971   :  { %v4820_v46 = vpop.f32.mrf.mxu1 }
 0x972   :  { %v1655_v50 = vadd.f32 %v5712_v9, %v1652_v45 }
 0x974   :  { %v1656_v54 = vmul.f32 0.5, %v1655_v50 }
 0x976   :  { %v1657_v55 = vsel %vm5580_vm7, %v1655_v50, %v1656_v54 }
 0x977   :  { %5073 = vtanh.f32 %v1657_v55 }
 0x984   :  { %v5074_v56 = vpop.eup %5073 }
 0x985   :  { %v1659_v58 = vmul.f32 0.5, %v5074_v56 }
 0x987   :  { %v1660_v61 = vadd.f32 0.5, %v1659_v58 }
 0x989   :  { %v1661_v12 = vsel %vm5580_vm7, %v5074_v56, %v1660_v61 }
 0x98a   :  { %1664 = vrot.lane.b32.xlu1 %v1661_v12, %s5372_s7  ;;  %v1662_v52 = vmul.f32 %v1661_v12, %v5721_v32 }
 0x9fc   :  { %v1665_v62 = vpop.permute.xlu1 %1664 }
 0x9fd   :  { %v1667_v1 = vmul.f32 %v1665_v62, %v1661_v12 }
 0x9ff   :  { %1669 = vrot.lane.b32.xlu0 %v1667_v1, %s5373_s25 }
 0xa71   :  { %v1670_v2 = vpop.permute.xlu0 %1669 }
 0xa72   :  { %v5816_v3 = vadd.f32 %v1670_v2, %v1662_v52 }
 0xa74   :  { %5075 = vtanh.f32 %v5816_v3 }
 0xa75   :  { %5077 = vtanh.f32 %v1925_v6 }
 0xa81   :  { %v5076_v4 = vpop.eup %5075 }
 0xa82   :  { %1675 = vrot.lane.b32.xlu1 %v5076_v4, %s5374_s13  ;;  %v5078_v10 = vpop.eup %5077 }
 0xa83   :  { %v1927_v59 = vmul.f32 0.5, %v5078_v10 }
 0xa85   :  { %v1928_v14 = vadd.f32 0.5, %v1927_v59 }
 0xa87   :  { %v1929_v32 = vsel %vm5580_vm7, %v5078_v10, %v1928_v14 }
 0xa88   :  { %v1930_v22 = vmul.f32 %v1929_v32, %v5771_v20 }
 0xaf4   :  { %v1676_v11 = vpop.permute.xlu1 %1675 }
 0xaf5   :  { %v1678_v13 = vmul.f32 %v1676_v11, %v1661_v12  ;;  %v488_v12 = vadd.f32 %v5575_v18, %v5692_v57 }
 0xaf7   :  { %1680 = vrot.lane.b32.xlu0 %v1678_v13, %s5375_s29 }
 0xafb   :  { %1932 = vrot.lane.b32.xlu0 %v1929_v32, %s5372_s7 }
 0xb69   :  { %v1681_v16 = vpop.permute.xlu0 %1680 }
 0xb6a   :  { %4826 = vmatmul.mubr.msk.f32.vlgmr.msra.gmra.mxu0 %vm801_vm4, %v1681_v16  ;;  %4833 = vmatmul.mubr.msk.f32.vlgmr.msra.gmra.mxu1 %vm801_vm4, %v1681_v16 }
 0xb6b   :  { %4843 = vmatpush3.msk.msra.mxu1 %vm805_vm3, %v5551_v7  ;;  %4846 = vmatprep.mubr.msk.f32.mxu1 %vm5371_vm0, %v5370_v0 }
 0xb6c   :  { %4844 = vmatprep.subr.mxu1 %v5370_v0  ;;  %4836 = vmatpush3.msk.msra.mxu0 %vm805_vm3, %v5603_v40 }
 0xb6d   :  { %v1933_v17 = vpop.permute.xlu0 %1932  ;;  %4845 = vmatpush3.msra.mxu1 %v5559_v8  ;;  %4837 = vmatprep.subr.mxu0 %v5370_v0 }
 0xb6e   :  { %v1935_v21 = vmul.f32 %v1933_v17, %v1929_v32  ;;  %4838 = vmatpush3.msra.mxu0 %v5617_v42  ;;  %4839 = vmatprep.mubr.msk.f32.mxu0 %vm5371_vm0, %v5370_v0 }
 0xb6f   :  { %4849 = vmatprep.subr.mxu0 %v5370_v0  ;;  %4856 = vmatprep.subr.mxu1 %v5370_v0 }
 0xb70   :  { %1937 = vrot.lane.b32.xlu0 %v1935_v21, %s5373_s25 }
 0xbe2   :  { %v1938_v23 = vpop.permute.xlu0 %1937 }
 0xbe3   :  { %v5844_v26 = vadd.f32 %v1938_v23, %v1930_v22 }
 0xbe5   :  { %5079 = vtanh.f32 %v5844_v26 }
 0xbf2   :  { %v5080_v27 = vpop.eup %5079 }
 0xbf3   :  { %1943 = vrot.lane.b32.xlu0 %v5080_v27, %s5374_s13 }
 0xc2a   :  { %v1750_v28 = vpop.f32.mrf.mxu0  ;;  %v1820_v38 = vpop.f32.mrf.mxu1 }
 0xc2b   :  { %v1821_v29 = vadd.f32 %v1820_v38, %v1482_v41 }
 0xc2c   :  { %v4827_v30 = vpop.f32.mrf.mxu0  ;;  %v4834_v31 = vpop.f32.mrf.mxu1 }
 0xc2d   :  { %v1824_v35 = vadd.f32 %v5758_v53, %v1821_v29 }
 0xc2f   :  { %v1825_v36 = vmul.f32 0.5, %v1824_v35 }
 0xc31   :  { %v1826_v37 = vsel %vm5580_vm7, %v1824_v35, %v1825_v36 }
 0xc32   :  { %5081 = vtanh.f32 %v1826_v37 }
 0xc3f   :  { %v5082_v20 = vpop.eup %5081 }
 0xc40   :  { %v1828_v39 = vmul.f32 0.5, %v5082_v20 }
 0xc42   :  { %v1829_v43 = vadd.f32 0.5, %v1828_v39 }
 0xc44   :  { %v1830_v44 = vsel %vm5580_vm7, %v5082_v20, %v1829_v43 }
 0xc45   :  { %1833 = vrot.lane.b32.xlu1 %v1830_v44, %s5372_s7  ;;  %v1831_v55 = vmul.f32 %v1830_v44, %v5775_v25 }
 0xc65   :  { %v1944_v45 = vpop.permute.xlu0 %1943 }
 0xc66   :  { %v1946_v46 = vmul.f32 %v1944_v45, %v1929_v32 }
 0xc68   :  { %1948 = vrot.lane.b32.xlu0 %v1946_v46, %s5375_s29 }
 0xcb7   :  { %v1834_v41 = vpop.permute.xlu1 %1833 }
 0xcb8   :  { %v1836_v50 = vmul.f32 %v1834_v41, %v1830_v44 }
 0xcba   :  { %1838 = vrot.lane.b32.xlu1 %v1836_v50, %s5373_s25 }
 0xcda   :  { %v1949_v54 = vpop.permute.xlu0 %1948 }
 0xcdb   :  { %4847 = vmatmul.mubr.msk.f32.vlgmr.msra.gmra.mxu1 %vm801_vm4, %v1949_v54 }
 0xcdc   :  { %4857 = vmatpush3.msk.msra.mxu1 %vm805_vm3, %v5646_v47  ;;  %4860 = vmatprep.mubr.msk.f32.mxu1 %vm5371_vm0, %v5370_v0 }
 0xcdd   :  { %4858 = vmatprep.subr.mxu1 %v5370_v0 }
 0xcde   :  { %4859 = vmatpush3.msra.mxu1 %v5660_v49 }
 0xcdf   :  { %4870 = vmatprep.subr.mxu1 %v5370_v0 }
 0xd2c   :  { %v1839_v56 = vpop.permute.xlu1 %1838 }
 0xd2d   :  { %v5865_v58 = vadd.f32 %v1839_v56, %v1831_v55 }
 0xd2f   :  { %5083 = vtanh.f32 %v5865_v58 }
 0xd3c   :  { %v5084_v61 = vpop.eup %5083 }
 0xd3d   :  { %1844 = vrot.lane.b32.xlu1 %v5084_v61, %s5374_s13 }
 0xd9b   :  { %v2018_v62 = vpop.f32.mrf.mxu1 }
 0xd9c   :  { %v2360_v1 = vadd.f32 %v2018_v62, %v488_v12 }
 0xd9d   :  { %v4848_v52 = vpop.f32.mrf.mxu1 }
 0xd9e   :  { %v2361_v30 = vmul.f32 0.5, %v2360_v1 }
 0xda0   :  { %v2362_v31 = vsel %vm5580_vm7, %v2360_v1, %v2361_v30 }
 0xdaf   :  { %v1845_v2 = vpop.permute.xlu1 %1844 }
 0xdb0   :  { %v1847_v4 = vmul.f32 %v1845_v2, %v1830_v44 }
 0xdb2   :  { %1849 = vrot.lane.b32.xlu1 %v1847_v4, %s5375_s29 }
 0xe24   :  { %v1850_v5 = vpop.permute.xlu1 %1849 }
 0xe25   :  { %4840 = vmatmul.mubr.msk.f32.vlgmr.msra.gmra.mxu0 %vm801_vm4, %v1850_v5 }
 0xe26   :  { %4850 = vmatpush3.msk.msra.mxu0 %vm805_vm3, %v5653_v48  ;;  %4853 = vmatprep.mubr.msk.f32.mxu0 %vm5371_vm0, %v5370_v0 }
 0xe27   :  { %4851 = vmatprep.subr.mxu0 %v5370_v0 }
 0xe28   :  { %4852 = vmatpush3.msra.mxu0 %v5674_v51 }
 0xe29   :  { %4854 = vmatmul.mubr.msk.f32.vlgmr.msra.gmra.mxu0 %vm801_vm4, %v1949_v54  ;;  %4863 = vmatprep.subr.mxu0 %v5370_v0 }
 0xe2a   :  { %4864 = vmatpush3.msk.msra.mxu0 %vm805_vm3, %v5724_v33  ;;  %4867 = vmatprep.mubr.msk.f32.mxu0 %vm5371_vm0, %v5370_v0 }
 0xe2b   :  { %4865 = vmatprep.subr.mxu0 %v5370_v0 }
 0xe2c   :  { %4866 = vmatpush3.msra.mxu0 %v5726_v34 }
 0xe2d   :  { %4877 = vmatprep.subr.mxu0 %v5370_v0 }
 0xee5   :  { %v1919_v57 = vpop.f32.mrf.mxu0 }
 0xee7   :  { %v4841_v25 = vpop.f32.mrf.mxu0 }
 0xee9   :  { %v2088_v6 = vpop.f32.mrf.mxu0 }
 0xeea   :  { %v2089_v10 = vadd.f32 %v2088_v6, %v1750_v28 }
 0xeeb   :  { %v4855_v59 = vpop.f32.mrf.mxu0 }
 0xeec   :  { %v2092_v11 = vadd.f32 %v5712_v9, %v2089_v10 }
 0xeee   :  { %v2093_v13 = vmul.f32 0.5, %v2092_v11 }
 0xef0   :  { %v2094_v14 = vsel %vm5580_vm7, %v2092_v11, %v2093_v13 }
 0xef1   :  { %5085 = vtanh.f32 %v2094_v14 }
 0xefe   :  { %v5086_v32 = vpop.eup %5085 }
 0xeff   :  { %v2096_v16 = vmul.f32 0.5, %v5086_v32 }
 0xf01   :  { %v2097_v17 = vadd.f32 0.5, %v2096_v16 }
 0xf03   :  { %v2098_v21 = vsel %vm5580_vm7, %v5086_v32, %v2097_v17  ;;  %v563_v32 = vadd.f32 %v5575_v18, %v5573_v15 }
 0xf04   :  { %2101 = vrot.lane.b32.xlu1 %v2098_v21, %s5372_s7  ;;  %v2099_v27 = vmul.f32 %v2098_v21, %v5816_v3 }
 0xf76   :  { %v2102_v22 = vpop.permute.xlu1 %2101 }
 0xf77   :  { %v2104_v23 = vmul.f32 %v2102_v22, %v2098_v21 }
 0xf79   :  { %2106 = vrot.lane.b32.xlu0 %v2104_v23, %s5373_s25 }
 0xfeb   :  { %v2107_v28 = vpop.permute.xlu0 %2106 }
 0xfec   :  { %v5896_v38 = vadd.f32 %v2107_v28, %v2099_v27 }
 0xfee   :  { %5087 = vtanh.f32 %v5896_v38 }
 0xfef   :  { %5089 = vtanh.f32 %v2362_v31 }
 0xffb   :  { %v5088_v29 = vpop.eup %5087 }
 0xffc   :  { %2112 = vrot.lane.b32.xlu1 %v5088_v29, %s5374_s13  ;;  %v5090_v35 = vpop.eup %5089 }
 0xffd   :  { %v2364_v36 = vmul.f32 0.5, %v5090_v35 }
 0xfff   :  { %v2365_v39 = vadd.f32 0.5, %v2364_v36 }
0x1001   :  { %v2366_v3 = vsel %vm5580_vm7, %v5090_v35, %v2365_v39 }
0x106e   :  { %v2113_v37 = vpop.permute.xlu1 %2112 }
0x106f   :  { %v2115_v20 = vmul.f32 %v2113_v37, %v2098_v21 }
0x1071   :  { %2117 = vrot.lane.b32.xlu0 %v2115_v20, %s5375_s29 }
0x1075   :  { %2369 = vrot.lane.b32.xlu0 %v2366_v3, %s5372_s7 }
0x10e3   :  { %v2118_v43 = vpop.permute.xlu0 %2117 }
0x10e4   :  { %4861 = vmatmul.mubr.msk.f32.vlgmr.msra.gmra.mxu1 %vm801_vm4, %v2118_v43  ;;  %4868 = vmatmul.mubr.msk.f32.vlgmr.msra.gmra.mxu0 %vm801_vm4, %v2118_v43 }
0x10e5   :  { %4878 = vmatpush3.msk.msra.mxu0 %vm805_vm3, %v5551_v7  ;;  %4881 = vmatprep.mubr.msk.f32.mxu0 %vm5371_vm0, %v5370_v0  ;;  %v2367_v7 = vmul.f32 %v2366_v3, %v5844_v26 }
0x10e6   :  { %4879 = vmatprep.subr.mxu0 %v5370_v0  ;;  %4871 = vmatpush3.msk.msra.mxu1 %vm805_vm3, %v5603_v40 }
0x10e7   :  { %v2370_v44 = vpop.permute.xlu0 %2369  ;;  %4880 = vmatpush3.msra.mxu0 %v5559_v8  ;;  %4872 = vmatprep.subr.mxu1 %v5370_v0 }
0x10e8   :  { %v2372_v45 = vmul.f32 %v2370_v44, %v2366_v3  ;;  %4873 = vmatpush3.msra.mxu1 %v5617_v42  ;;  %4874 = vmatprep.mubr.msk.f32.mxu1 %vm5371_vm0, %v5370_v0 }
0x10e9   :  { %4884 = vmatprep.subr.mxu1 %v5370_v0  ;;  %4891 = vmatprep.subr.mxu0 %v5370_v0 }
0x10ea   :  { %2374 = vrot.lane.b32.xlu0 %v2372_v45, %s5373_s25 }
0x115c   :  { %v2375_v46 = vpop.permute.xlu0 %2374 }
0x115d   :  { %v5924_v41 = vadd.f32 %v2375_v46, %v2367_v7 }
0x115f   :  { %5091 = vtanh.f32 %v5924_v41 }
0x116c   :  { %v5092_v8 = vpop.eup %5091 }
0x116d   :  { %2380 = vrot.lane.b32.xlu0 %v5092_v8, %s5374_s13 }
0x11a4   :  { %v2187_v50 = vpop.f32.mrf.mxu1  ;;  %v2257_v54 = vpop.f32.mrf.mxu0 }
0x11a5   :  { %v2258_v55 = vadd.f32 %v2257_v54, %v1919_v57 }
0x11a6   :  { %v4862_v56 = vpop.f32.mrf.mxu1  ;;  %v4869_v61 = vpop.f32.mrf.mxu0 }
0x11a7   :  { %v2261_v12 = vadd.f32 %v5758_v53, %v2258_v55 }
0x11a9   :  { %v2262_v62 = vmul.f32 0.5, %v2261_v12 }
0x11ab   :  { %v2263_v1 = vsel %vm5580_vm7, %v2261_v12, %v2262_v62 }
0x11ac   :  { %5093 = vtanh.f32 %v2263_v1  ;;  %v5991_v1 = vld [vmem:[%s6345_s4 + $0x8] sm:$0x7f] }
0x11b9   :  { %v5094_v26 = vpop.eup %5093 }
0x11ba   :  { %v2265_v52 = vmul.f32 0.5, %v5094_v26 }
0x11bc   :  { %v2266_v2 = vadd.f32 0.5, %v2265_v52  ;;  %v6003_v52 = vld [vmem:[%s6345_s4] sm:$0xff] }
0x11be   :  { %v2267_v4 = vsel %vm5580_vm7, %v5094_v26, %v2266_v2 }
0x11bf   :  { %2270 = vrot.lane.b32.xlu1 %v2267_v4, %s5372_s7  ;;  %v2268_v59 = vmul.f32 %v2267_v4, %v5865_v58 }
0x11df   :  { %v2381_v5 = vpop.permute.xlu0 %2380 }
0x11e0   :  { %v2383_v25 = vmul.f32 %v2381_v5, %v2366_v3 }
0x11e2   :  { %2385 = vrot.lane.b32.xlu0 %v2383_v25, %s5375_s29 }
0x1231   :  { %v2271_v57 = vpop.permute.xlu1 %2270 }
0x1232   :  { %v2273_v6 = vmul.f32 %v2271_v57, %v2267_v4 }
0x1234   :  { %2275 = vrot.lane.b32.xlu1 %v2273_v6, %s5373_s25 }
0x1254   :  { %v2386_v10 = vpop.permute.xlu0 %2385 }
0x1255   :  { %4882 = vmatmul.mubr.msk.f32.vlgmr.msra.gmra.mxu0 %vm801_vm4, %v2386_v10 }
0x1256   :  { %4892 = vmatpush3.msk.msra.mxu0 %vm805_vm3, %v5646_v47  ;;  %4895 = vmatprep.mubr.msk.f32.mxu0 %vm5371_vm0, %v5370_v0 }
0x1257   :  { %4893 = vmatprep.subr.mxu0 %v5370_v0 }
0x1258   :  { %4894 = vmatpush3.msra.mxu0 %v5660_v49 }
0x1259   :  { %4905 = vmatprep.subr.mxu0 %v5370_v0 }
0x12a6   :  { %v2276_v11 = vpop.permute.xlu1 %2275 }
0x12a7   :  { %v5945_v13 = vadd.f32 %v2276_v11, %v2268_v59 }
0x12a9   :  { %5095 = vtanh.f32 %v5945_v13 }
0x12b6   :  { %v5096_v14 = vpop.eup %5095 }
0x12b7   :  { %2281 = vrot.lane.b32.xlu1 %v5096_v14, %s5374_s13 }
0x1315   :  { %v2455_v16 = vpop.f32.mrf.mxu0 }
0x1316   :  { %v2797_v17 = vadd.f32 %v2455_v16, %v563_v32 }
0x1317   :  { %v4883_v21 = vpop.f32.mrf.mxu0 }
0x1318   :  { %v2798_v8 = vmul.f32 0.5, %v2797_v17 }
0x1329   :  { %v2282_v22 = vpop.permute.xlu1 %2281 }
0x132a   :  { %v2284_v23 = vmul.f32 %v2282_v22, %v2267_v4 }
0x132c   :  { %2286 = vrot.lane.b32.xlu1 %v2284_v23, %s5375_s29 }
0x139e   :  { %v2287_v27 = vpop.permute.xlu1 %2286 }
0x139f   :  { %4875 = vmatmul.mubr.msk.f32.vlgmr.msra.gmra.mxu1 %vm801_vm4, %v2287_v27 }
0x13a0   :  { %4885 = vmatpush3.msk.msra.mxu1 %vm805_vm3, %v5653_v48  ;;  %4888 = vmatprep.mubr.msk.f32.mxu1 %vm5371_vm0, %v5370_v0 }
0x13a1   :  { %4886 = vmatprep.subr.mxu1 %v5370_v0 }
0x13a2   :  { %4887 = vmatpush3.msra.mxu1 %v5674_v51 }
0x13a3   :  { %4889 = vmatmul.mubr.msk.f32.vlgmr.msra.gmra.mxu1 %vm801_vm4, %v2386_v10  ;;  %4898 = vmatprep.subr.mxu1 %v5370_v0 }
0x13a4   :  { %4899 = vmatpush3.msk.msra.mxu1 %vm805_vm3, %v5724_v33  ;;  %4902 = vmatprep.mubr.msk.f32.mxu1 %vm5371_vm0, %v5370_v0 }
0x13a5   :  { %4900 = vmatprep.subr.mxu1 %v5370_v0 }
0x13a6   :  { %4901 = vmatpush3.msra.mxu1 %v5726_v34 }
0x13a7   :  { %4912 = vmatprep.subr.mxu1 %v5370_v0 }
0x145f   :  { %v2356_v15 = vpop.f32.mrf.mxu1 }
0x1461   :  { %v4876_v18 = vpop.f32.mrf.mxu1 }
0x1463   :  { %v2525_v58 = vpop.f32.mrf.mxu1 }
0x1464   :  { %v2526_v28 = vadd.f32 %v2525_v58, %v2187_v50  ;;  %v2799_v50 = vsel %vm5580_vm7, %v2797_v17, %v2798_v8 }
0x1465   :  { %v4890_v29 = vpop.f32.mrf.mxu1 }
0x1466   :  { %v2529_v30 = vadd.f32 %v5712_v9, %v2526_v28 }
0x1468   :  { %v2530_v31 = vmul.f32 0.5, %v2529_v30 }
0x146a   :  { %v2531_v35 = vsel %vm5580_vm7, %v2529_v30, %v2530_v31 }
0x146b   :  { %5097 = vtanh.f32 %v2531_v35 }
0x1478   :  { %v5098_v36 = vpop.eup %5097 }
0x1479   :  { %v2533_v37 = vmul.f32 0.5, %v5098_v36 }
0x147b   :  { %v2534_v20 = vadd.f32 0.5, %v2533_v37 }
0x147d   :  { %v2535_v39 = vsel %vm5580_vm7, %v5098_v36, %v2534_v20 }
0x147e   :  { %2538 = vrot.lane.b32.xlu1 %v2535_v39, %s5372_s7  ;;  %v2536_v44 = vmul.f32 %v2535_v39, %v5896_v38 }
0x14f0   :  { %v2539_v3 = vpop.permute.xlu1 %2538 }
0x14f1   :  { %v2541_v43 = vmul.f32 %v2539_v3, %v2535_v39 }
0x14f3   :  { %2543 = vrot.lane.b32.xlu0 %v2541_v43, %s5373_s25 }
0x1565   :  { %v2544_v45 = vpop.permute.xlu0 %2543 }
0x1566   :  { %v5976_v7 = vadd.f32 %v2544_v45, %v2536_v44 }
0x1568   :  { %5099 = vtanh.f32 %v5976_v7 }
0x1569   :  { %5101 = vtanh.f32 %v2799_v50 }
0x1575   :  { %v5100_v46 = vpop.eup %5099 }
0x1576   :  { %2549 = vrot.lane.b32.xlu1 %v5100_v46, %s5374_s13  ;;  %v5102_v54 = vpop.eup %5101 }
0x1577   :  { %v2801_v55 = vmul.f32 0.5, %v5102_v54 }
0x1579   :  { %v2802_v12 = vadd.f32 0.5, %v2801_v55 }
0x157b   :  { %v2803_v38 = vsel %vm5580_vm7, %v5102_v54, %v2802_v12 }
0x15e8   :  { %v2550_v56 = vpop.permute.xlu1 %2549 }
0x15e9   :  { %v2552_v61 = vmul.f32 %v2550_v56, %v2535_v39 }
0x15eb   :  { %2554 = vrot.lane.b32.xlu0 %v2552_v61, %s5375_s29 }
0x15ef   :  { %2806 = vrot.lane.b32.xlu0 %v2803_v38, %s5372_s7 }
0x165d   :  { %v2555_v62 = vpop.permute.xlu0 %2554 }
0x165e   :  { %4896 = vmatmul.mubr.msk.f32.vlgmr.msra.gmra.mxu0 %vm801_vm4, %v2555_v62  ;;  %4903 = vmatmul.mubr.msk.f32.vlgmr.msra.gmra.mxu1 %vm801_vm4, %v2555_v62 }
0x165f   :  { %4913 = vmatpush3.msk.msra.mxu1 %vm805_vm3, %v5991_v1  ;;  %4916 = vmatprep.mubr.msk.f32.mxu1 %vm5371_vm0, %v5370_v0 }
0x1660   :  { %4914 = vmatprep.subr.mxu1 %v5370_v0  ;;  %4906 = vmatpush3.msk.msra.mxu0 %vm805_vm3, %v5603_v40  ;;  %v2804_v40 = vmul.f32 %v2803_v38, %v5924_v41 }
0x1661   :  { %v2807_v26 = vpop.permute.xlu0 %2806  ;;  %4915 = vmatpush3.msra.mxu1 %v6003_v52  ;;  %4907 = vmatprep.subr.mxu0 %v5370_v0 }
0x1662   :  { %v2809_v2 = vmul.f32 %v2807_v26, %v2803_v38  ;;  %4908 = vmatpush3.msra.mxu0 %v5617_v42  ;;  %4909 = vmatprep.mubr.msk.f32.mxu0 %vm5371_vm0, %v5370_v0 }
0x1663   :  { %4919 = vmatprep.subr.mxu0 %v5370_v0  ;;  %4926 = vmatprep.subr.mxu1 %v5370_v0 }
0x1664   :  { %2811 = vrot.lane.b32.xlu0 %v2809_v2, %s5373_s25 }
0x16d6   :  { %v2812_v4 = vpop.permute.xlu0 %2811 }
0x16d7   :  { %v6014_v5 = vadd.f32 %v2812_v4, %v2804_v40 }
0x16d9   :  { %5103 = vtanh.f32 %v6014_v5 }
0x16e6   :  { %v5104_v25 = vpop.eup %5103 }
0x16e7   :  { %2817 = vrot.lane.b32.xlu0 %v5104_v25, %s5374_s13 }
0x171e   :  { %v2624_v42 = vpop.f32.mrf.mxu0  ;;  %v2694_v57 = vpop.f32.mrf.mxu1 }
0x171f   :  { %v2695_v6 = vadd.f32 %v2694_v57, %v2356_v15 }
0x1720   :  { %v4897_v10 = vpop.f32.mrf.mxu0  ;;  %v4904_v59 = vpop.f32.mrf.mxu1 }
0x1721   :  { %v2698_v11 = vadd.f32 %v5758_v53, %v2695_v6  ;;  %v6091_v10 = vld [vmem:[#allocation8] sm:$0xff] }
0x1723   :  { %v2699_v14 = vmul.f32 0.5, %v2698_v11 }
0x1725   :  { %v2700_v32 = vsel %vm5580_vm7, %v2698_v11, %v2699_v14 }
0x1726   :  { %5105 = vtanh.f32 %v2700_v32 }
0x1733   :  { %v5106_v41 = vpop.eup %5105 }
0x1734   :  { %v2702_v16 = vmul.f32 0.5, %v5106_v41 }
0x1736   :  { %v2703_v17 = vadd.f32 0.5, %v2702_v16 }
0x1738   :  { %v2704_v21 = vsel %vm5580_vm7, %v5106_v41, %v2703_v17 }
0x1739   :  { %2707 = vrot.lane.b32.xlu1 %v2704_v21, %s5372_s7  ;;  %v2705_v58 = vmul.f32 %v2704_v21, %v5945_v13 }
0x1759   :  { %v2818_v22 = vpop.permute.xlu0 %2817 }
0x175a   :  { %v2820_v23 = vmul.f32 %v2818_v22, %v2803_v38 }
0x175c   :  { %2822 = vrot.lane.b32.xlu0 %v2820_v23, %s5375_s29 }
0x17ab   :  { %v2708_v27 = vpop.permute.xlu1 %2707 }
0x17ac   :  { %v2710_v15 = vmul.f32 %v2708_v27, %v2704_v21 }
0x17ae   :  { %2712 = vrot.lane.b32.xlu1 %v2710_v15, %s5373_s25 }
0x17ce   :  { %v2823_v18 = vpop.permute.xlu0 %2822 }
0x17cf   :  { %4917 = vmatmul.mubr.msk.f32.vlgmr.msra.gmra.mxu1 %vm801_vm4, %v2823_v18 }
0x17d0   :  { %4927 = vmatpush3.msk.msra.mxu1 %vm805_vm3, %v5646_v47  ;;  %4930 = vmatprep.mubr.msk.f32.mxu1 %vm5371_vm0, %v5370_v0  ;;  %v6039_v47 = vld [vmem:[#allocation10] ss:$0 sm:$0xff] }
0x17d1   :  { %4928 = vmatprep.subr.mxu1 %v5370_v0  ;;  %v638_v31 = vadd.f32 %v6039_v47, %v5696_v60 }
0x17d2   :  { %4929 = vmatpush3.msra.mxu1 %v5660_v49 }
0x17d3   :  { %4940 = vmatprep.subr.mxu1 %v5370_v0 }
0x1820   :  { %v2713_v28 = vpop.permute.xlu1 %2712 }
0x1821   :  { %v6035_v29 = vadd.f32 %v2713_v28, %v2705_v58 }
0x1823   :  { %5107 = vtanh.f32 %v6035_v29 }
0x1830   :  { %v5108_v30 = vpop.eup %5107 }
0x1831   :  { %2718 = vrot.lane.b32.xlu1 %v5108_v30, %s5374_s13 }
0x188f   :  { %v2892_v35 = vpop.f32.mrf.mxu1 }
0x1890   :  { %v3234_v36 = vadd.f32 %v2892_v35, %v638_v31 }
0x1891   :  { %v4918_v49 = vpop.f32.mrf.mxu1 }
0x1892   :  { %v3235_v12 = vmul.f32 0.5, %v3234_v36  ;;  %v6116_v49 = vld [vmem:[%s6347_s6 + $0x8] sm:$0x7f] }
0x1894   :  { %v3236_v38 = vsel %vm5580_vm7, %v3234_v36, %v3235_v12 }
0x18a3   :  { %v2719_v37 = vpop.permute.xlu1 %2718 }
0x18a4   :  { %v2721_v20 = vmul.f32 %v2719_v37, %v2704_v21  ;;  %v6126_v37 = vld [vmem:[%s6347_s6] sm:$0xff] }
0x18a6   :  { %2723 = vrot.lane.b32.xlu1 %v2721_v20, %s5375_s29 }
0x1918   :  { %v2724_v13 = vpop.permute.xlu1 %2723 }
0x1919   :  { %4910 = vmatmul.mubr.msk.f32.vlgmr.msra.gmra.mxu0 %vm801_vm4, %v2724_v13 }
0x191a   :  { %4920 = vmatpush3.msk.msra.mxu0 %vm805_vm3, %v5653_v48  ;;  %4923 = vmatprep.mubr.msk.f32.mxu0 %vm5371_vm0, %v5370_v0 }
0x191b   :  { %4921 = vmatprep.subr.mxu0 %v5370_v0 }
0x191c   :  { %4922 = vmatpush3.msra.mxu0 %v5674_v51 }
0x191d   :  { %4924 = vmatmul.mubr.msk.f32.vlgmr.msra.gmra.mxu0 %vm801_vm4, %v2823_v18  ;;  %4933 = vmatprep.subr.mxu0 %v5370_v0 }
0x191e   :  { %4934 = vmatpush3.msk.msra.mxu0 %vm805_vm3, %v5724_v33  ;;  %4937 = vmatprep.mubr.msk.f32.mxu0 %vm5371_vm0, %v5370_v0 }
0x191f   :  { %4935 = vmatprep.subr.mxu0 %v5370_v0 }
0x1920   :  { %4936 = vmatpush3.msra.mxu0 %v5726_v34 }
0x1921   :  { %4947 = vmatprep.subr.mxu0 %v5370_v0 }
0x19d9   :  { %v2793_v48 = vpop.f32.mrf.mxu0 }
0x19db   :  { %v4911_v60 = vpop.f32.mrf.mxu0 }
0x19dd   :  { %v2962_v39 = vpop.f32.mrf.mxu0 }
0x19de   :  { %v2963_v51 = vadd.f32 %v2962_v39, %v2624_v42  ;;  %v6085_v42 = vld [vmem:[#allocation8 + $0x8] sm:$0x7f]  ;;  %v713_v39 = vadd.f32 %v6039_v47, %v5577_v19 }
0x19df   :  { %v4925_v3 = vpop.f32.mrf.mxu0  ;;  %v6152_v19 = vld [vmem:[%s6346_s5] sm:$0xff] }
0x19e0   :  { %v2966_v43 = vadd.f32 %v5712_v9, %v2963_v51 }
0x19e2   :  { %v2967_v44 = vmul.f32 0.5, %v2966_v43 }
0x19e4   :  { %v2968_v33 = vsel %vm5580_vm7, %v2966_v43, %v2967_v44 }
0x19e5   :  { %5109 = vtanh.f32 %v2968_v33 }
0x19f2   :  { %v5110_v45 = vpop.eup %5109 }
0x19f3   :  { %v2970_v46 = vmul.f32 0.5, %v5110_v45 }
0x19f5   :  { %v2971_v8 = vadd.f32 0.5, %v2970_v46  ;;  %v6157_v46 = vld [vmem:[#allocation7 + $0x8] sm:$0x7f] }
0x19f7   :  { %v2972_v34 = vsel %vm5580_vm7, %v5110_v45, %v2971_v8  ;;  %v6164_v8 = vld [vmem:[#allocation7] sm:$0xff] }
0x19f8   :  { %2975 = vrot.lane.b32.xlu1 %v2972_v34, %s5372_s7  ;;  %v2973_v55 = vmul.f32 %v2972_v34, %v5976_v7 }
0x1a6a   :  { %v2976_v50 = vpop.permute.xlu1 %2975 }
0x1a6b   :  { %v2978_v54 = vmul.f32 %v2976_v50, %v2972_v34 }
0x1a6d   :  { %2980 = vrot.lane.b32.xlu0 %v2978_v54, %s5373_s25 }
0x1adf   :  { %v2981_v9 = vpop.permute.xlu0 %2980 }
0x1ae0   :  { %v6068_v56 = vadd.f32 %v2981_v9, %v2973_v55 }
0x1ae2   :  { %5111 = vtanh.f32 %v6068_v56 }
0x1ae3   :  { %5113 = vtanh.f32 %v3236_v38 }
0x1aef   :  { %v5112_v61 = vpop.eup %5111 }
0x1af0   :  { %2986 = vrot.lane.b32.xlu1 %v5112_v61, %s5374_s13  ;;  %v5114_v62 = vpop.eup %5113  ;;  %v6168_v61 = vld [vmem:[#allocation11] ss:$0 sm:$0xff] }
0x1af1   :  { %v3238_v26 = vmul.f32 0.5, %v5114_v62 }
0x1af3   :  { %v3239_v4 = vadd.f32 0.5, %v3238_v26 }
0x1af5   :  { %v3240_v7 = vsel %vm5580_vm7, %v5114_v62, %v3239_v4 }
0x1af6   :  { %v3241_v59 = vmul.f32 %v3240_v7, %v6014_v5 }
0x1b62   :  { %v2987_v2 = vpop.permute.xlu1 %2986 }
0x1b63   :  { %v2989_v40 = vmul.f32 %v2987_v2, %v2972_v34 }
0x1b65   :  { %2991 = vrot.lane.b32.xlu0 %v2989_v40, %s5375_s29 }
0x1b69   :  { %3243 = vrot.lane.b32.xlu0 %v3240_v7, %s5372_s7 }
0x1bd7   :  { %v2992_v25 = vpop.permute.xlu0 %2991 }
0x1bd8   :  { %4931 = vmatmul.mubr.msk.f32.vlgmr.msra.gmra.mxu1 %vm801_vm4, %v2992_v25  ;;  %4938 = vmatmul.mubr.msk.f32.vlgmr.msra.gmra.mxu0 %vm801_vm4, %v2992_v25 }
0x1bd9   :  { %4948 = vmatpush3.msk.msra.mxu0 %vm805_vm3, %v5991_v1  ;;  %4951 = vmatprep.mubr.msk.f32.mxu0 %vm5371_vm0, %v5370_v0 }
0x1bda   :  { %4949 = vmatprep.subr.mxu0 %v5370_v0  ;;  %4941 = vmatpush3.msk.msra.mxu1 %vm805_vm3, %v6085_v42 }
0x1bdb   :  { %v3244_v57 = vpop.permute.xlu0 %3243  ;;  %4950 = vmatpush3.msra.mxu0 %v6003_v52  ;;  %4942 = vmatprep.subr.mxu1 %v5370_v0 }
0x1bdc   :  { %v3246_v6 = vmul.f32 %v3244_v57, %v3240_v7  ;;  %4943 = vmatpush3.msra.mxu1 %v6091_v10  ;;  %4944 = vmatprep.mubr.msk.f32.mxu1 %vm5371_vm0, %v5370_v0 }
0x1bdd   :  { %4954 = vmatprep.subr.mxu1 %v5370_v0  ;;  %4961 = vmatprep.subr.mxu0 %v5370_v0 }
0x1bde   :  { %3248 = vrot.lane.b32.xlu0 %v3246_v6, %s5373_s25 }
0x1c50   :  { %v3249_v11 = vpop.permute.xlu0 %3248 }
0x1c51   :  { %v6100_v14 = vadd.f32 %v3249_v11, %v3241_v59 }
0x1c53   :  { %5115 = vtanh.f32 %v6100_v14 }
0x1c60   :  { %v5116_v32 = vpop.eup %5115 }
0x1c61   :  { %3254 = vrot.lane.b32.xlu0 %v5116_v32, %s5374_s13 }
0x1c98   :  { %v3061_v41 = vpop.f32.mrf.mxu1  ;;  %v3131_v16 = vpop.f32.mrf.mxu0 }
0x1c99   :  { %v3132_v17 = vadd.f32 %v3131_v16, %v2793_v48 }
0x1c9a   :  { %v4932_v21 = vpop.f32.mrf.mxu1  ;;  %v4939_v22 = vpop.f32.mrf.mxu0 }
0x1c9b   :  { %v3135_v23 = vadd.f32 %v5758_v53, %v3132_v17 }
0x1c9d   :  { %v3136_v27 = vmul.f32 0.5, %v3135_v23 }
0x1c9f   :  { %v3137_v15 = vsel %vm5580_vm7, %v3135_v23, %v3136_v27 }
0x1ca0   :  { %5117 = vtanh.f32 %v3137_v15 }
0x1cad   :  { %v5118_v5 = vpop.eup %5117 }
0x1cae   :  { %v3139_v18 = vmul.f32 0.5, %v5118_v5 }
0x1cb0   :  { %v3140_v58 = vadd.f32 0.5, %v3139_v18 }
0x1cb2   :  { %v3141_v28 = vsel %vm5580_vm7, %v5118_v5, %v3140_v58 }
0x1cb3   :  { %3144 = vrot.lane.b32.xlu1 %v3141_v28, %s5372_s7  ;;  %v3142_v20 = vmul.f32 %v3141_v28, %v6035_v29  ;;  %v6142_v29 = vld [vmem:[%s6346_s5 + $0x8] sm:$0x7f] }
0x1cd3   :  { %v3255_v30 = vpop.permute.xlu0 %3254 }
0x1cd4   :  { %v3257_v31 = vmul.f32 %v3255_v30, %v3240_v7 }
0x1cd6   :  { %3259 = vrot.lane.b32.xlu0 %v3257_v31, %s5375_s29 }
0x1d25   :  { %v3145_v35 = vpop.permute.xlu1 %3144 }
0x1d26   :  { %v3147_v36 = vmul.f32 %v3145_v35, %v3141_v28 }
0x1d28   :  { %3149 = vrot.lane.b32.xlu1 %v3147_v36, %s5373_s25 }
0x1d48   :  { %v3260_v53 = vpop.permute.xlu0 %3259 }
0x1d49   :  { %4952 = vmatmul.mubr.msk.f32.vlgmr.msra.gmra.mxu0 %vm801_vm4, %v3260_v53 }
0x1d4a   :  { %4962 = vmatpush3.msk.msra.mxu0 %vm805_vm3, %v6116_v49  ;;  %4965 = vmatprep.mubr.msk.f32.mxu0 %vm5371_vm0, %v5370_v0 }
0x1d4b   :  { %4963 = vmatprep.subr.mxu0 %v5370_v0 }
0x1d4c   :  { %4964 = vmatpush3.msra.mxu0 %v6126_v37 }
0x1d4d   :  { %4975 = vmatprep.subr.mxu0 %v5370_v0 }
0x1d9a   :  { %v3150_v13 = vpop.permute.xlu1 %3149 }
0x1d9b   :  { %v6131_v48 = vadd.f32 %v3150_v13, %v3142_v20 }
0x1d9d   :  { %5119 = vtanh.f32 %v6131_v48 }
0x1daa   :  { %v5120_v60 = vpop.eup %5119 }
0x1dab   :  { %3155 = vrot.lane.b32.xlu1 %v5120_v60, %s5374_s13 }
0x1e09   :  { %v3329_v51 = vpop.f32.mrf.mxu0 }
0x1e0a   :  { %v3671_v3 = vadd.f32 %v3329_v51, %v713_v39 }
0x1e0b   :  { %v4953_v43 = vpop.f32.mrf.mxu0 }
0x1e0c   :  { %v3672_v32 = vmul.f32 0.5, %v3671_v3 }
0x1e1d   :  { %v3156_v44 = vpop.permute.xlu1 %3155 }
0x1e1e   :  { %v3158_v33 = vmul.f32 %v3156_v44, %v3141_v28 }
0x1e20   :  { %3160 = vrot.lane.b32.xlu1 %v3158_v33, %s5375_s29 }
0x1e92   :  { %v3161_v45 = vpop.permute.xlu1 %3160 }
0x1e93   :  { %4945 = vmatmul.mubr.msk.f32.vlgmr.msra.gmra.mxu1 %vm801_vm4, %v3161_v45 }
0x1e94   :  { %4955 = vmatpush3.msk.msra.mxu1 %vm805_vm3, %v6142_v29  ;;  %4958 = vmatprep.mubr.msk.f32.mxu1 %vm5371_vm0, %v5370_v0 }
0x1e95   :  { %4956 = vmatprep.subr.mxu1 %v5370_v0 }
0x1e96   :  { %4957 = vmatpush3.msra.mxu1 %v6152_v19 }
0x1e97   :  { %4959 = vmatmul.mubr.msk.f32.vlgmr.msra.gmra.mxu1 %vm801_vm4, %v3260_v53  ;;  %4968 = vmatprep.subr.mxu1 %v5370_v0  ;;  %v6212_v53 = vld [vmem:[#allocation13] ss:$0 sm:$0xff] }
0x1e98   :  { %4969 = vmatpush3.msk.msra.mxu1 %vm805_vm3, %v6157_v46  ;;  %4972 = vmatprep.mubr.msk.f32.mxu1 %vm5371_vm0, %v5370_v0 }
0x1e99   :  { %4970 = vmatprep.subr.mxu1 %v5370_v0 }
0x1e9a   :  { %4971 = vmatpush3.msra.mxu1 %v6164_v8 }
0x1e9b   :  { %4982 = vmatprep.subr.mxu1 %v5370_v0 }
0x1f53   :  { %v3230_v34 = vpop.f32.mrf.mxu1 }
0x1f55   :  { %v4946_v50 = vpop.f32.mrf.mxu1 }
0x1f57   :  { %v3399_v54 = vpop.f32.mrf.mxu1 }
0x1f58   :  { %v3400_v55 = vadd.f32 %v3399_v54, %v3061_v41  ;;  %v3673_v41 = vsel %vm5580_vm7, %v3671_v3, %v3672_v32 }
0x1f59   :  { %v4960_v9 = vpop.f32.mrf.mxu1 }
0x1f5a   :  { %v3403_v12 = vadd.f32 %v6168_v61, %v3400_v55 }
0x1f5c   :  { %v3404_v38 = vmul.f32 0.5, %v3403_v12 }
0x1f5e   :  { %v3405_v62 = vsel %vm5580_vm7, %v3403_v12, %v3404_v38 }
0x1f5f   :  { %5121 = vtanh.f32 %v3405_v62 }
0x1f6c   :  { %v5122_v26 = vpop.eup %5121 }
0x1f6d   :  { %v3407_v2 = vmul.f32 0.5, %v5122_v26 }
0x1f6f   :  { %v3408_v40 = vadd.f32 0.5, %v3407_v2 }
0x1f71   :  { %v3409_v4 = vsel %vm5580_vm7, %v5122_v26, %v3408_v40 }
0x1f72   :  { %3412 = vrot.lane.b32.xlu1 %v3409_v4, %s5372_s7  ;;  %v3410_v57 = vmul.f32 %v3409_v4, %v6068_v56 }
0x1fe4   :  { %v3413_v7 = vpop.permute.xlu1 %3412 }
0x1fe5   :  { %v3415_v25 = vmul.f32 %v3413_v7, %v3409_v4 }
0x1fe7   :  { %3417 = vrot.lane.b32.xlu0 %v3415_v25, %s5373_s25 }
0x2059   :  { %v3418_v6 = vpop.permute.xlu0 %3417 }
0x205a   :  { %v6178_v59 = vadd.f32 %v3418_v6, %v3410_v57 }
0x205c   :  { %5123 = vtanh.f32 %v6178_v59 }
0x205d   :  { %5125 = vtanh.f32 %v3673_v41 }
0x2069   :  { %v5124_v11 = vpop.eup %5123 }
0x206a   :  { %3423 = vrot.lane.b32.xlu1 %v5124_v11, %s5374_s13  ;;  %v5126_v16 = vpop.eup %5125 }
0x206b   :  { %v3675_v17 = vmul.f32 0.5, %v5126_v16 }
0x206d   :  { %v3676_v23 = vadd.f32 0.5, %v3675_v17 }
0x206f   :  { %v3677_v56 = vsel %vm5580_vm7, %v5126_v16, %v3676_v23 }
0x20dc   :  { %v3424_v21 = vpop.permute.xlu1 %3423 }
0x20dd   :  { %v3426_v22 = vmul.f32 %v3424_v21, %v3409_v4 }
0x20df   :  { %3428 = vrot.lane.b32.xlu0 %v3426_v22, %s5375_s29 }
0x20e3   :  { %3680 = vrot.lane.b32.xlu0 %v3677_v56, %s5372_s7 }
0x2151   :  { %v3429_v27 = vpop.permute.xlu0 %3428 }
0x2152   :  { %4966 = vmatmul.mubr.msk.f32.vlgmr.msra.gmra.mxu0 %vm801_vm4, %v3429_v27  ;;  %4973 = vmatmul.mubr.msk.f32.vlgmr.msra.gmra.mxu1 %vm801_vm4, %v3429_v27 }
0x2153   :  { %4983 = vmatpush3.msk.msra.mxu1 %vm805_vm3, %v5991_v1  ;;  %4986 = vmatprep.mubr.msk.f32.mxu1 %vm5371_vm0, %v5370_v0  ;;  %v3678_v1 = vmul.f32 %v3677_v56, %v6100_v14 }
0x2154   :  { %4984 = vmatprep.subr.mxu1 %v5370_v0  ;;  %4976 = vmatpush3.msk.msra.mxu0 %vm805_vm3, %v6085_v42 }
0x2155   :  { %v3681_v15 = vpop.permute.xlu0 %3680  ;;  %4985 = vmatpush3.msra.mxu1 %v6003_v52  ;;  %4977 = vmatprep.subr.mxu0 %v5370_v0 }
0x2156   :  { %v3683_v5 = vmul.f32 %v3681_v15, %v3677_v56  ;;  %4978 = vmatpush3.msra.mxu0 %v6091_v10  ;;  %4979 = vmatprep.mubr.msk.f32.mxu0 %vm5371_vm0, %v5370_v0 }
0x2157   :  { %4989 = vmatprep.subr.mxu0 %v5370_v0  ;;  %4996 = vmatprep.subr.mxu1 %v5370_v0 }
0x2158   :  { %3685 = vrot.lane.b32.xlu0 %v3683_v5, %s5373_s25 }
0x21ca   :  { %v3686_v18 = vpop.permute.xlu0 %3685 }
0x21cb   :  { %v6206_v58 = vadd.f32 %v3686_v18, %v3678_v1 }
0x21cd   :  { %5127 = vtanh.f32 %v6206_v58 }
0x21da   :  { %v5128_v52 = vpop.eup %5127 }
0x21db   :  { %3691 = vrot.lane.b32.xlu0 %v5128_v52, %s5374_s13 }
0x2212   :  { %v6210_v28 = vpop.f32.mrf.mxu0  ;;  %v3568_v30 = vpop.f32.mrf.mxu1 }
0x2213   :  { %v3569_v31 = vadd.f32 %v3568_v30, %v3230_v34 }
0x2214   :  { %v4967_v35 = vpop.f32.mrf.mxu0  ;;  %v4974_v36 = vpop.f32.mrf.mxu1 }
0x2215   :  { %v3572_v20 = vadd.f32 %v6212_v53, %v3569_v31 }
0x2217   :  { %v3573_v13 = vmul.f32 0.5, %v3572_v20 }
0x2219   :  { %v3574_v14 = vsel %vm5580_vm7, %v3572_v20, %v3573_v13 }
0x221a   :  { %5129 = vtanh.f32 %v3574_v14 }
0x2227   :  { %v5130_v60 = vpop.eup %5129 }
0x2228   :  { %v3576_v39 = vmul.f32 0.5, %v5130_v60 }
0x222a   :  { %v3577_v51 = vadd.f32 0.5, %v3576_v39 }
0x222c   :  { %v3578_v3 = vsel %vm5580_vm7, %v5130_v60, %v3577_v51 }
0x222d   :  { %3581 = vrot.lane.b32.xlu1 %v3578_v3, %s5372_s7  ;;  %v3579_v50 = vmul.f32 %v3578_v3, %v6131_v48 }
0x224d   :  { %v3692_v43 = vpop.permute.xlu0 %3691 }
0x224e   :  { %v3694_v44 = vmul.f32 %v3692_v43, %v3677_v56 }
0x2250   :  { %3696 = vrot.lane.b32.xlu0 %v3694_v44, %s5375_s29 }
0x229f   :  { %v3582_v33 = vpop.permute.xlu1 %3581 }
0x22a0   :  { %v3584_v45 = vmul.f32 %v3582_v33, %v3578_v3 }
0x22a2   :  { %3586 = vrot.lane.b32.xlu1 %v3584_v45, %s5373_s25 }
0x22c2   :  { %v3697_v34 = vpop.permute.xlu0 %3696 }
0x22c3   :  { %4987 = vmatmul.mubr.msk.f32.vlgmr.msra.gmra.mxu1 %vm801_vm4, %v3697_v34 }
0x22c4   :  { %4997 = vmatpush3.msk.msra.mxu1 %vm805_vm3, %v6116_v49  ;;  %5000 = vmatprep.mubr.msk.f32.mxu1 %vm5371_vm0, %v5370_v0  ;;  %v788_v49 = vadd.f32 %v6039_v47, %v5698_v63 }
0x22c5   :  { %4998 = vmatprep.subr.mxu1 %v5370_v0 }
0x22c6   :  { %4999 = vmatpush3.msra.mxu1 %v6126_v37 }
0x22c7   :  { %5010 = vmatprep.subr.mxu1 %v5370_v0 }
0x2314   :  { %v3587_v54 = vpop.permute.xlu1 %3586 }
0x2315   :  { %v6231_v55 = vadd.f32 %v3587_v54, %v3579_v50 }
0x2317   :  { %5131 = vtanh.f32 %v6231_v55 }
0x2324   :  { %v5132_v9 = vpop.eup %5131 }
0x2325   :  { %3592 = vrot.lane.b32.xlu1 %v5132_v9, %s5374_s13 }
0x2383   :  { %v3766_v12 = vpop.f32.mrf.mxu1 }
0x2384   :  { %v4108_v38 = vadd.f32 %v3766_v12, %v788_v49 }
0x2385   :  { %v4988_v62 = vpop.f32.mrf.mxu1 }
0x2386   :  { %v4109_v26 = vmul.f32 0.5, %v4108_v38 }
0x2388   :  { %v4110_v37 = vsel %vm5580_vm7, %v4108_v38, %v4109_v26 }
0x2389   :  { %5133 = vtanh.f32 %v4110_v37 }
0x2396   :  { %v5134_v48 = vpop.eup %5133 }
0x2397   :  { %v3593_v2 = vpop.permute.xlu1 %3592  ;;  %v4112_v40 = vmul.f32 0.5, %v5134_v48 }
0x2398   :  { %v3595_v4 = vmul.f32 %v3593_v2, %v3578_v3 }
0x2399   :  { %v4113_v7 = vadd.f32 0.5, %v4112_v40 }
0x239a   :  { %3597 = vrot.lane.b32.xlu1 %v3595_v4, %s5375_s29 }
0x239b   :  { %v4114_v25 = vsel %vm5580_vm7, %v5134_v48, %v4113_v7 }
0x239c   :  { %4117 = vrot.lane.b32.xlu0 %v4114_v25, %s5372_s7  ;;  %v4115_v6 = vmul.f32 %v4114_v25, %v6206_v58 }
0x240c   :  { %v3598_v63 = vpop.permute.xlu1 %3597 }
0x240d   :  { %4980 = vmatmul.mubr.msk.f32.vlgmr.msra.gmra.mxu0 %vm801_vm4, %v3598_v63 }
0x240e   :  { %4990 = vmatpush3.msk.msra.mxu0 %vm805_vm3, %v6142_v29  ;;  %v4118_v47 = vpop.permute.xlu0 %4117  ;;  %4993 = vmatprep.mubr.msk.f32.mxu0 %vm5371_vm0, %v5370_v0 }
0x240f   :  { %v4120_v57 = vmul.f32 %v4118_v47, %v4114_v25  ;;  %4991 = vmatprep.subr.mxu0 %v5370_v0 }
0x2410   :  { %4992 = vmatpush3.msra.mxu0 %v6152_v19 }
0x2411   :  { %4994 = vmatmul.mubr.msk.f32.vlgmr.msra.gmra.mxu0 %vm801_vm4, %v3697_v34  ;;  %4122 = vrot.lane.b32.xlu0 %v4120_v57, %s5373_s25 }
0x2412   :  { %5003 = vmatprep.subr.mxu0 %v5370_v0  ;;  %5007 = vmatprep.mubr.msk.f32.mxu0 %vm5371_vm0, %v5370_v0 }
0x2413   :  { %5004 = vmatpush3.msk.msra.mxu0 %vm805_vm3, %v6157_v46 }
0x2414   :  { %5005 = vmatprep.subr.mxu0 %v5370_v0 }
0x2415   :  { %5006 = vmatpush3.msra.mxu0 %v6164_v8 }
0x2416   :  { %5017 = vmatprep.subr.mxu0 %v5370_v0 }
0x2483   :  { %v4123_v11 = vpop.permute.xlu0 %4122 }
0x2484   :  { %v4125_v32 = vadd.f32 %v4123_v11, %v4115_v6 }
0x2486   :  { %5135 = vtanh.f32 %v4125_v32 }
0x2493   :  { %v5136_v41 = vpop.eup %5135 }
0x2494   :  { %4128 = vrot.lane.b32.xlu0 %v5136_v41, %s5374_s13 }
0x24cd   :  { %v3667_v16 = vpop.f32.mrf.mxu0 }
0x24cf   :  { %v4981_v17 = vpop.f32.mrf.mxu0 }
0x24d1   :  { %v3836_v21 = vpop.f32.mrf.mxu0 }
0x24d2   :  { %v3837_v22 = vadd.f32 %v3836_v21, %v6210_v28 }
0x24d3   :  { %v4995_v23 = vpop.f32.mrf.mxu0 }
0x24d4   :  { %v3840_v56 = vadd.f32 %v6168_v61, %v3837_v22 }
0x24d6   :  { %v3841_v27 = vmul.f32 0.5, %v3840_v56 }
0x24d8   :  { %v3842_v15 = vsel %vm5580_vm7, %v3840_v56, %v3841_v27 }
0x24d9   :  { %5137 = vtanh.f32 %v3842_v15 }
0x24e6   :  { %v5138_v5 = vpop.eup %5137 }
0x24e7   :  { %v3844_v1 = vmul.f32 0.5, %v5138_v5 }
0x24e9   :  { %v3845_v18 = vadd.f32 0.5, %v3844_v1 }
0x24eb   :  { %v3846_v58 = vsel %vm5580_vm7, %v5138_v5, %v3845_v18 }
0x24ec   :  { %3849 = vrot.lane.b32.xlu1 %v3846_v58, %s5372_s7  ;;  %v3847_v35 = vmul.f32 %v3846_v58, %v6178_v59 }
0x2506   :  { %v4129_v52 = vpop.permute.xlu0 %4128 }
0x2507   :  { %v4131_v30 = vmul.f32 %v4129_v52, %v4114_v25 }
0x2509   :  { %4133 = vrot.lane.b32.xlu0 %v4131_v30, %s5375_s29 }
0x255e   :  { %v3850_v28 = vpop.permute.xlu1 %3849 }
0x255f   :  { %v3852_v31 = vmul.f32 %v3850_v28, %v3846_v58 }
0x2561   :  { %3854 = vrot.lane.b32.xlu1 %v3852_v31, %s5373_s25 }
0x257b   :  { %v4134_v59 = vpop.permute.xlu0 %4133 }
0x25d3   :  { %v3855_v36 = vpop.permute.xlu1 %3854 }
0x25d4   :  { %v3857_v20 = vadd.f32 %v3855_v36, %v3847_v35 }
0x25d6   :  { %5139 = vtanh.f32 %v3857_v20 }
0x25e3   :  { %v5140_v13 = vpop.eup %5139 }
0x25e4   :  { %3860 = vrot.lane.b32.xlu1 %v5140_v13, %s5374_s13  ;;  %v4331_v13 = vld [vmem:[%s6353_s12 + $0x8] sm:$0x7f] }
0x2656   :  { %v3861_v14 = vpop.permute.xlu1 %3860 }
0x2657   :  { %v3863_v60 = vmul.f32 %v3861_v14, %v3846_v58  ;;  %v4330_v14 = vld [vmem:[%s6353_s12] sm:$0xff] }
0x2659   :  { %3865 = vrot.lane.b32.xlu1 %v3863_v60, %s5375_s29 }
0x26cb   :  { %v3866_v39 = vpop.permute.xlu1 %3865 }
0x26cc   :  { %5001 = vmatmul.mubr.msk.f32.vlgmr.msra.gmra.mxu1 %vm801_vm4, %v3866_v39  ;;  %5008 = vmatmul.mubr.msk.f32.vlgmr.msra.gmra.mxu0 %vm801_vm4, %v3866_v39 }
0x26cd   :  { %5018 = vmatpush3.msk.msra.mxu0 %vm805_vm3, %v6142_v29  ;;  %5021 = vmatprep.mubr.msk.f32.mxu0 %vm5371_vm0, %v5370_v0 }
0x26ce   :  { %5019 = vmatprep.subr.mxu0 %v5370_v0  ;;  %5011 = vmatpush3.msk.msra.mxu1 %vm805_vm3, %v6085_v42 }
0x26cf   :  { %5020 = vmatpush3.msra.mxu0 %v6152_v19  ;;  %5012 = vmatprep.subr.mxu1 %v5370_v0 }
0x26d0   :  { %5022 = vmatmul.mubr.msk.f32.vlgmr.msra.gmra.mxu0 %vm801_vm4, %v4134_v59  ;;  %5013 = vmatpush3.msra.mxu1 %v6091_v10 }
0x26d1   :  { %5014 = vmatprep.mubr.msk.f32.mxu1 %vm5371_vm0, %v5370_v0  ;;  %5024 = vmatprep.subr.mxu1 %v5370_v0 }
0x26d2   :  { %5031 = vmatprep.subr.mxu0 %v5370_v0  ;;  %5035 = vmatprep.mubr.msk.f32.mxu0 %vm5371_vm0, %v5370_v0 }
0x26d3   :  { %5032 = vmatpush3.msk.msra.mxu0 %vm805_vm3, %v4331_v13 }
0x26d4   :  { %5033 = vmatprep.subr.mxu0 %v5370_v0 }
0x26d5   :  { %5034 = vmatpush3.msra.mxu0 %v4330_v14 }
0x278c   :  { %v3935_v42 = vpop.f32.mrf.mxu1  ;;  %v4005_v29 = vpop.f32.mrf.mxu0 }
0x278d   :  { %v4006_v51 = vadd.f32 %v4005_v29, %v3667_v16 }
0x278e   :  { %v5002_v19 = vpop.f32.mrf.mxu1  ;;  %v5009_v3 = vpop.f32.mrf.mxu0 }
0x278f   :  { %v4009_v43 = vadd.f32 %v6212_v53, %v4006_v51 }
0x2790   :  { %v4203_v44 = vpop.f32.mrf.mxu0 }
0x2791   :  { %v4010_v33 = vmul.f32 0.5, %v4009_v43  ;;  %v4204_v10 = vadd.f32 %v4203_v44, %v3935_v42  ;;  %v4545_v42 = vld [vmem:[#allocation14] ss:$0 sm:$0xff] }
0x2792   :  { %v5023_v45 = vpop.f32.mrf.mxu0 }
0x2793   :  { %v4011_v34 = vsel %vm5580_vm7, %v4009_v43, %v4010_v33  ;;  %v4207_v50 = vadd.f32 %v6168_v61, %v4204_v10 }
0x2794   :  { %5141 = vtanh.f32 %v4011_v34 }
0x2795   :  { %v4208_v54 = vmul.f32 0.5, %v4207_v50 }
0x2797   :  { %v4209_v9 = vsel %vm5580_vm7, %v4207_v50, %v4208_v54 }
0x2798   :  { %5143 = vtanh.f32 %v4209_v9 }
0x27a1   :  { %v5142_v49 = vpop.eup %5141 }
0x27a2   :  { %v4013_v12 = vmul.f32 0.5, %v5142_v49 }
0x27a4   :  { %v4014_v38 = vadd.f32 0.5, %v4013_v12 }
0x27a5   :  { %v5144_v62 = vpop.eup %5143 }
0x27a6   :  { %v4015_v26 = vsel %vm5580_vm7, %v5142_v49, %v4014_v38  ;;  %v4211_v37 = vmul.f32 0.5, %v5144_v62 }
0x27a7   :  { %4018 = vrot.lane.b32.xlu1 %v4015_v26, %s5372_s7  ;;  %v4016_v25 = vmul.f32 %v4015_v26, %v6231_v55 }
0x27a8   :  { %v4212_v48 = vadd.f32 0.5, %v4211_v37 }
0x27aa   :  { %v4213_v61 = vsel %vm5580_vm7, %v5144_v62, %v4212_v48 }
0x27ab   :  { %4216 = vrot.lane.b32.xlu0 %v4213_v61, %s5372_s7  ;;  %v4214_v57 = vmul.f32 %v4213_v61, %v3857_v20 }
0x2819   :  { %v4019_v2 = vpop.permute.xlu1 %4018 }
0x281a   :  { %v4021_v40 = vmul.f32 %v4019_v2, %v4015_v26 }
0x281c   :  { %4023 = vrot.lane.b32.xlu1 %v4021_v40, %s5373_s25 }
0x281d   :  { %v4217_v4 = vpop.permute.xlu0 %4216 }
0x281e   :  { %v4219_v7 = vmul.f32 %v4217_v4, %v4213_v61 }
0x2820   :  { %4221 = vrot.lane.b32.xlu0 %v4219_v7, %s5373_s25 }
0x288e   :  { %v4024_v63 = vpop.permute.xlu1 %4023 }
0x288f   :  { %v4026_v47 = vadd.f32 %v4024_v63, %v4016_v25 }
0x2891   :  { %5145 = vtanh.f32 %v4026_v47 }
0x2892   :  { %v4222_v6 = vpop.permute.xlu0 %4221 }
0x2893   :  { %v4224_v11 = vadd.f32 %v4222_v6, %v4214_v57 }
0x2895   :  { %5147 = vtanh.f32 %v4224_v11 }
0x289e   :  { %v5146_v32 = vpop.eup %5145 }
0x289f   :  { %4029 = vrot.lane.b32.xlu1 %v5146_v32, %s5374_s13 }
0x28a2   :  { %v5148_v41 = vpop.eup %5147 }
0x28a3   :  { %4227 = vrot.lane.b32.xlu0 %v5148_v41, %s5374_s13 }
0x2911   :  { %v4030_v16 = vpop.permute.xlu1 %4029 }
0x2912   :  { %v4032_v17 = vmul.f32 %v4030_v16, %v4015_v26 }
0x2914   :  { %4034 = vrot.lane.b32.xlu1 %v4032_v17, %s5375_s29 }
0x2915   :  { %v4228_v21 = vpop.permute.xlu0 %4227 }
0x2916   :  { %v4230_v22 = vmul.f32 %v4228_v21, %v4213_v61 }
0x2918   :  { %4232 = vrot.lane.b32.xlu0 %v4230_v22, %s5375_s29 }
0x2986   :  { %v4035_v55 = vpop.permute.xlu1 %4034 }
0x2987   :  { %5015 = vmatmul.mubr.msk.f32.vlgmr.msra.gmra.mxu1 %vm801_vm4, %v4035_v55 }
0x2988   :  { %5025 = vmatpush3.msk.msra.mxu1 %vm805_vm3, %v6157_v46  ;;  %5028 = vmatprep.mubr.msk.f32.mxu1 %vm5371_vm0, %v5370_v0 }
0x2989   :  { %5026 = vmatprep.subr.mxu1 %v5370_v0 }
0x298a   :  { %5027 = vmatpush3.msra.mxu1 %v6164_v8  ;;  %v4233_v23 = vpop.permute.xlu0 %4232 }
0x298b   :  { %5029 = vmatmul.mubr.msk.f32.vlgmr.msra.gmra.mxu1 %vm801_vm4, %v4233_v23 }
0x2a47   :  { %v4104_v56 = vpop.f32.mrf.mxu1 }
0x2a49   :  { %v5016_v27 = vpop.f32.mrf.mxu1 }
0x2a4b   :  { %v4302_v15 = vpop.f32.mrf.mxu1 }
0x2a4c   :  { %v4303_v5 = vadd.f32 %v4302_v15, %v4104_v56 }
0x2a4d   :  { %v5030_v1 = vpop.f32.mrf.mxu1 }
0x2a4e   :  { %v4306_v18 = vadd.f32 %v6212_v53, %v4303_v5 }
0x2a50   :  { %v4307_v58 = vmul.f32 0.5, %v4306_v18 }
0x2a52   :  { %v4308_v46 = vsel %vm5580_vm7, %v4306_v18, %v4307_v58 }
0x2a53   :  { %5149 = vtanh.f32 %v4308_v46 }
0x2a60   :  { %v5150_v52 = vpop.eup %5149 }
0x2a61   :  { %v4310_v30 = vmul.f32 0.5, %v5150_v52 }
0x2a63   :  { %v4311_v28 = vadd.f32 0.5, %v4310_v30 }
0x2a65   :  { %v4312_v8 = vsel %vm5580_vm7, %v5150_v52, %v4311_v28 }
0x2a66   :  { %4315 = vrot.lane.b32.xlu1 %v4312_v8, %s5372_s7  ;;  %v4313_v36 = vmul.f32 %v4312_v8, %v4026_v47  ;;  %s5376_s7 = smov [#allocation16]  }
0x2ad8   :  { %v4316_v31 = vpop.permute.xlu1 %4315 }
0x2ad9   :  { %v4318_v35 = vmul.f32 %v4316_v31, %v4312_v8 }
0x2adb   :  { %4320 = vrot.lane.b32.xlu0 %v4318_v35, %s5373_s25  ;;  %s4426_s25 = sshll.u32 %s5376_s7, 4  ;;  %s4427_s25 = int_to_ptr.vmem [resolvable:$true] %s4426_s25 }
0x2adc   :  { %s5326_s12 = scalar_lea.vmem %s4427_s25, 32  ;;  %p5331_p13 = scmp.lt.s32.totalorder %s4427_s25, %s4427_s25 }
0x2add   :  { %p5327_p12 = scmp.ne.s32.totalorder %s4427_s25, %s5326_s12  ;;  %p5332_p0 = scmp.lt.s32.totalorder %s5326_s12, %s5326_s12 }
0x2adf   :  { %p5333_p1 = por %p5332_p0, %p5331_p13 }
0x2ae1   :  { %p5334_p2 = pnand %p5333_p1, %p5327_p12 }
0x2b4d   :  { %v4321_v20 = vpop.permute.xlu0 %4320 }
0x2b4e   :  { %v4323_v53 = vadd.f32 %v4321_v20, %v4313_v36 }
0x2b50   :  { %5151 = vtanh.f32 %v4323_v53 }
0x2b5d   :  { %v5152_v24 = vpop.eup %5151 }
0x2b5e   :  { %4326 = vrot.lane.b32.xlu1 %v5152_v24, %s5374_s13 }
0x2bd0   :  { %v4327_v60 = vpop.permute.xlu1 %4326 }
0x2bd1   :  { %v4329_v39 = vmul.f32 %v4327_v60, %v4312_v8 }
0x2bd3   :  { %4340 = vrot.lane.b32.xlu0 %v4329_v39, %s5375_s29 }
0x2c45   :  { %v4341_v59 = vpop.permute.xlu0 %4340 }
0x2c46   :  { %5036 = vmatmul.mubr.msk.f32.vlgmr.msra.gmra.mxu0 %vm801_vm4, %v4341_v59 }
0x2d06   :  { %v4413_v29 = vpop.f32.mrf.mxu0 }
0x2d07   :  { %v4414_v51 = vadd.f32 %v4545_v42, %v4413_v29 }
0x2d08   :  { %v5037_v19 = vpop.f32.mrf.mxu0 }
0x2d09   :  { %v4417_v3 = vmax.f32 %v4414_v51, 0.0 }
0x2d0b   :  { %4419 = vst.msk [vmem:[#allocation16] sm:$0x3] %vm4418_vm8, %v4417_v3 }
0x2d0c   :  { %5337 = shalt.err (!%p5334_p2)
}
0x2d0d   :  { %4429 = dma.vmem_to_hbm [thread:$0]  %s4427_s25, 32, %s6355_s14, [#allocation4]  }
0x2d0e   :  { %5356 = dma.done.wait [#allocation4], 32  }
0x2d0f   :  { %5357 = vsyncadd [#allocation4], 4294967264 }
0x2d10   :  { %4433 = vsyncpa [#allocation3], 1 }
0x2d11   :  { %4434 = vsyncpa [#allocation6], 1 }
0x2d12   :  { %4435 = vsyncpa [#allocation9], 1 }
0x2d13   :  { %4436 = vsyncpa [#allocation12], 1 }
0x2d14   :  { %4437 = vsyncpa [#allocation15], 1 }
0x2d15   :  { %4438 = vsyncpa [#allocation4], 1 }

</bundles_post_ra>
